<compile_context>
chip_gen: v7x
topology: tpu7x:2x2x1
jax: 0.10.0
libtpu: 0.0.40
codegen_flags: <defaults>
</compile_context>

<pallas_src>
import jax
import jax.numpy as jnp
from jax import lax
from jax.experimental import pallas as pl
from jax.experimental.pallas import tpu as pltpu

CIN, C1, C2 = 3, 64, 256
K1 = 32  # conv1 im2col depth: 9 taps * 3 channels = 27, zero-padded to 32


def _dims(H, W):
    WQ = W + 8              # extended width: col b = w + 1; halo cols 0, W+1..WQ-1
    AE = H + 3              # extended rows (a = h + 1) + 1 bottom guard row
    return dict(WQ=WQ, AE=AE, ME=AE * WQ, MC=H * WQ,
                NPRE=(H // 2) * W, NPOOL=(H // 2) * (W // 2))


# ----------------------------------------------------------------------------
# Fused conv1 -> ReLU -> conv2 -> ReLU -> MaxPool3d(2) kernel.
# ----------------------------------------------------------------------------
def _make_fused_kernel(H, W):
    d = _dims(H, W)
    WQ, ME, MC, NPOOL = d["WQ"], d["ME"], d["MC"], d["NPOOL"]

    def kernel(xcol_ref, w1_ref, b1_ref, halo_ref, w2_ref, b2_ref, out_ref,
               y1_ref, col_ref, row_ref):
        # ---------------- conv1 (3->64) + bias + ReLU (one matmul) -----------
        acc1 = jnp.dot(xcol_ref[...], w1_ref[...],
                       preferred_element_type=jnp.float32)            # (ME, 64)
        # Halo rows multiplied to 0 so they act as conv2's padding=1 zeros.
        y1 = jnp.maximum(acc1 + b1_ref[...], 0.0) * halo_ref[...]
        y1_ref[...] = y1.astype(jnp.bfloat16)                         # stays in VMEM

        # ---------------- conv2 im2col: K = 9 taps x 64 channels -------------
        # Flat extended layout (row = a*WQ + b) => tap (dh, dw) is a contiguous
        # sublane-offset slice: no dim-merging reshape, no lane relayout.
        for t in range(9):
            dh, dw = divmod(t, 3)
            off = dh * WQ + dw
            col_ref[:, t * C1:(t + 1) * C1] = y1_ref[off:off + MC, :]

        # ---------------- conv2 (64->256): ONE K=576 bf16 matmul -------------
        y2 = jnp.dot(col_ref[...], w2_ref[...],
                     preferred_element_type=jnp.float32)              # (MC, 256)
        y2 = jnp.maximum(y2 + b2_ref[...], 0.0)

        # ---------------- MaxPool3d(2, stride=2) -----------------------------
        # (a) channel pairs: w2 output channels were permuted host-side so the
        #     partner of lane c is lane c+128 -> plain lane-half max (VPU).
        cp = jnp.maximum(y2[:, :C2 // 2], y2[:, C2 // 2:])            # (MC, 128)
        # (b) row pairs (2i, 2i+1): 8-aligned slices + elementwise max; also
        #     drops the WQ-W garbage columns (keeps w < W only).
        for i in range(H // 2):
            r = 2 * i * WQ
            row_ref[i * W:(i + 1) * W, :] = jnp.maximum(
                cp[r:r + W, :], cp[r + WQ:r + WQ + W, :])
        # (c) column pairs (2j, 2j+1): stride-2 sublane reads of the small
        #     (NPRE, 128) scratch; output store is lane-dense full tiles.
        even = row_ref[pl.ds(0, NPOOL, stride=2), :]
        odd = row_ref[pl.ds(1, NPOOL, stride=2), :]
        out_ref[...] = jnp.maximum(even, odd)                         # (NPOOL, 128)

    return kernel


# ----------------------------------------------------------------------------
# Wrapper: host-side layout prep + single fused pallas_call.
# ----------------------------------------------------------------------------
def forward(x_nchw, w1, b1, w2, b2):
    """x: (1,3,H,W); w1: (3,3,3,64) HWIO; w2: (3,3,64,256) HWIO."""
    # MaxPool3d on a 4-D tensor uses unbatched (C, D, H, W) semantics -> N == 1.
    assert x_nchw.shape[0] == 1
    _, cin, H, W = x_nchw.shape
    assert cin == CIN and H % 2 == 0 and W % 8 == 0
    d = _dims(H, W)
    WQ, AE, ME = d["WQ"], d["AE"], d["ME"]

    # ----- conv1 im2col over the extended domain (tiny, one-time, XLA) -------
    x_hwc = jnp.transpose(x_nchw[0], (1, 2, 0))                       # (H, W, 3)
    xq = jnp.pad(x_hwc, ((2, AE - H), (2, WQ - W), (0, 0)))           # (AE+2, WQ+2, 3)
    xcol = jnp.concatenate(
        [xq[dh:dh + AE, dw:dw + WQ, :] for dh in range(3) for dw in range(3)],
        axis=-1).reshape(ME, 9 * CIN).astype(jnp.float32)             # (ME, 27)
    xcol = jnp.pad(xcol, ((0, 0), (0, K1 - 9 * CIN)))                 # K 27 -> 32
    w1c = jnp.pad(w1.reshape(9 * CIN, C1).astype(jnp.float32),
                  ((0, K1 - 9 * CIN), (0, 0)))                        # (32, 64)
    b1c = b1.reshape(1, C1).astype(jnp.float32)

    # Halo mask: zero everything outside the valid (1..H, 1..W) region (these
    # rows become conv2's zero padding).
    a_ix = jnp.arange(ME) // WQ
    b_ix = jnp.arange(ME) % WQ
    halo = ((a_ix >= 1) & (a_ix <= H) & (b_ix >= 1) & (b_ix <= W))
    halo = halo.astype(jnp.float32).reshape(ME, 1)

    # Permute conv2 output channels so pooled pair (2c, 2c+1) -> lanes (c, c+128).
    # NOTE: the kernel's channel-pair max depends on exactly this permutation.
    perm = jnp.concatenate([jnp.arange(0, C2, 2), jnp.arange(1, C2, 2)])
    w2c = w2[..., perm].reshape(9 * C1, C2).astype(jnp.bfloat16)      # (576, 256)
    b2c = b2[perm].reshape(1, C2).astype(jnp.float32)

    out = pl.pallas_call(
        _make_fused_kernel(H, W),
        out_shape=jax.ShapeDtypeStruct((d["NPOOL"], C2 // 2), jnp.float32),
        in_specs=[pl.BlockSpec(memory_space=pltpu.MemorySpace.VMEM)] * 6,
        out_specs=pl.BlockSpec(memory_space=pltpu.MemorySpace.VMEM),
        scratch_shapes=[
            pltpu.VMEM((ME, C1), jnp.bfloat16),             # y1 (flat extended)
            pltpu.VMEM((d["MC"], 9 * C1), jnp.bfloat16),    # conv2 im2col
            pltpu.VMEM((d["NPRE"], C2 // 2), jnp.float32),  # row-pooled
        ],
    )(xcol, w1c, b1c, halo, w2c, b2c)

    # Channel-major flatten (PyTorch order): wrapper-side transpose of 32 KB.
    return out.T.reshape(1, -1)


# ----------------------------------------------------------------------------
# Pure-JAX reference for verification.
# ----------------------------------------------------------------------------
def forward_ref(x_nchw, w1, b1, w2, b2):
    def conv(x, w_hwio, b):
        w_oihw = jnp.transpose(w_hwio, (3, 2, 0, 1))
        y = lax.conv_general_dilated(
            x, w_oihw, window_strides=(1, 1), padding="SAME",
            dimension_numbers=("NCHW", "OIHW", "NCHW"))
        return jnp.maximum(y + b.reshape(1, -1, 1, 1), 0.0)

    v2 = conv(x_nchw, w1, b1)
    v4 = conv(v2, w2, b2)
    # MaxPool3d on the 4-D tensor => unbatched (C, D, H, W)
    v5 = lax.reduce_window(v4[0], -jnp.inf, lax.max,
                           (2, 2, 2), (2, 2, 2), "VALID")
    return v5.reshape(1, -1)


if __name__ == "__main__":
    # Small shapes consistent with the module (batch=1, Cin=3, spatial=16).
    H = W = 16
    key = jax.random.PRNGKey(0)
    k_x, k_w1, k_b1, k_w2, k_b2 = jax.random.split(key, 5)

    x1 = jax.random.normal(k_x, (1, 3, H, W), jnp.float32)

    # Deterministic parameter init (HWIO layout), ~1/sqrt(fan_in) scaling.
    w1 = jax.random.normal(k_w1, (3, 3, 3, 64), jnp.float32) * (1.0 / (3 * 3 * 3) ** 0.5)
    b1 = jax.random.normal(k_b1, (64,), jnp.float32) * 0.05
    w2 = jax.random.normal(k_w2, (3, 3, 64, 256), jnp.float32) * (1.0 / (3 * 3 * 64) ** 0.5)
    b2 = jax.random.normal(k_b2, (256,), jnp.float32) * 0.05

    out = jax.block_until_ready(jax.jit(forward)(x1, w1, b1, w2, b2))
    ref = jax.block_until_ready(forward_ref(x1, w1, b1, w2, b2))

    assert out.shape == (1, (C2 // 2) * (H // 2) * (W // 2)), out.shape
    # conv2 uses bf16 operands (f32 accumulation) -> loosen tolerance vs f32 ref.
    assert jnp.allclose(out, ref, rtol=3e-2, atol=3e-2), float(
        jnp.max(jnp.abs(out - ref)))

    print("KERNEL_OK")
</pallas_src>

<mosaic_0001>
module attributes {stable_mosaic.version = 11 : i64} {
  func.func @kernel(%arg0: memref<456x32xf32, #tpu.memory_space<vmem>>, %arg1: memref<32x64xf32, #tpu.memory_space<vmem>>, %arg2: memref<1x64xf32, #tpu.memory_space<vmem>>, %arg3: memref<456x1xf32, #tpu.memory_space<vmem>>, %arg4: memref<576x256xbf16, #tpu.memory_space<vmem>>, %arg5: memref<1x256xf32, #tpu.memory_space<vmem>>, %arg6: memref<64x128xf32, #tpu.memory_space<vmem>>, %arg7: memref<456x64xbf16, #tpu.memory_space<vmem>>, %arg8: memref<384x576xbf16, #tpu.memory_space<vmem>>, %arg9: memref<128x128xf32, #tpu.memory_space<vmem>>) attributes {dimension_semantics = [], scalar_prefetch = 0 : i64, scratch_operands = 3 : i64, tpu.core_type = #tpu.core_type<tc>} {
    %c0 = arith.constant 0 : index
    %c0_0 = arith.constant 0 : index
    %0 = vector.load %arg0[%c0, %c0_0] : memref<456x32xf32, #tpu.memory_space<vmem>>, vector<456x32xf32>
    %c0_1 = arith.constant 0 : index
    %c0_2 = arith.constant 0 : index
    %1 = vector.load %arg1[%c0_1, %c0_2] : memref<32x64xf32, #tpu.memory_space<vmem>>, vector<32x64xf32>
    %cst = arith.constant dense<0.000000e+00> : vector<456x64xf32>
    %2 = tpu.matmul %0, %1, %cst {dimension_numbers = #tpu.dot_dimension_numbers<[1], [0], [0], [1], [0, 0, 1, 1], [], []>} : vector<456x32xf32>, vector<32x64xf32>, vector<456x64xf32> -> vector<456x64xf32>
    %c0_3 = arith.constant 0 : index
    %c0_4 = arith.constant 0 : index
    %3 = vector.load %arg2[%c0_3, %c0_4] : memref<1x64xf32, #tpu.memory_space<vmem>>, vector<1x64xf32>
    %4 = vector.broadcast %3 : vector<1x64xf32> to vector<456x64xf32>
    %5 = arith.addf %2, %4 : vector<456x64xf32>
    %cst_5 = arith.constant 0.000000e+00 : f32
    %6 = vector.broadcast %cst_5 : f32 to vector<456x64xf32>
    %7 = arith.maximumf %5, %6 : vector<456x64xf32>
    %c0_6 = arith.constant 0 : index
    %c0_7 = arith.constant 0 : index
    %8 = vector.load %arg3[%c0_6, %c0_7] : memref<456x1xf32, #tpu.memory_space<vmem>>, vector<456x1xf32>
    %9 = vector.broadcast %8 : vector<456x1xf32> to vector<456x64xf32>
    %10 = arith.mulf %7, %9 : vector<456x64xf32>
    %11 = arith.truncf %10 : vector<456x64xf32> to vector<456x64xbf16>
    %c0_8 = arith.constant 0 : index
    %c0_9 = arith.constant 0 : index
    %12 = vector.load %arg7[%c0_8, %c0_9] : memref<456x64xbf16, #tpu.memory_space<vmem>>, vector<456x64xbf16>
    tpu.vector_store %arg7[%c0_8, %c0_9], %11 {strides = array<i32>} : memref<456x64xbf16, #tpu.memory_space<vmem>>, vector<456x64xbf16>,
    %c0_10 = arith.constant 0 : index
    %c0_11 = arith.constant 0 : index
    %13 = vector.load %arg7[%c0_10, %c0_11] : memref<456x64xbf16, #tpu.memory_space<vmem>>, vector<384x64xbf16>
    %c0_12 = arith.constant 0 : index
    %c0_13 = arith.constant 0 : index
    %14 = vector.load %arg8[%c0_12, %c0_13] : memref<384x576xbf16, #tpu.memory_space<vmem>>, vector<384x64xbf16>
    tpu.vector_store %arg8[%c0_12, %c0_13], %13 {strides = array<i32>} : memref<384x576xbf16, #tpu.memory_space<vmem>>, vector<384x64xbf16>,
    %c1 = arith.constant 1 : index
    %c0_14 = arith.constant 0 : index
    %15 = vector.load %arg7[%c1, %c0_14] : memref<456x64xbf16, #tpu.memory_space<vmem>>, vector<384x64xbf16>
    %c0_15 = arith.constant 0 : index
    %c64 = arith.constant 64 : index
    %16 = vector.load %arg8[%c0_15, %c64] : memref<384x576xbf16, #tpu.memory_space<vmem>>, vector<384x64xbf16>
    tpu.vector_store %arg8[%c0_15, %c64], %15 {strides = array<i32>} : memref<384x576xbf16, #tpu.memory_space<vmem>>, vector<384x64xbf16>,
    %c2 = arith.constant 2 : index
    %c0_16 = arith.constant 0 : index
    %17 = vector.load %arg7[%c2, %c0_16] : memref<456x64xbf16, #tpu.memory_space<vmem>>, vector<384x64xbf16>
    %c0_17 = arith.constant 0 : index
    %c128 = arith.constant 128 : index
    %18 = vector.load %arg8[%c0_17, %c128] : memref<384x576xbf16, #tpu.memory_space<vmem>>, vector<384x64xbf16>
    tpu.vector_store %arg8[%c0_17, %c128], %17 {strides = array<i32>} : memref<384x576xbf16, #tpu.memory_space<vmem>>, vector<384x64xbf16>,
    %c24 = arith.constant 24 : index
    %c0_18 = arith.constant 0 : index
    %19 = vector.load %arg7[%c24, %c0_18] : memref<456x64xbf16, #tpu.memory_space<vmem>>, vector<384x64xbf16>
    %c0_19 = arith.constant 0 : index
    %c192 = arith.constant 192 : index
    %20 = vector.load %arg8[%c0_19, %c192] : memref<384x576xbf16, #tpu.memory_space<vmem>>, vector<384x64xbf16>
    tpu.vector_store %arg8[%c0_19, %c192], %19 {strides = array<i32>} : memref<384x576xbf16, #tpu.memory_space<vmem>>, vector<384x64xbf16>,
    %c25 = arith.constant 25 : index
    %c0_20 = arith.constant 0 : index
    %21 = vector.load %arg7[%c25, %c0_20] : memref<456x64xbf16, #tpu.memory_space<vmem>>, vector<384x64xbf16>
    %c0_21 = arith.constant 0 : index
    %c256 = arith.constant 256 : index
    %22 = vector.load %arg8[%c0_21, %c256] : memref<384x576xbf16, #tpu.memory_space<vmem>>, vector<384x64xbf16>
    tpu.vector_store %arg8[%c0_21, %c256], %21 {strides = array<i32>} : memref<384x576xbf16, #tpu.memory_space<vmem>>, vector<384x64xbf16>,
    %c26 = arith.constant 26 : index
    %c0_22 = arith.constant 0 : index
    %23 = vector.load %arg7[%c26, %c0_22] : memref<456x64xbf16, #tpu.memory_space<vmem>>, vector<384x64xbf16>
    %c0_23 = arith.constant 0 : index
    %c320 = arith.constant 320 : index
    %24 = vector.load %arg8[%c0_23, %c320] : memref<384x576xbf16, #tpu.memory_space<vmem>>, vector<384x64xbf16>
    tpu.vector_store %arg8[%c0_23, %c320], %23 {strides = array<i32>} : memref<384x576xbf16, #tpu.memory_space<vmem>>, vector<384x64xbf16>,
    %c48 = arith.constant 48 : index
    %c0_24 = arith.constant 0 : index
    %25 = vector.load %arg7[%c48, %c0_24] : memref<456x64xbf16, #tpu.memory_space<vmem>>, vector<384x64xbf16>
    %c0_25 = arith.constant 0 : index
    %c384 = arith.constant 384 : index
    %26 = vector.load %arg8[%c0_25, %c384] : memref<384x576xbf16, #tpu.memory_space<vmem>>, vector<384x64xbf16>
    tpu.vector_store %arg8[%c0_25, %c384], %25 {strides = array<i32>} : memref<384x576xbf16, #tpu.memory_space<vmem>>, vector<384x64xbf16>,
    %c49 = arith.constant 49 : index
    %c0_26 = arith.constant 0 : index
    %27 = vector.load %arg7[%c49, %c0_26] : memref<456x64xbf16, #tpu.memory_space<vmem>>, vector<384x64xbf16>
    %c0_27 = arith.constant 0 : index
    %c448 = arith.constant 448 : index
    %28 = vector.load %arg8[%c0_27, %c448] : memref<384x576xbf16, #tpu.memory_space<vmem>>, vector<384x64xbf16>
    tpu.vector_store %arg8[%c0_27, %c448], %27 {strides = array<i32>} : memref<384x576xbf16, #tpu.memory_space<vmem>>, vector<384x64xbf16>,
    %c50 = arith.constant 50 : index
    %c0_28 = arith.constant 0 : index
    %29 = vector.load %arg7[%c50, %c0_28] : memref<456x64xbf16, #tpu.memory_space<vmem>>, vector<384x64xbf16>
    %c0_29 = arith.constant 0 : index
    %c512 = arith.constant 512 : index
    %30 = vector.load %arg8[%c0_29, %c512] : memref<384x576xbf16, #tpu.memory_space<vmem>>, vector<384x64xbf16>
    tpu.vector_store %arg8[%c0_29, %c512], %29 {strides = array<i32>} : memref<384x576xbf16, #tpu.memory_space<vmem>>, vector<384x64xbf16>,
    %c0_30 = arith.constant 0 : index
    %c0_31 = arith.constant 0 : index
    %31 = vector.load %arg8[%c0_30, %c0_31] : memref<384x576xbf16, #tpu.memory_space<vmem>>, vector<384x576xbf16>
    %c0_32 = arith.constant 0 : index
    %c0_33 = arith.constant 0 : index
    %32 = vector.load %arg4[%c0_32, %c0_33] : memref<576x256xbf16, #tpu.memory_space<vmem>>, vector<576x256xbf16>
    %cst_34 = arith.constant dense<0.000000e+00> : vector<384x256xf32>
    %33 = tpu.matmul %31, %32, %cst_34 {dimension_numbers = #tpu.dot_dimension_numbers<[1], [0], [0], [1], [0, 0, 1, 1], [], []>} : vector<384x576xbf16>, vector<576x256xbf16>, vector<384x256xf32> -> vector<384x256xf32>
    %c0_35 = arith.constant 0 : index
    %c0_36 = arith.constant 0 : index
    %34 = vector.load %arg5[%c0_35, %c0_36] : memref<1x256xf32, #tpu.memory_space<vmem>>, vector<1x256xf32>
    %35 = vector.broadcast %34 : vector<1x256xf32> to vector<384x256xf32>
    %36 = arith.addf %33, %35 : vector<384x256xf32>
    %cst_37 = arith.constant 0.000000e+00 : f32
    %37 = vector.broadcast %cst_37 : f32 to vector<384x256xf32>
    %38 = arith.maximumf %36, %37 : vector<384x256xf32>
    %39 = vector.extract_strided_slice %38 {offsets = [0, 0], sizes = [384, 128], strides = [1, 1]} : vector<384x256xf32> to vector<384x128xf32>
    %40 = vector.extract_strided_slice %38 {offsets = [0, 128], sizes = [384, 128], strides = [1, 1]} : vector<384x256xf32> to vector<384x128xf32>
    %41 = arith.maximumf %39, %40 : vector<384x128xf32>
    %42 = vector.extract_strided_slice %41 {offsets = [0, 0], sizes = [16, 128], strides = [1, 1]} : vector<384x128xf32> to vector<16x128xf32>
    %43 = vector.extract_strided_slice %41 {offsets = [24, 0], sizes = [16, 128], strides = [1, 1]} : vector<384x128xf32> to vector<16x128xf32>
    %44 = arith.maximumf %42, %43 : vector<16x128xf32>
    %c0_38 = arith.constant 0 : index
    %c0_39 = arith.constant 0 : index
    %45 = vector.load %arg9[%c0_38, %c0_39] : memref<128x128xf32, #tpu.memory_space<vmem>>, vector<16x128xf32>
    tpu.vector_store %arg9[%c0_38, %c0_39], %44 {strides = array<i32>} : memref<128x128xf32, #tpu.memory_space<vmem>>, vector<16x128xf32>,
    %46 = vector.extract_strided_slice %41 {offsets = [48, 0], sizes = [16, 128], strides = [1, 1]} : vector<384x128xf32> to vector<16x128xf32>
    %47 = vector.extract_strided_slice %41 {offsets = [72, 0], sizes = [16, 128], strides = [1, 1]} : vector<384x128xf32> to vector<16x128xf32>
    %48 = arith.maximumf %46, %47 : vector<16x128xf32>
    %c16 = arith.constant 16 : index
    %c0_40 = arith.constant 0 : index
    %49 = vector.load %arg9[%c16, %c0_40] : memref<128x128xf32, #tpu.memory_space<vmem>>, vector<16x128xf32>
    tpu.vector_store %arg9[%c16, %c0_40], %48 {strides = array<i32>} : memref<128x128xf32, #tpu.memory_space<vmem>>, vector<16x128xf32>,
    %50 = vector.extract_strided_slice %41 {offsets = [96, 0], sizes = [16, 128], strides = [1, 1]} : vector<384x128xf32> to vector<16x128xf32>
    %51 = vector.extract_strided_slice %41 {offsets = [120, 0], sizes = [16, 128], strides = [1, 1]} : vector<384x128xf32> to vector<16x128xf32>
    %52 = arith.maximumf %50, %51 : vector<16x128xf32>
    %c32 = arith.constant 32 : index
    %c0_41 = arith.constant 0 : index
    %53 = vector.load %arg9[%c32, %c0_41] : memref<128x128xf32, #tpu.memory_space<vmem>>, vector<16x128xf32>
    tpu.vector_store %arg9[%c32, %c0_41], %52 {strides = array<i32>} : memref<128x128xf32, #tpu.memory_space<vmem>>, vector<16x128xf32>,
    %54 = vector.extract_strided_slice %41 {offsets = [144, 0], sizes = [16, 128], strides = [1, 1]} : vector<384x128xf32> to vector<16x128xf32>
    %55 = vector.extract_strided_slice %41 {offsets = [168, 0], sizes = [16, 128], strides = [1, 1]} : vector<384x128xf32> to vector<16x128xf32>
    %56 = arith.maximumf %54, %55 : vector<16x128xf32>
    %c48_42 = arith.constant 48 : index
    %c0_43 = arith.constant 0 : index
    %57 = vector.load %arg9[%c48_42, %c0_43] : memref<128x128xf32, #tpu.memory_space<vmem>>, vector<16x128xf32>
    tpu.vector_store %arg9[%c48_42, %c0_43], %56 {strides = array<i32>} : memref<128x128xf32, #tpu.memory_space<vmem>>, vector<16x128xf32>,
    %58 = vector.extract_strided_slice %41 {offsets = [192, 0], sizes = [16, 128], strides = [1, 1]} : vector<384x128xf32> to vector<16x128xf32>
    %59 = vector.extract_strided_slice %41 {offsets = [216, 0], sizes = [16, 128], strides = [1, 1]} : vector<384x128xf32> to vector<16x128xf32>
    %60 = arith.maximumf %58, %59 : vector<16x128xf32>
    %c64_44 = arith.constant 64 : index
    %c0_45 = arith.constant 0 : index
    %61 = vector.load %arg9[%c64_44, %c0_45] : memref<128x128xf32, #tpu.memory_space<vmem>>, vector<16x128xf32>
    tpu.vector_store %arg9[%c64_44, %c0_45], %60 {strides = array<i32>} : memref<128x128xf32, #tpu.memory_space<vmem>>, vector<16x128xf32>,
    %62 = vector.extract_strided_slice %41 {offsets = [240, 0], sizes = [16, 128], strides = [1, 1]} : vector<384x128xf32> to vector<16x128xf32>
    %63 = vector.extract_strided_slice %41 {offsets = [264, 0], sizes = [16, 128], strides = [1, 1]} : vector<384x128xf32> to vector<16x128xf32>
    %64 = arith.maximumf %62, %63 : vector<16x128xf32>
    %c80 = arith.constant 80 : index
    %c0_46 = arith.constant 0 : index
    %65 = vector.load %arg9[%c80, %c0_46] : memref<128x128xf32, #tpu.memory_space<vmem>>, vector<16x128xf32>
    tpu.vector_store %arg9[%c80, %c0_46], %64 {strides = array<i32>} : memref<128x128xf32, #tpu.memory_space<vmem>>, vector<16x128xf32>,
    %66 = vector.extract_strided_slice %41 {offsets = [288, 0], sizes = [16, 128], strides = [1, 1]} : vector<384x128xf32> to vector<16x128xf32>
    %67 = vector.extract_strided_slice %41 {offsets = [312, 0], sizes = [16, 128], strides = [1, 1]} : vector<384x128xf32> to vector<16x128xf32>
    %68 = arith.maximumf %66, %67 : vector<16x128xf32>
    %c96 = arith.constant 96 : index
    %c0_47 = arith.constant 0 : index
    %69 = vector.load %arg9[%c96, %c0_47] : memref<128x128xf32, #tpu.memory_space<vmem>>, vector<16x128xf32>
    tpu.vector_store %arg9[%c96, %c0_47], %68 {strides = array<i32>} : memref<128x128xf32, #tpu.memory_space<vmem>>, vector<16x128xf32>,
    %70 = vector.extract_strided_slice %41 {offsets = [336, 0], sizes = [16, 128], strides = [1, 1]} : vector<384x128xf32> to vector<16x128xf32>
    %71 = vector.extract_strided_slice %41 {offsets = [360, 0], sizes = [16, 128], strides = [1, 1]} : vector<384x128xf32> to vector<16x128xf32>
    %72 = arith.maximumf %70, %71 : vector<16x128xf32>
    %c112 = arith.constant 112 : index
    %c0_48 = arith.constant 0 : index
    %73 = vector.load %arg9[%c112, %c0_48] : memref<128x128xf32, #tpu.memory_space<vmem>>, vector<16x128xf32>
    tpu.vector_store %arg9[%c112, %c0_48], %72 {strides = array<i32>} : memref<128x128xf32, #tpu.memory_space<vmem>>, vector<16x128xf32>,
    %c0_49 = arith.constant 0 : index
    %c0_50 = arith.constant 0 : index
    %74 = tpu.strided_load %arg9[%c0_49, %c0_50] {strides = array<i32: 2, 1>} : memref<128x128xf32, #tpu.memory_space<vmem>>, vector<64x128xf32>
    %c1_51 = arith.constant 1 : index
    %c0_52 = arith.constant 0 : index
    %75 = tpu.strided_load %arg9[%c1_51, %c0_52] {strides = array<i32: 2, 1>} : memref<128x128xf32, #tpu.memory_space<vmem>>, vector<64x128xf32>
    %76 = arith.maximumf %74, %75 : vector<64x128xf32>
    %c0_53 = arith.constant 0 : index
    %c0_54 = arith.constant 0 : index
    %77 = vector.load %arg6[%c0_53, %c0_54] : memref<64x128xf32, #tpu.memory_space<vmem>>, vector<64x128xf32>
    tpu.vector_store %arg6[%c0_53, %c0_54], %76 {strides = array<i32>} : memref<64x128xf32, #tpu.memory_space<vmem>>, vector<64x128xf32>,
    return
  }
}

</mosaic_0001>

<bundles_post_ra>
// kernel: forward.1
= control target key start
LH: loop header
LB: loop body
LE: loop exit
PB: predicated region body
PF: predicated region fallthrough
CT: control target
= control target key end

     0   :  { %v7123_v0 = vmov 0.0|0.0   ;;  %vm7124_vm0 = vmmov 0   ;;  %v7125_v4 = vmov 0.0   ;;  %v7126_v7 = vmov 0   ;;  %s7127_s21 = smov 64   ;;  %s9208_s1 = inlined_call_operand.vmem [shape: f32[32,64], index: 1, kind: input, shape index: {}]   ;;  %s9209_s3 = inlined_call_operand.vmem [shape: f32[456,1], index: 3, kind: input, shape index: {}]   ;;  %s9210_s0 = inlined_call_operand.vmem [shape: f32[456,32], index: 0, kind: input, shape index: {}]   ;;  %s9211_s4 = inlined_call_operand.vmem [shape: bf16[576,256], index: 4, kind: input, shape index: {}]   ;;  %s9212_s2 = inlined_call_operand.vmem [shape: f32[1,64], index: 2, kind: input, shape index: {}]   ;;  %s9213_s5 = inlined_call_operand.vmem [shape: f32[1,256], index: 5, kind: input, shape index: {}]   ;;  %s9214_s6 = inlined_call_operand.vmem [shape: f32[64,128], index: 6, kind: output, shape index: {}]  }
   0x1   :  { %6524 = vmatprep.subr.bf16.mxu0 %v7123_v0  ;;  %v81_v1 = vld [vmem:[%s9208_s1] sm:$0xff]  ;;  %v82_v2 = vld [vmem:[%s9208_s1 + $0x8] sm:$0xff]  ;;  %v83_v3 = vld [vmem:[%s9208_s1 + $0x10] sm:$0xff]  ;;  %6353 = vmatprep.mubr.msk.f32.mxu0 %vm7124_vm0, %v7125_v4  ;;  %vm92_vm1 = vcmask 261120   ;;  %vm1299_vm2 = vcmask 519168   ;;  %vm2212_vm3 = vcmask 1046528  }
   0x2   :  { %v6525_v5 = vpack.c.bf16 %v82_v2, %v81_v1  ;;  %v84_v6 = vld [vmem:[%s9208_s1 + $0x18] sm:$0xff]  ;;  %6791 = vset.pattern.permute.xlu0 %v7126_v7  ;;  %6792 = vset.pattern.permute.xlu1 %v7126_v7  ;;  %v679_v9 = vld [vmem:[%s9209_s3 + $0x40] sm:$0xff]  ;;  %v680_v11 = vld [vmem:[%s9209_s3 + $0x48] sm:$0xff]  ;;  %vm1746_vm4 = vsmask.f32 7424  ;;  %vm1549_vm5 = vcmask 523264  }
   0x3   :  { %v6528_v8 = vpack.c.bf16 %v84_v6, %v83_v3  ;;  %v24_v10 = vld [vmem:[%s9210_s0] sm:$0xff]  ;;  %770 = vperm.xlu0 %6791, %v679_v9   ;;  %v681_v12 = vld [vmem:[%s9209_s3 + $0x50] sm:$0xff]  ;;  %v682_v13 = vld [vmem:[%s9209_s3 + $0x58] sm:$0xff]  ;;  %vm2015_vm6 = vcmask 1048064  }
   0x4   :  { %6526 = vmatpush3.bf16.msra.mxu0 %v6525_v5  ;;  %780 = vperm.xlu1 %6792, %v681_v12   ;;  %v25_v14 = vld [vmem:[%s9210_s0 + $0x8] sm:$0xff]  ;;  %v677_v16 = vld [vmem:[%s9209_s3 + $0x30] sm:$0xff]  ;;  %v678_v18 = vld [vmem:[%s9209_s3 + $0x38] sm:$0xff] }
   0x5   :  { %6527 = vmatprep.subr.bf16.mxu0 %v7123_v0  ;;  %v676_v15 = vld [vmem:[%s9209_s3 + $0x28] sm:$0xff]  ;;  %v26_v17 = vld [vmem:[%s9210_s0 + $0x10] sm:$0xff]  ;;  %v683_v19 = vld [vmem:[%s9209_s3 + $0x60] sm:$0xff] }
   0x6   :  { %v27_v20 = vld [vmem:[%s9210_s0 + $0x18] sm:$0xff]  ;;  %v684_v21 = vld [vmem:[%s9209_s3 + $0x68] sm:$0xff]  ;;  %v685_v22 = vld [vmem:[%s9209_s3 + $0x70] sm:$0xff] }
   0x7   :  { %775 = vperm.xlu0 %6791, %v680_v11   ;;  %v28_v23 = vld [vmem:[%s9210_s0 + $0x20] sm:$0xff]  ;;  %v686_v24 = vld [vmem:[%s9209_s3 + $0x78] sm:$0xff]  ;;  %v29_v26 = vld [vmem:[%s9210_s0 + $0x28] sm:$0xff] }
   0x8   :  { %6529 = vmatpush3.bf16.msra.mxu0 %v6528_v8  ;;  %785 = vperm.xlu1 %6792, %v682_v13   ;;  %v687_v25 = vld [vmem:[%s9209_s3 + $0x80] sm:$0xff]  ;;  %v688_v27 = vld [vmem:[%s9209_s3 + $0x88] sm:$0xff]  ;;  %v689_v28 = vld [vmem:[%s9209_s3 + $0x90] sm:$0xff] }
   0x9   :  { %v30_v29 = vld [vmem:[%s9210_s0 + $0x30] sm:$0xff]  ;;  %v690_v30 = vld [vmem:[%s9209_s3 + $0x98] sm:$0xff]  ;;  %v691_v31 = vld [vmem:[%s9209_s3 + $0xa0] sm:$0xff] }
   0xa   :  { %v31_v32 = vld [vmem:[%s9210_s0 + $0x38] sm:$0xff]  ;;  %v692_v33 = vld [vmem:[%s9209_s3 + $0xa8] sm:$0xff]  ;;  %v693_v34 = vld [vmem:[%s9209_s3 + $0xb0] sm:$0xff] }
   0xb   :  { %6354 = vmatmul.mubr.msk.f32.vlgmr.msra.gmra.mrb[0].mxu0 %vm92_vm1, %v24_v10  ;;  %755 = vperm.xlu0 %6791, %v676_v15   ;;  %v32_v35 = vld [vmem:[%s9210_s0 + $0x40] sm:$0xff]  ;;  %v694_v36 = vld [vmem:[%s9209_s3 + $0xb8] sm:$0xff]  ;;  %v33_v38 = vld [vmem:[%s9210_s0 + $0x48] sm:$0xff] }
   0xc   :  { %6356 = vmatprep.mubr.msk.f32.mxu0 %vm7124_vm0, %v7125_v4  ;;  %760 = vperm.xlu1 %6792, %v677_v16   ;;  %v695_v37 = vld [vmem:[%s9209_s3 + $0xc0] sm:$0xff]  ;;  %v696_v39 = vld [vmem:[%s9209_s3 + $0xc8] sm:$0xff]  ;;  %v697_v40 = vld [vmem:[%s9209_s3 + $0xd0] sm:$0xff] }
   0xd   :  { %v34_v41 = vld [vmem:[%s9210_s0 + $0x50] sm:$0xff]  ;;  %v698_v42 = vld [vmem:[%s9209_s3 + $0xd8] sm:$0xff]  ;;  %v699_v43 = vld [vmem:[%s9209_s3 + $0xe0] sm:$0xff] }
   0xe   :  { %v35_v44 = vld [vmem:[%s9210_s0 + $0x58] sm:$0xff]  ;;  %v700_v45 = vld [vmem:[%s9209_s3 + $0xe8] sm:$0xff]  ;;  %v701_v46 = vld [vmem:[%s9209_s3 + $0xf0] sm:$0xff] }
   0xf   :  { %6357 = vmatmul.mubr.msk.f32.gmra.mrb[2].mxu0 %vm92_vm1, %v25_v14  ;;  %765 = vperm.xlu0 %6791, %v678_v18   ;;  %v36_v47 = vld [vmem:[%s9210_s0 + $0x60] sm:$0xff]  ;;  %v702_v48 = vld [vmem:[%s9209_s3 + $0xf8] sm:$0xff]  ;;  %v37_v50 = vld [vmem:[%s9210_s0 + $0x68] sm:$0xff] }
  0x10   :  { %6359 = vmatprep.mubr.msk.f32.mxu0 %vm7124_vm0, %v7125_v4  ;;  %790 = vperm.xlu1 %6792, %v683_v19   ;;  %v703_v49 = vld [vmem:[%s9209_s3 + $0x100] sm:$0xff]  ;;  %v704_v51 = vld [vmem:[%s9209_s3 + $0x108] sm:$0xff]  ;;  %v705_v52 = vld [vmem:[%s9209_s3 + $0x110] sm:$0xff] }
  0x11   :  { %v38_v53 = vld [vmem:[%s9210_s0 + $0x70] sm:$0xff]  ;;  %v706_v54 = vld [vmem:[%s9209_s3 + $0x118] sm:$0xff]  ;;  %v40_v56 = vld [vmem:[%s9210_s0 + $0x80] sm:$0xff] }
  0x12   :  { %v39_v55 = vld [vmem:[%s9210_s0 + $0x78] sm:$0xff]  ;;  %v41_v57 = vld [vmem:[%s9210_s0 + $0x88] sm:$0xff]  ;;  %v42_v58 = vld [vmem:[%s9210_s0 + $0x90] sm:$0xff] }
  0x13   :  { %6360 = vmatmul.mubr.msk.f32.gmra.mrb[4].mxu0 %vm92_vm1, %v26_v17  ;;  %795 = vperm.xlu0 %6791, %v684_v21   ;;  %v43_v59 = vld [vmem:[%s9210_s0 + $0x98] sm:$0xff]  ;;  %v44_v60 = vld [vmem:[%s9210_s0 + $0xa0] sm:$0xff]  ;;  %v45_v61 = vld [vmem:[%s9210_s0 + $0xa8] sm:$0xff] }
  0x14   :  { %6362 = vmatprep.mubr.msk.f32.mxu0 %vm7124_vm0, %v7125_v4  ;;  %800 = vperm.xlu1 %6792, %v685_v22   ;;  %v46_v62 = vld [vmem:[%s9210_s0 + $0xb0] sm:$0xff]  ;;  %v47_v63 = vld [vmem:[%s9210_s0 + $0xb8] sm:$0xff]  ;;  %v48_v0 = vld [vmem:[%s9210_s0 + $0xc0] sm:$0xff] }
  0x15   :  { %v49_v1 = vld [vmem:[%s9210_s0 + $0xc8] sm:$0xff]  ;;  %v50_v2 = vld [vmem:[%s9210_s0 + $0xd0] sm:$0xff]  ;;  %v51_v3 = vld [vmem:[%s9210_s0 + $0xd8] sm:$0xff] }
  0x16   :  { %v52_v5 = vld [vmem:[%s9210_s0 + $0xe0] sm:$0xff]  ;;  %v53_v6 = vld [vmem:[%s9210_s0 + $0xe8] sm:$0xff]  ;;  %v54_v8 = vld [vmem:[%s9210_s0 + $0xf0] sm:$0xff] }
  0x17   :  { %6363 = vmatmul.mubr.msk.f32.gmra.mrb[6].mxu0 %vm92_vm1, %v27_v20  ;;  %805 = vperm.xlu0 %6791, %v686_v24   ;;  %v55_v9 = vld [vmem:[%s9210_s0 + $0xf8] sm:$0xff]  ;;  %v56_v10 = vld [vmem:[%s9210_s0 + $0x100] sm:$0xff]  ;;  %v57_v11 = vld [vmem:[%s9210_s0 + $0x108] sm:$0xff] }
  0x18   :  { %6365 = vmatprep.mubr.msk.f32.mxu0 %vm7124_vm0, %v7125_v4  ;;  %810 = vperm.xlu1 %6792, %v687_v25   ;;  %v58_v12 = vld [vmem:[%s9210_s0 + $0x110] sm:$0xff]  ;;  %v59_v13 = vld [vmem:[%s9210_s0 + $0x118] sm:$0xff]  ;;  %v60_v14 = vld [vmem:[%s9210_s0 + $0x120] sm:$0xff] }
  0x19   :  { %v61_v15 = vld [vmem:[%s9210_s0 + $0x128] sm:$0xff]  ;;  %v62_v16 = vld [vmem:[%s9210_s0 + $0x130] sm:$0xff]  ;;  %v63_v17 = vld [vmem:[%s9210_s0 + $0x138] sm:$0xff] }
  0x1a   :  { %v64_v18 = vld [vmem:[%s9210_s0 + $0x140] sm:$0xff]  ;;  %v65_v19 = vld [vmem:[%s9210_s0 + $0x148] sm:$0xff]  ;;  %v66_v20 = vld [vmem:[%s9210_s0 + $0x150] sm:$0xff] }
  0x1b   :  { %6366 = vmatmul.mubr.msk.f32.gmra.mrb[8].mxu0 %vm92_vm1, %v28_v23  ;;  %815 = vperm.xlu0 %6791, %v688_v27   ;;  %v67_v21 = vld [vmem:[%s9210_s0 + $0x158] sm:$0xff]  ;;  %v68_v22 = vld [vmem:[%s9210_s0 + $0x160] sm:$0xff]  ;;  %v69_v23 = vld [vmem:[%s9210_s0 + $0x168] sm:$0xff] }
  0x1c   :  { %6368 = vmatprep.mubr.msk.f32.mxu0 %vm7124_vm0, %v7125_v4  ;;  %820 = vperm.xlu1 %6792, %v689_v28   ;;  %v70_v24 = vld [vmem:[%s9210_s0 + $0x170] sm:$0xff]  ;;  %v71_v25 = vld [vmem:[%s9210_s0 + $0x178] sm:$0xff]  ;;  %v73_v27 = vld [vmem:[%s9210_s0 + $0x188] sm:$0xff] }
  0x1d   :  { %v74_v28 = vld [vmem:[%s9210_s0 + $0x190] sm:$0xff] }
  0x1f   :  { %6369 = vmatmul.mubr.msk.f32.gmra.mrb[10].mxu0 %vm92_vm1, %v29_v26  ;;  %825 = vperm.xlu0 %6791, %v690_v30   ;;  %v72_v26 = vld [vmem:[%s9210_s0 + $0x180] sm:$0xff] }
  0x20   :  { %6371 = vmatprep.mubr.msk.f32.mxu0 %vm7124_vm0, %v7125_v4  ;;  %830 = vperm.xlu1 %6792, %v691_v31   ;;  %v76_v30 = vld [vmem:[%s9210_s0 + $0x1a0] sm:$0xff]  ;;  %v77_v31 = vld [vmem:[%s9210_s0 + $0x1a8] sm:$0xff] }
  0x23   :  { %6372 = vmatmul.mubr.msk.f32.gmra.mrb[12].mxu0 %vm92_vm1, %v30_v29  ;;  %835 = vperm.xlu0 %6791, %v692_v33   ;;  %v75_v29 = vld [vmem:[%s9210_s0 + $0x198] sm:$0xff]  ;;  %v4409_v33 = vld [vmem:[%s9211_s4 + $0x108] sm:$0xff] }
  0x24   :  { %6374 = vmatprep.mubr.msk.f32.mxu0 %vm7124_vm0, %v7125_v4  ;;  %840 = vperm.xlu1 %6792, %v693_v34   ;;  %v6813_v34 = vld [vmem:[%s9211_s4 + $0x104] ss:$8 sps:$4 sm:$0xff]  }
  0x25   :  { %6530 = vmatprep.subr.bf16.mxu1 %v6813_v34 }
  0x27   :  { %6375 = vmatmul.mubr.msk.f32.gmra.mrb[14].mxu0 %vm92_vm1, %v31_v32  ;;  %845 = vperm.xlu0 %6791, %v694_v36   ;;  %v4408_v32 = vld [vmem:[%s9211_s4 + $0x100] sm:$0xff] }
  0x28   :  { %6377 = vmatprep.mubr.msk.f32.mxu0 %vm7124_vm0, %v7125_v4  ;;  %850 = vperm.xlu1 %6792, %v695_v37  }
  0x2b   :  { %6378 = vmatmul.mubr.msk.f32.gmra.mrb[16].mxu0 %vm92_vm1, %v32_v35  ;;  %855 = vperm.xlu0 %6791, %v696_v39   ;;  %v7602_v35 = vcombine.low %v4408_v32, %v4409_v33  ;;  %v4410_v39 = vld [vmem:[%s9211_s4 + $0x110] sm:$0xff] }
  0x2c   :  { %6380 = vmatprep.mubr.msk.f32.mxu0 %vm7124_vm0, %v7125_v4  ;;  %860 = vperm.xlu1 %6792, %v697_v40   ;;  %v4411_v40 = vld [vmem:[%s9211_s4 + $0x118] sm:$0xff] }
  0x2d   :  { %6546 = vmatpush1.bf16.msra.mxu1 %v7602_v35 }
  0x2f   :  { %6381 = vmatmul.mubr.msk.f32.gmra.mrb[18].mxu0 %vm92_vm1, %v33_v38  ;;  %865 = vperm.xlu0 %6791, %v698_v42   ;;  %v78_v38 = vld [vmem:[%s9210_s0 + $0x1b0] sm:$0xff]  ;;  %v7622_v42 = vcombine.low %v4410_v39, %v4411_v40 }
  0x30   :  { %6383 = vmatprep.mubr.msk.f32.mxu0 %vm7124_vm0, %v7125_v4  ;;  %870 = vperm.xlu1 %6792, %v699_v43   ;;  %v6847_v40 = vld [vmem:[%s9211_s4 + $0x190] ss:$8 sps:$4 sm:$0xff]  }
  0x33   :  { %6384 = vmatmul.mubr.msk.f32.gmra.mrb[20].mxu0 %vm92_vm1, %v34_v41  ;;  %875 = vperm.xlu0 %6791, %v700_v45   ;;  %v6815_v41 = vld [vmem:[%s9211_s4 + $0x114] ss:$8 sps:$4 sm:$0xff]   ;;  %v4412_v45 = vld [vmem:[%s9211_s4 + $0x120] sm:$0xff] }
  0x34   :  { %6386 = vmatprep.mubr.msk.f32.mxu0 %vm7124_vm0, %v7125_v4  ;;  %880 = vperm.xlu1 %6792, %v701_v46   ;;  %v4413_v46 = vld [vmem:[%s9211_s4 + $0x128] sm:$0xff] }
  0x35   :  { %6531 = vmatprep.subr.bf16.mxu1 %v6815_v41  ;;  %v4428_v41 = vld [vmem:[%s9211_s4 + $0x1a0] sm:$0xff] }
  0x36   :  { %6547 = vmatpush1.bf16.msra.mxu1 %v7622_v42 }
  0x37   :  { %6387 = vmatmul.mubr.msk.f32.gmra.mrb[22].mxu0 %vm92_vm1, %v35_v44  ;;  %885 = vperm.xlu0 %6791, %v702_v48   ;;  %v7639_v48 = vcombine.low %v4412_v45, %v4413_v46  ;;  %v4429_v45 = vld [vmem:[%s9211_s4 + $0x1a8] sm:$0xff] }
  0x38   :  { %6389 = vmatprep.mubr.msk.f32.mxu0 %vm7124_vm0, %v7125_v4  ;;  %890 = vperm.xlu1 %6792, %v703_v49   ;;  %v6848_v46 = vld [vmem:[%s9211_s4 + $0x1a4] ss:$8 sps:$4 sm:$0xff]  }
  0x3b   :  { %6390 = vmatmul.mubr.msk.f32.gmra.mrb[24].mxu0 %vm92_vm1, %v36_v47  ;;  %895 = vperm.xlu0 %6791, %v704_v51   ;;  %v6819_v47 = vld [vmem:[%s9211_s4 + $0x124] ss:$8 sps:$4 sm:$0xff]   ;;  %v4414_v51 = vld [vmem:[%s9211_s4 + $0x130] sm:$0xff] }
  0x3c   :  { %6392 = vmatprep.mubr.msk.f32.mxu0 %vm7124_vm0, %v7125_v4  ;;  %900 = vperm.xlu1 %6792, %v705_v52   ;;  %v4415_v52 = vld [vmem:[%s9211_s4 + $0x138] sm:$0xff] }
  0x3d   :  { %6532 = vmatprep.subr.bf16.mxu1 %v6819_v47 }
  0x3e   :  { %6548 = vmatpush1.bf16.msra.mxu1 %v7639_v48 }
  0x3f   :  { %6393 = vmatmul.mubr.msk.f32.gmra.mrb[26].mxu0 %vm92_vm1, %v37_v50  ;;  %905 = vperm.xlu0 %6791, %v706_v54   ;;  %v7653_v54 = vcombine.low %v4414_v51, %v4415_v52 }
  0x40   :  { %6395 = vmatprep.mubr.msk.f32.mxu0 %vm7124_vm0, %v7125_v4 }
  0x43   :  { %6396 = vmatmul.mubr.msk.f32.gmra.mrb[28].mxu0 %vm92_vm1, %v38_v53  ;;  %v6821_v53 = vld [vmem:[%s9211_s4 + $0x134] ss:$8 sps:$4 sm:$0xff]  }
  0x44   :  { %6398 = vmatprep.mubr.msk.f32.mxu0 %vm7124_vm0, %v7125_v4  ;;  %6533 = vmatprep.subr.bf16.mxu1 %v6821_v53 }
  0x45   :  { %6549 = vmatpush1.bf16.msra.mxu1 %v7653_v54 }
  0x47   :  { %6399 = vmatmul.mubr.msk.f32.gmra.mrb[30].mxu0 %vm92_vm1, %v39_v55 }
  0x48   :  { %6401 = vmatprep.mubr.msk.f32.mxu0 %vm7124_vm0, %v7125_v4 }
  0x4b   :  { %6402 = vmatmul.mubr.msk.f32.gmra.mrb[32].mxu0 %vm92_vm1, %v40_v56 }
  0x4c   :  { %6404 = vmatprep.mubr.msk.f32.mxu0 %vm7124_vm0, %v7125_v4 }
  0x4f   :  { %6405 = vmatmul.mubr.msk.f32.gmra.mrb[34].mxu0 %vm92_vm1, %v41_v57 }
  0x50   :  { %6407 = vmatprep.mubr.msk.f32.mxu0 %vm7124_vm0, %v7125_v4 }
  0x53   :  { %6408 = vmatmul.mubr.msk.f32.gmra.mrb[36].mxu0 %vm92_vm1, %v42_v58  ;;  %v6824_v58 = vld [vmem:[%s9211_s4 + $0x144] ss:$8 sps:$4 sm:$0xff]  }
  0x54   :  { %6410 = vmatprep.mubr.msk.f32.mxu0 %vm7124_vm0, %v7125_v4  ;;  %6534 = vmatprep.subr.bf16.mxu1 %v6824_v58 }
  0x57   :  { %6411 = vmatmul.mubr.msk.f32.gmra.mrb[38].mxu0 %vm92_vm1, %v43_v59  ;;  %v6826_v59 = vld [vmem:[%s9211_s4 + $0x140] ss:$8 sps:$4 sm:$0xff]  }
  0x58   :  { %6413 = vmatprep.mubr.msk.f32.mxu0 %vm7124_vm0, %v7125_v4  ;;  %6550 = vmatpush1.bf16.msra.mxu1 %v6826_v59 }
  0x5b   :  { %6414 = vmatmul.mubr.msk.f32.gmra.mrb[40].mxu0 %vm92_vm1, %v44_v60 }
  0x5c   :  { %6416 = vmatprep.mubr.msk.f32.mxu0 %vm7124_vm0, %v7125_v4 }
  0x5f   :  { %6417 = vmatmul.mubr.msk.f32.gmra.mrb[42].mxu0 %vm92_vm1, %v45_v61 }
  0x60   :  { %6419 = vmatprep.mubr.msk.f32.mxu0 %vm7124_vm0, %v7125_v4 }
  0x63   :  { %6420 = vmatmul.mubr.msk.f32.gmra.mrb[44].mxu0 %vm92_vm1, %v46_v62 }
  0x64   :  { %6422 = vmatprep.mubr.msk.f32.mxu0 %vm7124_vm0, %v7125_v4 }
  0x67   :  { %6423 = vmatmul.mubr.msk.f32.gmra.mrb[46].mxu0 %vm92_vm1, %v47_v63 }
  0x68   :  { %6425 = vmatprep.mubr.msk.f32.mxu0 %vm7124_vm0, %v7125_v4 }
  0x6b   :  { %6426 = vmatmul.mubr.msk.f32.gmra.mrb[48].mxu0 %vm92_vm1, %v48_v0  ;;  %v7675_v0 = vld [vmem:[%s9212_s2] ss:$0 sm:$0xff] }
  0x6c   :  { %6428 = vmatprep.mubr.msk.f32.mxu0 %vm7124_vm0, %v7125_v4 }
  0x6f   :  { %6429 = vmatmul.mubr.msk.f32.gmra.mrb[50].mxu0 %vm92_vm1, %v49_v1  ;;  %v6828_v1 = vld [vmem:[%s9211_s4 + $0x154] ss:$8 sps:$4 sm:$0xff]  }
  0x70   :  { %6431 = vmatprep.mubr.msk.f32.mxu0 %vm7124_vm0, %v7125_v4  ;;  %6535 = vmatprep.subr.bf16.mxu1 %v6828_v1 }
  0x73   :  { %6432 = vmatmul.mubr.msk.f32.gmra.mrb[52].mxu0 %vm92_vm1, %v50_v2  ;;  %v6831_v2 = vld [vmem:[%s9211_s4 + $0x150] ss:$8 sps:$4 sm:$0xff]  }
  0x74   :  { %6434 = vmatprep.mubr.msk.f32.mxu0 %vm7124_vm0, %v7125_v4  ;;  %6551 = vmatpush1.bf16.msra.mxu1 %v6831_v2 }
  0x77   :  { %6435 = vmatmul.mubr.msk.f32.gmra.mrb[54].mxu0 %vm92_vm1, %v51_v3 }
  0x78   :  { %6437 = vmatprep.mubr.msk.f32.mxu0 %vm7124_vm0, %v7125_v4 }
  0x7b   :  { %6438 = vmatmul.mubr.msk.f32.gmra.mrb[56].mxu0 %vm92_vm1, %v52_v5 }
  0x7c   :  { %6440 = vmatprep.mubr.msk.f32.mxu0 %vm7124_vm0, %v7125_v4 }
  0x7f   :  { %6441 = vmatmul.mubr.msk.f32.gmra.mrb[58].mxu0 %vm92_vm1, %v53_v6 }
  0x80   :  { %6443 = vmatprep.mubr.msk.f32.mxu0 %vm7124_vm0, %v7125_v4 }
  0x82   :  { %v7655_v55 = vpop.permute.xlu0 %770 }
  0x83   :  { %6444 = vmatmul.mubr.msk.f32.gmra.mrb[60].mxu0 %vm92_vm1, %v54_v8  ;;  %v7666_v60 = vpop.permute.xlu1 %780 }
  0x84   :  { %6446 = vmatprep.mubr.msk.f32.mxu0 %vm7124_vm0, %v7125_v4 }
  0x86   :  { %v7670_v63 = vpop.permute.xlu0 %775 }
  0x87   :  { %6447 = vmatmul.mubr.msk.f32.gmra.mrb[62].mxu0 %vm92_vm1, %v55_v9  ;;  %v7684_v8 = vpop.permute.xlu1 %785  ;;  %v6832_v9 = vld [vmem:[%s9211_s4 + $0x164] ss:$8 sps:$4 sm:$0xff]  }
  0x88   :  { %6449 = vmatprep.mubr.msk.f32.mxu0 %vm7124_vm0, %v7125_v4  ;;  %6536 = vmatprep.subr.bf16.mxu1 %v6832_v9 }
  0x8b   :  { %6450 = vmatmul.mubr.msk.f32.gmra.mrb[64].mxu0 %vm92_vm1, %v56_v10 }
  0x8c   :  { %6452 = vmatprep.mubr.msk.f32.mxu0 %vm7124_vm0, %v7125_v4 }
  0x8f   :  { %6453 = vmatmul.mubr.msk.f32.gmra.mrb[66].mxu0 %vm92_vm1, %v57_v11  ;;  %v6834_v11 = vld [vmem:[%s9211_s4 + $0x160] ss:$8 sps:$4 sm:$0xff]  }
  0x90   :  { %6455 = vmatprep.mubr.msk.f32.mxu0 %vm7124_vm0, %v7125_v4  ;;  %6552 = vmatpush1.bf16.msra.mxu1 %v6834_v11  ;;  %v4432_v11 = vld [vmem:[%s9211_s4 + $0x1c0] sm:$0xff] }
  0x93   :  { %6456 = vmatmul.mubr.msk.f32.gmra.mrb[68].mxu0 %vm92_vm1, %v58_v12  ;;  %v756_v12 = vpop.permute.xlu0 %755 }
  0x94   :  { %6458 = vmatprep.mubr.msk.f32.mxu0 %vm7124_vm0, %v7125_v4 }
  0x97   :  { %6459 = vmatmul.mubr.msk.f32.gmra.mrb[70].mxu0 %vm92_vm1, %v59_v13 }
  0x98   :  { %6461 = vmatprep.mubr.msk.f32.mxu0 %vm7124_vm0, %v7125_v4 }
  0x9b   :  { %6462 = vmatmul.mubr.msk.f32.gmra.mrb[72].mxu0 %vm92_vm1, %v60_v14 }
  0x9c   :  { %6464 = vmatprep.mubr.msk.f32.mxu0 %vm7124_vm0, %v7125_v4 }
  0x9f   :  { %6465 = vmatmul.mubr.msk.f32.gmra.mrb[74].mxu0 %vm92_vm1, %v61_v15 }
  0xa0   :  { %6467 = vmatprep.mubr.msk.f32.mxu0 %vm7124_vm0, %v7125_v4 }
  0xa3   :  { %6468 = vmatmul.mubr.msk.f32.gmra.mrb[76].mxu0 %vm92_vm1, %v62_v16 }
  0xa4   :  { %6470 = vmatprep.mubr.msk.f32.mxu0 %vm7124_vm0, %v7125_v4 }
  0xa7   :  { %6471 = vmatmul.mubr.msk.f32.gmra.mrb[78].mxu0 %vm92_vm1, %v63_v17  ;;  %v6836_v17 = vld [vmem:[%s9211_s4 + $0x174] ss:$8 sps:$4 sm:$0xff]  }
  0xa8   :  { %6473 = vmatprep.mubr.msk.f32.mxu0 %vm7124_vm0, %v7125_v4  ;;  %6537 = vmatprep.subr.bf16.mxu1 %v6836_v17 }
  0xab   :  { %6474 = vmatmul.mubr.msk.f32.gmra.mrb[80].mxu0 %vm92_vm1, %v64_v18 }
  0xac   :  { %6476 = vmatprep.mubr.msk.f32.mxu0 %vm7124_vm0, %v7125_v4 }
  0xaf   :  { %6477 = vmatmul.mubr.msk.f32.gmra.mrb[82].mxu0 %vm92_vm1, %v65_v19 }
  0xb0   :  { %6479 = vmatprep.mubr.msk.f32.mxu0 %vm7124_vm0, %v7125_v4 }
  0xb3   :  { %6480 = vmatmul.mubr.msk.f32.gmra.mrb[84].mxu0 %vm92_vm1, %v66_v20  ;;  %v6839_v20 = vld [vmem:[%s9211_s4 + $0x170] ss:$8 sps:$4 sm:$0xff]  }
  0xb4   :  { %6482 = vmatprep.mubr.msk.f32.mxu0 %vm7124_vm0, %v7125_v4  ;;  %6553 = vmatpush1.bf16.msra.mxu1 %v6839_v20 }
  0xb7   :  { %6483 = vmatmul.mubr.msk.f32.gmra.mrb[86].mxu0 %vm92_vm1, %v67_v21  ;;  %v761_v21 = vpop.permute.xlu1 %760 }
  0xb8   :  { %6485 = vmatprep.mubr.msk.f32.mxu0 %vm7124_vm0, %v7125_v4 }
  0xbb   :  { %6486 = vmatmul.mubr.msk.f32.gmra.mrb[88].mxu0 %vm92_vm1, %v68_v22 }
  0xbc   :  { %6488 = vmatprep.mubr.msk.f32.mxu0 %vm7124_vm0, %v7125_v4 }
  0xbf   :  { %6489 = vmatmul.mubr.msk.f32.gmra.mrb[90].mxu0 %vm92_vm1, %v69_v23 }
  0xc0   :  { %6491 = vmatprep.mubr.msk.f32.mxu0 %vm7124_vm0, %v7125_v4 }
  0xc3   :  { %6492 = vmatmul.mubr.msk.f32.gmra.mrb[92].mxu0 %vm92_vm1, %v70_v24 }
  0xc4   :  { %6494 = vmatprep.mubr.msk.f32.mxu0 %vm7124_vm0, %v7125_v4 }
  0xc7   :  { %6495 = vmatmul.mubr.msk.f32.gmra.mrb[94].mxu0 %vm92_vm1, %v71_v25 }
  0xc8   :  { %6497 = vmatprep.mubr.msk.f32.mxu0 %vm7124_vm0, %v7125_v4 }
  0xcb   :  { %6498 = vmatmul.mubr.msk.f32.gmra.mrb[96].mxu0 %vm92_vm1, %v72_v26  ;;  %v6841_v26 = vld [vmem:[%s9211_s4 + $0x184] ss:$8 sps:$4 sm:$0xff]  }
  0xcc   :  { %6500 = vmatprep.mubr.msk.f32.mxu0 %vm7124_vm0, %v7125_v4  ;;  %6538 = vmatprep.subr.bf16.mxu1 %v6841_v26 }
  0xcf   :  { %6501 = vmatmul.mubr.msk.f32.gmra.mrb[98].mxu0 %vm92_vm1, %v73_v27 }
  0xd0   :  { %6503 = vmatprep.mubr.msk.f32.mxu0 %vm7124_vm0, %v7125_v4 }
  0xd3   :  { %6504 = vmatmul.mubr.msk.f32.gmra.mrb[100].mxu0 %vm92_vm1, %v74_v28 }
  0xd4   :  { %6506 = vmatprep.mubr.msk.f32.mxu0 %vm7124_vm0, %v7125_v4 }
  0xd7   :  { %6507 = vmatmul.mubr.msk.f32.gmra.mrb[102].mxu0 %vm92_vm1, %v75_v29  ;;  %v6843_v29 = vld [vmem:[%s9211_s4 + $0x180] ss:$8 sps:$4 sm:$0xff]  }
  0xd8   :  { %6509 = vmatprep.mubr.msk.f32.mxu0 %vm7124_vm0, %v7125_v4  ;;  %6554 = vmatpush1.bf16.msra.mxu1 %v6843_v29  ;;  %v6860_v29 = vld [vmem:[%s9211_s4 + $0x1d0] ss:$8 sps:$4 sm:$0xff]  }
  0xdb   :  { %6510 = vmatmul.mubr.msk.f32.gmra.mrb[104].mxu0 %vm92_vm1, %v76_v30  ;;  %v6844_v30 = vld [vmem:[%s9211_s4 + $0x194] ss:$8 sps:$4 sm:$0xff]  }
  0xdc   :  { %6512 = vmatprep.mubr.msk.f32.mxu0 %vm7124_vm0, %v7125_v4  ;;  %6539 = vmatprep.subr.bf16.mxu1 %v6844_v30 }
  0xdd   :  { %6555 = vmatpush1.bf16.msra.mxu1 %v6847_v40 }
  0xde   :  { %v7604_v36 = vpop.f32.mrb[0].mxu0  ;;  %6540 = vmatprep.subr.bf16.mxu1 %v6848_v46 }
  0xdf   :  { %v6355_v37 = vpop.f32.mrb[1].mxu0  ;;  %6513 = vmatmul.mubr.msk.f32.gmra.mrb[106].mxu0 %vm92_vm1, %v77_v31  ;;  %v766_v31 = vpop.permute.xlu0 %765 }
  0xe0   :  { %6515 = vmatprep.mubr.msk.f32.mxu0 %vm7124_vm0, %v7125_v4 }
  0xe2   :  { %v7624_v43 = vpop.f32.mrb[2].mxu0 }
  0xe3   :  { %v6358_v44 = vpop.f32.mrb[3].mxu0  ;;  %6516 = vmatmul.mubr.msk.f32.gmra.mrb[108].mxu0 %vm92_vm1, %v78_v38 }
  0xe4   :  { %6518 = vmatprep.mubr.msk.f32.mxu0 %vm7124_vm0, %v7125_v4 }
  0xe6   :  { %v7641_v49 = vpop.f32.mrb[4].mxu0 }
  0xe7   :  { %v6361_v50 = vpop.f32.mrb[5].mxu0 }
  0xea   :  { %v7657_v56 = vpop.f32.mrb[6].mxu0 }
  0xeb   :  { %v6364_v57 = vpop.f32.mrb[7].mxu0 }
  0xec   :  { %v7727_v57 = vcombine.low %v4428_v41, %v4429_v45 }
  0xee   :  { %v7668_v61 = vpop.f32.mrb[8].mxu0  ;;  %6556 = vmatpush1.bf16.msra.mxu1 %v7727_v57 }
  0xef   :  { %v6367_v62 = vpop.f32.mrb[9].mxu0 }
  0xf2   :  { %v355_v3 = vpop.f32.mrb[10].mxu0 }
  0xf3   :  { %v356_v5 = vadd.f32 %v7675_v0, %v355_v3  ;;  %v6370_v6 = vpop.f32.mrb[11].mxu0  ;;  %v6854_v3 = vld [vmem:[%s9211_s4 + $0x1b0] ss:$8 sps:$4 sm:$0xff]  }
  0xf5   :  { %v619_v10 = vmax.f32 %v356_v5, 0.0 }
  0xf6   :  { %v360_v13 = vpop.f32.mrb[12].mxu0 }
  0xf7   :  { %v1018_v14 = vmul.f32 %v756_v12, %v619_v10  ;;  %v361_v15 = vadd.f32 %v7675_v0, %v360_v13  ;;  %v6373_v16 = vpop.f32.mrb[13].mxu0 }
  0xf9   :  { %v6232_v18 = vpack.c.bf16 %v1018_v14, %v1018_v14  ;;  %v620_v19 = vmax.f32 %v361_v15, 0.0  ;;  %v4433_v15 = vld [vmem:[%s9211_s4 + $0x1c8] sm:$0xff] }
  0xfa   :  { %v365_v22 = vpop.f32.mrb[14].mxu0 }
  0xfb   :  { %1305 = vst.msk [vmem:[#allocation2 + $0x14] sm:$0xf] %vm1299_vm2, %v6232_v18  ;;  %v1019_v23 = vmul.f32 %v761_v21, %v620_v19  ;;  %v366_v24 = vadd.f32 %v7675_v0, %v365_v22  ;;  %v6376_v25 = vpop.f32.mrb[15].mxu0 }
  0xfd   :  { %v6233_v27 = vpack.c.bf16 %v1019_v23, %v1019_v23  ;;  %v621_v28 = vmax.f32 %v366_v24, 0.0 }
  0xfe   :  { %v370_v32 = vpop.f32.mrb[16].mxu0 }
  0xff   :  { %1306 = vst.msk [vmem:[#allocation2 + $0x18] sm:$0xf] %vm1299_vm2, %v6233_v27  ;;  %v1020_v33 = vmul.f32 %v766_v31, %v621_v28  ;;  %v371_v34 = vadd.f32 %v7675_v0, %v370_v32  ;;  %v6379_v37 = vpop.f32.mrb[17].mxu0  ;;  %v6858_v28 = vld [vmem:[%s9211_s4 + $0x1d4] ss:$8 sps:$4 sm:$0xff]  }
 0x101   :  { %v6234_v38 = vpack.c.bf16 %v1020_v33, %v1020_v33  ;;  %v622_v39 = vmax.f32 %v371_v34, 0.0  ;;  %v791_v33 = vpop.permute.xlu1 %790 }
 0x102   :  { %v375_v44 = vpop.f32.mrb[18].mxu0 }
 0x103   :  { %1307 = vst.msk [vmem:[#allocation2 + $0x1c] sm:$0xf] %vm1299_vm2, %v6234_v38  ;;  %v1021_v47 = vmul.f32 %v7655_v55, %v622_v39  ;;  %v376_v50 = vadd.f32 %v7675_v0, %v375_v44  ;;  %v6382_v51 = vpop.f32.mrb[19].mxu0  ;;  %v6852_v55 = vld [vmem:[%s9211_s4 + $0x1b4] ss:$8 sps:$4 sm:$0xff]  }
 0x104   :  { %6541 = vmatprep.subr.bf16.mxu1 %v6852_v55 }
 0x105   :  { %v6235_v52 = vpack.c.bf16 %v1021_v47, %v1021_v47  ;;  %v623_v53 = vmax.f32 %v376_v50, 0.0  ;;  %6557 = vmatpush1.bf16.msra.mxu1 %v6854_v3 }
 0x106   :  { %v380_v58 = vpop.f32.mrb[20].mxu0  ;;  %v6850_v2 = vld [vmem:[#allocation2 + $0x14] sm:$0xff]  }
 0x107   :  { %1308 = vst.msk [vmem:[#allocation2 + $0x20] sm:$0xf] %vm1299_vm2, %v6235_v52  ;;  %v1022_v59 = vmul.f32 %v7670_v63, %v623_v53  ;;  %v381_v62 = vadd.f32 %v7675_v0, %v380_v58  ;;  %v6385_v1 = vpop.f32.mrb[21].mxu0  ;;  %v6855_v63 = vld [vmem:[%s9211_s4 + $0x1c4] ss:$8 sps:$4 sm:$0xff]   ;;  %v2754_v10 = vshll.u32 %v6850_v2, 16 }
 0x108   :  { %v7751_v16 = vld [vmem:[#allocation2 + $0x14] sm:$0xff]   ;;  %6542 = vmatprep.subr.bf16.mxu1 %v6855_v63  ;;  %v2758_v31 = vshrl.u32 %v6850_v2, 16  ;;  %v6862_v53 = vld [vmem:[%s9211_s4 + $0x1e4] ss:$8 sps:$4 sm:$0xff]   ;;  %v6864_v58 = vld [vmem:[%s9211_s4 + $0x1e0] ss:$8 sps:$4 sm:$0xff]  }
 0x109   :  { %v6236_v5 = vpack.c.bf16 %v1022_v59, %v1022_v59  ;;  %v624_v6 = vmax.f32 %v381_v62, 0.0  ;;  %v7755_v21 = vrot.slane %v2754_v10, 1  ;;  %v3163_v26 = vrot.slane %v7751_v16, 1  ;;  %v796_v59 = vpop.permute.xlu0 %795  ;;  %v3987_v55 = vld [vmem:[#allocation2 + $0x18] sm:$0xe] }
 0x10a   :  { %v385_v9 = vpop.f32.mrb[22].mxu0  ;;  %v3988_v47 = vld [vmem:[#allocation2 + $0x1c] sm:$0xf] }
 0x10b   :  { %1309 = vst.msk [vmem:[#allocation2 + $0x24] sm:$0xf] %vm1299_vm2, %v6236_v5  ;;  %v1023_v12 = vmul.f32 %v7666_v60, %v624_v6  ;;  %v386_v13 = vadd.f32 %v7675_v0, %v385_v9  ;;  %v6388_v14 = vpop.f32.mrb[23].mxu0  ;;  %v7757_v60 = vcombine.low %v4432_v11, %v4433_v15  ;;  %v2760_v44 = vor.u32 %v2758_v31, %v7755_v21  ;;  %v6865_v11 = vld [vmem:[%s9211_s4 + $0x1f4] ss:$8 sps:$4 sm:$0xff]  }
 0x10d   :  { %v6237_v17 = vpack.c.bf16 %v1023_v12, %v1023_v12  ;;  %v625_v18 = vmax.f32 %v386_v13, 0.0  ;;  %6558 = vmatpush1.bf16.msra.mxu1 %v7757_v60  ;;  %v6867_v12 = vld [vmem:[%s9211_s4 + $0x1f0] ss:$8 sps:$4 sm:$0xff]  }
 0x10e   :  { %v390_v19 = vpop.f32.mrb[24].mxu0  ;;  %v7753_v20 = vld [vmem:[#allocation2 + $0x1c] sm:$0xff]   ;;  %6543 = vmatprep.subr.bf16.mxu1 %v6858_v28 }
 0x10f   :  { %1310 = vst.msk [vmem:[#allocation2 + $0x28] sm:$0xf] %vm1299_vm2, %v6237_v17  ;;  %v1024_v22 = vmul.f32 %v7684_v8, %v625_v18  ;;  %v391_v23 = vadd.f32 %v7675_v0, %v390_v19  ;;  %v6391_v24 = vpop.f32.mrb[25].mxu0  ;;  %v7762_v25 = vld [vmem:[#allocation2 + $0x1c] sm:$0xff]   ;;  %v3165_v27 = vrot.slane %v7753_v20, 1  ;;  %v801_v17 = vpop.permute.xlu1 %800  ;;  %v6106_v18 = vcombine.low %v3987_v55, %v3988_v47 }
 0x110   :  { %v2762_v32 = vshll.u32 %v7762_v25, 16  ;;  %v3989_v13 = vld [vmem:[#allocation2 + $0x20] sm:$0xf]  ;;  %v2766_v24 = vshrl.u32 %v7762_v25, 16 }
 0x111   :  { %v6238_v8 = vpack.c.bf16 %v1024_v22, %v1024_v22  ;;  %v626_v30 = vmax.f32 %v391_v23, 0.0  ;;  %v3166_v37 = vsel %vm2212_vm3, %v3163_v26, %v3165_v27  ;;  %6559 = vmatpush1.bf16.msra.mxu1 %v6860_v29 }
 0x112   :  { %v395_v34 = vpop.f32.mrb[26].mxu0  ;;  %v7777_v38 = vld [vmem:[#allocation2 + $0x20] sm:$0xff]   ;;  %3213 = vrot.lane.b32.xlu0 %v3166_v37, %s7127_s21  ;;  %v2764_v45 = vrot.slane %v2762_v32, 1  ;;  %6544 = vmatprep.subr.bf16.mxu1 %v6862_v53 }
 0x113   :  { %1311 = vst.msk [vmem:[#allocation2 + $0x2c] sm:$0xf] %vm1299_vm2, %v6238_v8  ;;  %v1025_v39 = vmul.f32 %v791_v33, %v626_v30  ;;  %v396_v40 = vadd.f32 %v7675_v0, %v395_v34  ;;  %v6394_v41 = vpop.f32.mrb[27].mxu0  ;;  %v6861_v46 = vld [vmem:[#allocation2 + $0x20] sm:$0xff]   ;;  %v3703_v2 = vshll.u32 %v7777_v38, 16  ;;  %v3707_v32 = vshrl.u32 %v7777_v38, 16 }
 0x114   :  { %v2765_v52 = vsel %vm1746_vm4, %v2760_v44, %v2764_v45  ;;  %3500 = vst.msk [vmem:[#allocation3 + $0x40] sm:$0xff] %vm1549_vm5, %v6861_v46  ;;  %v3990_v3 = vld [vmem:[#allocation2 + $0x24] sm:$0xf]  ;;  %v806_v41 = vpop.permute.xlu0 %805  ;;  %v4159_v44 = vrot.slane %v6106_v18, 1 }
 0x115   :  { %v6239_v50 = vpack.c.bf16 %v1025_v39, %v1025_v39  ;;  %v627_v51 = vmax.f32 %v396_v40, 0.0  ;;  %2967 = vst.msk [vmem:[#allocation3 + $0x38] sm:$0xff] %vm1549_vm5, %v2765_v52  ;;  %6560 = vmatpush1.bf16.msra.mxu1 %v6864_v58  ;;  %v7811_v23 = vrot.slane %v3703_v2, 1  ;;  %v6107_v31 = vcombine.low %v3989_v13, %v3990_v3  ;;  %v707_v2 = vld [vmem:[%s9209_s3 + $0x120] sm:$0xff] }
 0x116   :  { %v400_v62 = vpop.f32.mrb[28].mxu0  ;;  %v7790_v1 = vld [vmem:[#allocation2 + $0x24] sm:$0xff]   ;;  %6545 = vmatprep.subr.bf16.mxu1 %v6865_v11  ;;  %v2768_v39 = vor.u32 %v2766_v24, %v2764_v45 }
 0x117   :  { %1312 = vst.msk [vmem:[#allocation2 + $0x30] sm:$0xf] %vm1299_vm2, %v6239_v50  ;;  %v1026_v5 = vmul.f32 %v796_v59, %v627_v51  ;;  %v401_v6 = vadd.f32 %v7675_v0, %v400_v62  ;;  %v6397_v63 = vpop.f32.mrb[29].mxu0  ;;  %v3167_v9 = vrot.slane %v7790_v1, 1  ;;  %v7798_v10 = vld [vmem:[#allocation2 + $0x24] sm:$0xff]   ;;  %v3709_v47 = vor.u32 %v3707_v32, %v7811_v23 }
 0x118   :  { %v2770_v30 = vshll.u32 %v7798_v10, 16  ;;  %v7830_v59 = vrot.slane %v6107_v31, 1  ;;  %v811_v63 = vpop.permute.xlu1 %810  ;;  %v3991_v11 = vld [vmem:[#allocation2 + $0x28] sm:$0xf]  ;;  %v710_v31 = vld [vmem:[%s9209_s3 + $0x138] sm:$0xff]  ;;  %v2774_v1 = vshrl.u32 %v7798_v10, 16 }
 0x119   :  { %v6240_v14 = vpack.c.bf16 %v1026_v5, %v1026_v5  ;;  %v628_v15 = vmax.f32 %v401_v6, 0.0  ;;  %v3168_v20 = vsel %vm2212_vm3, %v3165_v27, %v3167_v9  ;;  %v708_v27 = vld [vmem:[%s9209_s3 + $0x128] sm:$0xff]  ;;  %6561 = vmatpush1.bf16.msra.mxu1 %v6867_v12 }
 0x11a   :  { %v405_v19 = vpop.f32.mrb[30].mxu0  ;;  %v7809_v22 = vld [vmem:[#allocation2 + $0x28] sm:$0xff]   ;;  %3215 = vrot.lane.b32.xlu0 %v3168_v20, %s7127_s21  ;;  %v2772_v40 = vrot.slane %v2770_v30, 1 }
 0x11b   :  { %1313 = vst.msk [vmem:[#allocation2 + $0x34] sm:$0xf] %vm1299_vm2, %v6240_v14  ;;  %v1027_v28 = vmul.f32 %v801_v17, %v628_v15  ;;  %v406_v29 = vadd.f32 %v7675_v0, %v405_v19  ;;  %v6400_v8 = vpop.f32.mrb[31].mxu0  ;;  %v3711_v25 = vshll.u32 %v7809_v22, 16  ;;  %v6872_v33 = vld [vmem:[#allocation2 + $0x28] sm:$0xff]   ;;  %v3715_v24 = vshrl.u32 %v7809_v22, 16 }
 0x11c   :  { %3501 = vst.msk [vmem:[#allocation3 + $0x68] sm:$0xff] %vm1549_vm5, %v6872_v33  ;;  %v3992_v51 = vld [vmem:[#allocation2 + $0x2c] sm:$0xf]  ;;  %v2773_v45 = vsel %vm1746_vm4, %v2768_v39, %v2772_v40  ;;  %v4161_v22 = vsel %vm2212_vm3, %v4159_v44, %v7830_v59  ;;  %v709_v44 = vld [vmem:[%s9209_s3 + $0x130] sm:$0xff] }
 0x11d   :  { %v6241_v34 = vpack.c.bf16 %v1027_v28, %v1027_v28  ;;  %v629_v37 = vmax.f32 %v406_v29, 0.0  ;;  %v3713_v50 = vrot.slane %v3711_v25, 1  ;;  %2968 = vst.msk [vmem:[#allocation3 + $0x60] sm:$0xff] %vm1549_vm5, %v2773_v45  ;;  %v6108_v20 = vcombine.low %v3991_v11, %v3992_v51  ;;  %4232 = vst.msk [vmem:[#allocation3 + $0x20] sm:$0xff] %vm1549_vm5, %v4161_v22 }
 0x11e   :  { %v410_v46 = vpop.f32.mrb[32].mxu0  ;;  %915 = vperm.xlu0 %6791, %v708_v27   ;;  %v7827_v58 = vld [vmem:[#allocation2 + $0x2c] sm:$0xff]  }
 0x11f   :  { %1314 = vst.msk [vmem:[#allocation2 + $0x38] sm:$0xf] %vm1299_vm2, %v6241_v34  ;;  %v1028_v38 = vmul.f32 %v806_v41, %v629_v37  ;;  %v411_v52 = vadd.f32 %v7675_v0, %v410_v46  ;;  %v6403_v53 = vpop.f32.mrb[33].mxu0  ;;  %v3714_v62 = vsel %vm1746_vm4, %v3709_v47, %v3713_v50  ;;  %v7837_v55 = vld [vmem:[#allocation2 + $0x2c] sm:$0xff]   ;;  %v3169_v6 = vrot.slane %v7827_v58, 1  ;;  %v821_v58 = vpop.permute.xlu1 %820 }
 0x120   :  { %3893 = vrot.lane.b32.xlu1 %v3714_v62, %s7127_s21  ;;  %v2778_v29 = vshll.u32 %v7837_v55, 16  ;;  %v3717_v32 = vor.u32 %v3715_v24, %v3713_v50  ;;  %v2776_v46 = vor.u32 %v2774_v1, %v2772_v40  ;;  %v7864_v47 = vrot.slane %v6108_v20, 1  ;;  %v3993_v45 = vld [vmem:[#allocation2 + $0x30] sm:$0xf] }
 0x121   :  { %v6242_v3 = vpack.c.bf16 %v1028_v38, %v1028_v38  ;;  %v630_v5 = vmax.f32 %v411_v52, 0.0  ;;  %v3170_v18 = vsel %vm2212_vm3, %v3167_v9, %v3169_v6  ;;  %v816_v9 = vpop.permute.xlu0 %815 }
 0x122   :  { %v415_v12 = vpop.f32.mrb[34].mxu0  ;;  %v7841_v13 = vld [vmem:[#allocation2 + $0x30] sm:$0xff]   ;;  %3217 = vrot.lane.b32.xlu0 %v3170_v18, %s7127_s21  ;;  %v2780_v10 = vrot.slane %v2778_v29, 1  ;;  %v2782_v29 = vshrl.u32 %v7837_v55, 16 }
 0x123   :  { %1315 = vst.msk [vmem:[#allocation2 + $0x3c] sm:$0xf] %vm1299_vm2, %v6242_v3  ;;  %v1029_v14 = vmul.f32 %v811_v63, %v630_v5  ;;  %v416_v15 = vadd.f32 %v7675_v0, %v415_v12  ;;  %v6406_v17 = vpop.f32.mrb[35].mxu0  ;;  %v6874_v19 = vld [vmem:[#allocation2 + $0x30] sm:$0xff]   ;;  %v3719_v28 = vshll.u32 %v7841_v13, 16  ;;  %v3723_v18 = vshrl.u32 %v7841_v13, 16 }
 0x124   :  { %910 = vperm.xlu1 %6792, %v707_v2   ;;  %3502 = vst.msk [vmem:[#allocation3 + $0x90] sm:$0xff] %vm1549_vm5, %v6874_v19  ;;  %v3994_v33 = vld [vmem:[#allocation2 + $0x34] sm:$0xf]  ;;  %v2781_v53 = vsel %vm1746_vm4, %v2776_v46, %v2780_v10  ;;  %v6869_v12 = vld [vmem:[%s9211_s4] ss:$8 sps:$4 sm:$0xff]  }
 0x125   :  { %v6243_v8 = vpack.c.bf16 %v1029_v14, %v1029_v14  ;;  %v631_v30 = vmax.f32 %v416_v15, 0.0  ;;  %v3721_v25 = vrot.slane %v3719_v28, 1  ;;  %2969 = vst.msk [vmem:[#allocation3 + $0x88] sm:$0xff] %vm1549_vm5, %v2781_v53  ;;  %v6109_v15 = vcombine.low %v3993_v45, %v3994_v33  ;;  %v712_v17 = vld [vmem:[%s9209_s3 + $0x148] sm:$0xff]  ;;  %v826_v13 = vpop.permute.xlu0 %825 }
 0x126   :  { %v420_v27 = vpop.f32.mrb[36].mxu0  ;;  %v7861_v41 = vld [vmem:[#allocation2 + $0x34] sm:$0xff]   ;;  %925 = vperm.xlu0 %6791, %v710_v31   ;;  %v2784_v33 = vor.u32 %v2782_v29, %v2780_v10 }
 0x127   :  { %1316 = vst.msk [vmem:[#allocation2 + $0x40] sm:$0xf] %vm1299_vm2, %v6243_v8  ;;  %v1030_v34 = vmul.f32 %v816_v9, %v631_v30  ;;  %v421_v37 = vadd.f32 %v7675_v0, %v420_v27  ;;  %v6409_v39 = vpop.f32.mrb[37].mxu0  ;;  %v3722_v50 = vsel %vm1746_vm4, %v3717_v32, %v3721_v25  ;;  %v7870_v51 = vld [vmem:[#allocation2 + $0x34] sm:$0xff]   ;;  %v3171_v40 = vrot.slane %v7861_v41, 1 }
 0x128   :  { %3895 = vrot.lane.b32.xlu1 %v3722_v50, %s7127_s21  ;;  %v2786_v20 = vshll.u32 %v7870_v51, 16  ;;  %v4163_v8 = vsel %vm2212_vm3, %v7830_v59, %v7864_v47  ;;  %v3725_v31 = vor.u32 %v3723_v18, %v3721_v25  ;;  %v7904_v59 = vrot.slane %v6109_v15, 1  ;;  %v714_v18 = vld [vmem:[%s9209_s3 + $0x158] sm:$0xff] }
 0x129   :  { %v6244_v38 = vpack.c.bf16 %v1030_v34, %v1030_v34  ;;  %v632_v52 = vmax.f32 %v421_v37, 0.0  ;;  %v3172_v11 = vsel %vm2212_vm3, %v3169_v6, %v3171_v40  ;;  %v6871_v6 = vld [vmem:[%s9211_s4 + $0x4] ss:$8 sps:$4 sm:$0xff]   ;;  %4233 = vst.msk [vmem:[#allocation3 + $0x48] sm:$0xff] %vm1549_vm5, %v4163_v8 }
 0x12a   :  { %v425_v62 = vpop.f32.mrb[38].mxu0  ;;  %v7875_v2 = vld [vmem:[#allocation2 + $0x38] sm:$0xff]   ;;  %3219 = vrot.lane.b32.xlu0 %v3172_v11, %s7127_s21  ;;  %4892 = vmatprep.subr.bf16.mxu0 %v6871_v6  ;;  %v2788_v34 = vrot.slane %v2786_v20, 1  ;;  %v711_v37 = vld [vmem:[%s9209_s3 + $0x140] sm:$0xff] }
 0x12b   :  { %1317 = vst.msk [vmem:[#allocation2 + $0x44] sm:$0xf] %vm1299_vm2, %v6244_v38  ;;  %v1031_v3 = vmul.f32 %v821_v58, %v632_v52  ;;  %v426_v5 = vadd.f32 %v7675_v0, %v425_v62  ;;  %v6412_v63 = vpop.f32.mrb[39].mxu0  ;;  %v6880_v14 = vld [vmem:[#allocation2 + $0x38] sm:$0xff]   ;;  %v3727_v19 = vshll.u32 %v7875_v2, 16  ;;  %4893 = vmatpush1.bf16.msra.mxu0 %v6869_v12  ;;  %v3731_v11 = vshrl.u32 %v7875_v2, 16 }
 0x12c   :  { %920 = vperm.xlu1 %6792, %v709_v44   ;;  %3503 = vst.msk [vmem:[#allocation3 + $0xb8] sm:$0xff] %vm1549_vm5, %v6880_v14  ;;  %v3996_v9 = vld [vmem:[#allocation2 + $0x3c] sm:$0xf]  ;;  %v2789_v10 = vsel %vm1746_vm4, %v2784_v33, %v2788_v34  ;;  %v831_v44 = vpop.permute.xlu1 %830  ;;  %v3995_v38 = vld [vmem:[#allocation2 + $0x38] sm:$0xf]  ;;  %v4165_v2 = vsel %vm2212_vm3, %v7864_v47, %v7904_v59  ;;  %v713_v47 = vld [vmem:[%s9209_s3 + $0x150] sm:$0xff] }
 0x12d   :  { %v6245_v24 = vpack.c.bf16 %v1031_v3, %v1031_v3  ;;  %v633_v28 = vmax.f32 %v426_v5, 0.0  ;;  %v3729_v1 = vrot.slane %v3727_v19, 1  ;;  %2970 = vst.msk [vmem:[#allocation3 + $0xb0] sm:$0xff] %vm1549_vm5, %v2789_v10  ;;  %v6110_v63 = vcombine.low %v3995_v38, %v3996_v9  ;;  %4234 = vst.msk [vmem:[#allocation3 + $0x70] sm:$0xff] %vm1549_vm5, %v4165_v2 }
 0x12e   :  { %v430_v30 = vpop.f32.mrb[40].mxu0  ;;  %v7902_v22 = vld [vmem:[#allocation2 + $0x3c] sm:$0xff]   ;;  %935 = vperm.xlu0 %6791, %v712_v17   ;;  %v2790_v19 = vshrl.u32 %v7870_v51, 16 }
 0x12f   :  { %1318 = vst.msk [vmem:[#allocation2 + $0x48] sm:$0xf] %vm1299_vm2, %v6245_v24  ;;  %v1032_v27 = vmul.f32 %v826_v13, %v633_v28  ;;  %v431_v32 = vadd.f32 %v7675_v0, %v430_v30  ;;  %v6415_v55 = vpop.f32.mrb[41].mxu0  ;;  %v3730_v25 = vsel %vm1746_vm4, %v3725_v31, %v3729_v1  ;;  %v7910_v39 = vld [vmem:[#allocation2 + $0x3c] sm:$0xff]   ;;  %v3173_v50 = vrot.slane %v7902_v22, 1 }
 0x130   :  { %3897 = vrot.lane.b32.xlu1 %v3730_v25, %s7127_s21  ;;  %v2794_v14 = vshll.u32 %v7910_v39, 16  ;;  %v3733_v20 = vor.u32 %v3731_v11, %v3729_v1  ;;  %v2792_v30 = vor.u32 %v2790_v19, %v2788_v34  ;;  %v7938_v31 = vrot.slane %v6110_v63, 1  ;;  %v841_v33 = vpop.permute.xlu1 %840 }
 0x131   :  { %v6246_v41 = vpack.c.bf16 %v1032_v27, %v1032_v27  ;;  %v634_v46 = vmax.f32 %v431_v32, 0.0  ;;  %v3174_v3 = vsel %vm2212_vm3, %v3171_v40, %v3173_v50  ;;  %v836_v40 = vpop.permute.xlu0 %835 }
 0x132   :  { %v435_v52 = vpop.f32.mrb[42].mxu0  ;;  %v7915_v53 = vld [vmem:[#allocation2 + $0x40] sm:$0xff]   ;;  %3221 = vrot.lane.b32.xlu0 %v3174_v3, %s7127_s21  ;;  %v2796_v51 = vrot.slane %v2794_v14, 1  ;;  %v4167_v14 = vsel %vm2212_vm3, %v7904_v59, %v7938_v31 }
 0x133   :  { %1319 = vst.msk [vmem:[#allocation2 + $0x4c] sm:$0xf] %vm1299_vm2, %v6246_v41  ;;  %v1033_v58 = vmul.f32 %v831_v44, %v634_v46  ;;  %v436_v45 = vadd.f32 %v7675_v0, %v435_v52  ;;  %v6418_v62 = vpop.f32.mrb[43].mxu0  ;;  %v6887_v5 = vld [vmem:[#allocation2 + $0x40] sm:$0xff]   ;;  %v3735_v12 = vshll.u32 %v7915_v53, 16 }
 0x134   :  { %930 = vperm.xlu1 %6792, %v711_v37   ;;  %3504 = vst.msk [vmem:[#allocation3 + $0xe0] sm:$0xff] %vm1549_vm5, %v6887_v5  ;;  %v2797_v22 = vsel %vm1746_vm4, %v2792_v30, %v2796_v51  ;;  %v3998_v34 = vld [vmem:[#allocation2 + $0x44] sm:$0xf]  ;;  %v3997_v41 = vld [vmem:[#allocation2 + $0x40] sm:$0xf]  ;;  %v3739_v62 = vshrl.u32 %v7915_v53, 16 }
 0x135   :  { %v6247_v15 = vpack.c.bf16 %v1033_v58, %v1033_v58  ;;  %v635_v17 = vmax.f32 %v436_v45, 0.0  ;;  %v3737_v24 = vrot.slane %v3735_v12, 1  ;;  %2971 = vst.msk [vmem:[#allocation3 + $0xd8] sm:$0xff] %vm1549_vm5, %v2797_v22  ;;  %v6875_v52 = vld [vmem:[%s9211_s4 + $0x10] ss:$8 sps:$4 sm:$0xff]   ;;  %v716_v45 = vld [vmem:[%s9209_s3 + $0x168] sm:$0xff]  ;;  %v846_v53 = vpop.permute.xlu0 %845 }
 0x136   :  { %v440_v6 = vpop.f32.mrb[44].mxu0  ;;  %v7935_v13 = vld [vmem:[#allocation2 + $0x44] sm:$0xff]   ;;  %945 = vperm.xlu0 %6791, %v714_v18   ;;  %v6877_v5 = vld [vmem:[%s9211_s4 + $0x14] ss:$8 sps:$4 sm:$0xff]   ;;  %v2798_v12 = vshrl.u32 %v7910_v39, 16  ;;  %4235 = vst.msk [vmem:[#allocation3 + $0x98] sm:$0xff] %vm1549_vm5, %v4167_v14 }
 0x137   :  { %1320 = vst.msk [vmem:[#allocation2 + $0x50] sm:$0xf] %vm1299_vm2, %v6247_v15  ;;  %v1034_v28 = vmul.f32 %v836_v40, %v635_v17  ;;  %v441_v29 = vadd.f32 %v7675_v0, %v440_v6  ;;  %v6421_v8 = vpop.f32.mrb[45].mxu0  ;;  %v3738_v1 = vsel %vm1746_vm4, %v3733_v20, %v3737_v24  ;;  %v7944_v9 = vld [vmem:[#allocation2 + $0x44] sm:$0xff]   ;;  %v3175_v55 = vrot.slane %v7935_v13, 1  ;;  %4894 = vmatprep.subr.bf16.mxu0 %v6877_v5 }
 0x138   :  { %3899 = vrot.lane.b32.xlu1 %v3738_v1, %s7127_s21  ;;  %v6111_v15 = vcombine.low %v3997_v41, %v3998_v34  ;;  %v3741_v18 = vor.u32 %v3739_v62, %v3737_v24  ;;  %4895 = vmatpush1.bf16.msra.mxu0 %v6875_v52  ;;  %v2800_v2 = vor.u32 %v2798_v12, %v2796_v51  ;;  %v851_v1 = vpop.permute.xlu1 %850  ;;  %v715_v51 = vld [vmem:[%s9209_s3 + $0x160] sm:$0xff] }
 0x139   :  { %v6248_v27 = vpack.c.bf16 %v1034_v28, %v1034_v28  ;;  %v636_v32 = vmax.f32 %v441_v29, 0.0  ;;  %v3176_v38 = vsel %vm2212_vm3, %v3173_v50, %v3175_v55  ;;  %v2802_v50 = vshll.u32 %v7944_v9, 16 }
 0x13a   :  { %v445_v25 = vpop.f32.mrb[46].mxu0  ;;  %v7949_v37 = vld [vmem:[#allocation2 + $0x48] sm:$0xff]   ;;  %3223 = vrot.lane.b32.xlu0 %v3176_v38, %s7127_s21 }
 0x13b   :  { %1321 = vst.msk [vmem:[#allocation2 + $0x54] sm:$0xf] %vm1299_vm2, %v6248_v27  ;;  %v1035_v46 = vmul.f32 %v841_v33, %v636_v32  ;;  %v446_v10 = vadd.f32 %v7675_v0, %v445_v25  ;;  %v6424_v44 = vpop.f32.mrb[47].mxu0  ;;  %v6891_v58 = vld [vmem:[#allocation2 + $0x48] sm:$0xff]   ;;  %v3743_v3 = vshll.u32 %v7949_v37, 16  ;;  %v2804_v28 = vrot.slane %v2802_v50, 1 }
 0x13c   :  { %940 = vperm.xlu1 %6792, %v713_v47   ;;  %3505 = vst.msk [vmem:[#allocation3 + $0x108] sm:$0xff] %vm1549_vm5, %v6891_v58  ;;  %v7984_v47 = vrot.slane %v6111_v15, 1  ;;  %v718_v58 = vld [vmem:[%s9209_s3 + $0x178] sm:$0xff]  ;;  %v8011_v50 = vld [vmem:[%s9212_s2] ss:$0 sm:$0xff] }
 0x13d   :  { %v6249_v63 = vpack.c.bf16 %v1035_v46, %v1035_v46  ;;  %v637_v11 = vmax.f32 %v446_v10, 0.0  ;;  %v3745_v19 = vrot.slane %v3743_v3, 1  ;;  %v2805_v30 = vsel %vm1746_vm4, %v2800_v2, %v2804_v28 }
 0x13e   :  { %v450_v17 = vpop.f32.mrb[48].mxu0  ;;  %v7976_v20 = vld [vmem:[#allocation2 + $0x4c] sm:$0xff]   ;;  %955 = vperm.xlu0 %6791, %v716_v45   ;;  %2972 = vst.msk [vmem:[#allocation3 + $0x100] sm:$0xff] %vm1549_vm5, %v2805_v30  ;;  %v3747_v46 = vshrl.u32 %v7949_v37, 16  ;;  %v4169_v37 = vsel %vm2212_vm3, %v7938_v31, %v7984_v47 }
 0x13f   :  { %1322 = vst.msk [vmem:[#allocation2 + $0x58] sm:$0xf] %vm1299_vm2, %v6249_v63  ;;  %v1036_v40 = vmul.f32 %v846_v53, %v637_v11  ;;  %v451_v6 = vadd.f32 %v7675_v0, %v450_v17  ;;  %v6427_v39 = vpop.f32.mrb[49].mxu0  ;;  %v3746_v59 = vsel %vm1746_vm4, %v3741_v18, %v3745_v19  ;;  %v7979_v29 = vld [vmem:[#allocation2 + $0x4c] sm:$0xff]   ;;  %v3177_v13 = vrot.slane %v7976_v20, 1 }
 0x140   :  { %3901 = vrot.lane.b32.xlu1 %v3746_v59, %s7127_s21  ;;  %v2810_v44 = vshll.u32 %v7979_v29, 16  ;;  %v3749_v62 = vor.u32 %v3747_v46, %v3745_v19  ;;  %4236 = vst.msk [vmem:[#allocation3 + $0xc0] sm:$0xff] %vm1549_vm5, %v4169_v37  ;;  %v717_v39 = vld [vmem:[%s9209_s3 + $0x170] sm:$0xff] }
 0x141   :  { %v6250_v24 = vpack.c.bf16 %v1036_v40, %v1036_v40  ;;  %v638_v8 = vmax.f32 %v451_v6, 0.0  ;;  %v3178_v25 = vsel %vm2212_vm3, %v3175_v55, %v3177_v13  ;;  %v856_v55 = vpop.permute.xlu0 %855  ;;  %v861_v40 = vpop.permute.xlu1 %860 }
 0x142   :  { %v455_v27 = vpop.f32.mrb[50].mxu0  ;;  %v7989_v32 = vld [vmem:[#allocation2 + $0x50] sm:$0xff]   ;;  %3225 = vrot.lane.b32.xlu0 %v3178_v25, %s7127_s21  ;;  %v2812_v14 = vrot.slane %v2810_v44, 1  ;;  %v2814_v25 = vshrl.u32 %v7979_v29, 16 }
 0x143   :  { %1323 = vst.msk [vmem:[#allocation2 + $0x5c] sm:$0xf] %vm1299_vm2, %v6250_v24  ;;  %v1037_v22 = vmul.f32 %v851_v1, %v638_v8  ;;  %v456_v33 = vadd.f32 %v7675_v0, %v455_v27  ;;  %v6430_v34 = vpop.f32.mrb[51].mxu0  ;;  %v6898_v41 = vld [vmem:[#allocation2 + $0x50] sm:$0xff]   ;;  %v3751_v10 = vshll.u32 %v7989_v32, 16  ;;  %v2806_v0 = vshrl.u32 %v7944_v9, 16 }
 0x144   :  { %950 = vperm.xlu1 %6792, %v715_v51   ;;  %3506 = vst.msk [vmem:[#allocation3 + $0x130] sm:$0xff] %vm1549_vm5, %v6898_v41  ;;  %v6884_v8 = vld [vmem:[%s9211_s4 + $0x20] ss:$8 sps:$4 sm:$0xff]   ;;  %v3755_v27 = vshrl.u32 %v7989_v32, 16 }
 0x145   :  { %v6251_v38 = vpack.c.bf16 %v1037_v22, %v1037_v22  ;;  %v639_v52 = vmax.f32 %v456_v33, 0.0  ;;  %v3753_v3 = vrot.slane %v3751_v10, 1  ;;  %v2808_v12 = vor.u32 %v2806_v0, %v2804_v28  ;;  %v720_v1 = vld [vmem:[%s9209_s3 + $0x188] sm:$0xff]  ;;  %v866_v41 = vpop.permute.xlu0 %865 }
 0x146   :  { %v460_v45 = vpop.f32.mrb[52].mxu0  ;;  %v8014_v11 = vld [vmem:[#allocation2 + $0x54] sm:$0xff]   ;;  %965 = vperm.xlu0 %6791, %v718_v58   ;;  %v6886_v22 = vld [vmem:[%s9211_s4 + $0x24] ss:$8 sps:$4 sm:$0xff]   ;;  %v2816_v0 = vor.u32 %v2814_v25, %v2812_v14 }
 0x147   :  { %1324 = vst.msk [vmem:[#allocation2 + $0x60] sm:$0xf] %vm1299_vm2, %v6251_v38  ;;  %v1038_v5 = vmul.f32 %v856_v55, %v639_v52  ;;  %v461_v9 = vadd.f32 %v8011_v50, %v460_v45  ;;  %v6433_v63 = vpop.f32.mrb[53].mxu0  ;;  %v8016_v53 = vld [vmem:[#allocation2 + $0x54] sm:$0xff]   ;;  %v3754_v31 = vsel %vm1746_vm4, %v3749_v62, %v3753_v3  ;;  %v3179_v18 = vrot.slane %v8014_v11, 1  ;;  %4896 = vmatprep.subr.bf16.mxu0 %v6886_v22  ;;  %v719_v11 = vld [vmem:[%s9209_s3 + $0x180] sm:$0xff] }
 0x148   :  { %3903 = vrot.lane.b32.xlu1 %v3754_v31, %s7127_s21  ;;  %v2813_v19 = vsel %vm1746_vm4, %v2808_v12, %v2812_v14  ;;  %v3757_v10 = vor.u32 %v3755_v27, %v3753_v3  ;;  %4897 = vmatpush1.bf16.msra.mxu0 %v6884_v8  ;;  %v2822_v8 = vshrl.u32 %v8016_v53, 16 }
 0x149   :  { %v6252_v15 = vpack.c.bf16 %v1038_v5, %v1038_v5  ;;  %v640_v17 = vmax.f32 %v461_v9, 0.0  ;;  %2973 = vst.msk [vmem:[#allocation3 + $0x128] sm:$0xff] %vm1549_vm5, %v2813_v19  ;;  %v3180_v24 = vsel %vm2212_vm3, %v3177_v13, %v3179_v18  ;;  %v2818_v13 = vshll.u32 %v8016_v53, 16  ;;  %v871_v9 = vpop.permute.xlu1 %870 }
 0x14a   :  { %v465_v6 = vpop.f32.mrb[54].mxu0  ;;  %v8026_v20 = vld [vmem:[#allocation2 + $0x58] sm:$0xff]   ;;  %3227 = vrot.lane.b32.xlu0 %v3180_v24, %s7127_s21 }
 0x14b   :  { %1325 = vst.msk [vmem:[#allocation2 + $0x64] sm:$0xf] %vm1299_vm2, %v6252_v15  ;;  %v1039_v2 = vmul.f32 %v861_v40, %v640_v17  ;;  %v466_v28 = vadd.f32 %v8011_v50, %v465_v6  ;;  %v6436_v59 = vpop.f32.mrb[55].mxu0  ;;  %v6902_v30 = vld [vmem:[#allocation2 + $0x58] sm:$0xff]   ;;  %v3759_v51 = vshll.u32 %v8026_v20, 16  ;;  %v2820_v55 = vrot.slane %v2818_v13, 1 }
 0x14c   :  { %960 = vperm.xlu1 %6792, %v717_v39   ;;  %3507 = vst.msk [vmem:[#allocation3 + $0x158] sm:$0xff] %vm1549_vm5, %v6902_v30  ;;  %v722_v40 = vld [vmem:[%s9209_s3 + $0x198] sm:$0xff]  ;;  %v3763_v6 = vshrl.u32 %v8026_v20, 16  ;;  %v3999_v30 = vld [vmem:[#allocation2 + $0x48] sm:$0xf] }
 0x14d   :  { %v6253_v33 = vpack.c.bf16 %v1039_v2, %v1039_v2  ;;  %v641_v34 = vmax.f32 %v466_v28, 0.0  ;;  %v3761_v44 = vrot.slane %v3759_v51, 1  ;;  %v2821_v5 = vsel %vm1746_vm4, %v2816_v0, %v2820_v55  ;;  %v4000_v28 = vld [vmem:[#allocation2 + $0x4c] sm:$0xf]  ;;  %v721_v0 = vld [vmem:[%s9209_s3 + $0x190] sm:$0xff] }
 0x14e   :  { %v470_v46 = vpop.f32.mrb[56].mxu0  ;;  %v8049_v58 = vld [vmem:[#allocation2 + $0x5c] sm:$0xff]   ;;  %975 = vperm.xlu0 %6791, %v720_v1   ;;  %2974 = vst.msk [vmem:[#allocation3 + $0x150] sm:$0xff] %vm1549_vm5, %v2821_v5 }
 0x14f   :  { %1326 = vst.msk [vmem:[#allocation2 + $0x68] sm:$0xf] %vm1299_vm2, %v6253_v33  ;;  %v1040_v32 = vmul.f32 %v866_v41, %v641_v34  ;;  %v471_v38 = vadd.f32 %v8011_v50, %v470_v46  ;;  %v6439_v52 = vpop.f32.mrb[57].mxu0  ;;  %v3762_v29 = vsel %vm1746_vm4, %v3757_v10, %v3761_v44  ;;  %v8052_v45 = vld [vmem:[#allocation2 + $0x5c] sm:$0xff]   ;;  %v3181_v37 = vrot.slane %v8049_v58, 1 }
 0x150   :  { %3905 = vrot.lane.b32.xlu1 %v3762_v29, %s7127_s21  ;;  %v2826_v2 = vshll.u32 %v8052_v45, 16  ;;  %v3765_v27 = vor.u32 %v3763_v6, %v3761_v44  ;;  %v2824_v34 = vor.u32 %v2822_v8, %v2820_v55  ;;  %v6112_v41 = vcombine.low %v3999_v30, %v4000_v28  ;;  %v881_v52 = vpop.permute.xlu1 %880 }
 0x151   :  { %v6254_v62 = vpack.c.bf16 %v1040_v32, %v1040_v32  ;;  %v642_v3 = vmax.f32 %v471_v38, 0.0  ;;  %v3182_v17 = vsel %vm2212_vm3, %v3179_v18, %v3181_v37  ;;  %v876_v18 = vpop.permute.xlu0 %875  ;;  %v2830_v6 = vshrl.u32 %v8052_v45, 16 }
 0x152   :  { %v475_v63 = vpop.f32.mrb[58].mxu0  ;;  %v8060_v12 = vld [vmem:[#allocation2 + $0x60] sm:$0xff]   ;;  %3229 = vrot.lane.b32.xlu0 %v3182_v17, %s7127_s21  ;;  %v2828_v25 = vrot.slane %v2826_v2, 1 }
 0x153   :  { %1327 = vst.msk [vmem:[#allocation2 + $0x6c] sm:$0xf] %vm1299_vm2, %v6254_v62  ;;  %v1041_v14 = vmul.f32 %v871_v9, %v642_v3  ;;  %v476_v31 = vadd.f32 %v8011_v50, %v475_v63  ;;  %v6442_v15 = vpop.f32.mrb[59].mxu0  ;;  %v6912_v19 = vld [vmem:[#allocation2 + $0x60] sm:$0xff]   ;;  %v3767_v39 = vshll.u32 %v8060_v12, 16  ;;  %v724_v9 = vld [vmem:[%s9209_s3 + $0x1a8] sm:$0xff] }
 0x154   :  { %970 = vperm.xlu1 %6792, %v719_v11   ;;  %3508 = vst.msk [vmem:[#allocation3 + $0x180] sm:$0xff] %vm1549_vm5, %v6912_v19  ;;  %v2829_v38 = vsel %vm1746_vm4, %v2824_v34, %v2828_v25  ;;  %v6894_v63 = vld [vmem:[%s9211_s4 + $0x30] ss:$8 sps:$4 sm:$0xff]   ;;  %v2832_v30 = vor.u32 %v2830_v6, %v2828_v25  ;;  %v891_v34 = vpop.permute.xlu1 %890 }
 0x155   :  { %v6255_v59 = vpack.c.bf16 %v1041_v14, %v1041_v14  ;;  %v643_v24 = vmax.f32 %v476_v31, 0.0  ;;  %v3769_v51 = vrot.slane %v3767_v39, 1  ;;  %2975 = vst.msk [vmem:[#allocation3 + $0x178] sm:$0xff] %vm1549_vm5, %v2829_v38  ;;  %v8100_v14 = vrot.slane %v6112_v41, 1  ;;  %v886_v39 = vpop.permute.xlu0 %885  ;;  %v723_v41 = vld [vmem:[%s9209_s3 + $0x1a0] sm:$0xff] }
 0x156   :  { %v480_v1 = vpop.f32.mrb[60].mxu0  ;;  %v8077_v33 = vld [vmem:[#allocation2 + $0x64] sm:$0xff]   ;;  %985 = vperm.xlu0 %6791, %v722_v40   ;;  %v3771_v31 = vshrl.u32 %v8060_v12, 16 }
 0x157   :  { %1328 = vst.msk [vmem:[#allocation2 + $0x70] sm:$0xf] %vm1299_vm2, %v6255_v59  ;;  %v1042_v20 = vmul.f32 %v876_v18, %v643_v24  ;;  %v481_v22 = vadd.f32 %v8011_v50, %v480_v1  ;;  %v6445_v13 = vpop.f32.mrb[61].mxu0  ;;  %v3770_v53 = vsel %vm1746_vm4, %v3765_v27, %v3769_v51  ;;  %v8080_v46 = vld [vmem:[#allocation2 + $0x64] sm:$0xff]   ;;  %v3183_v44 = vrot.slane %v8077_v33, 1 }
 0x158   :  { %3907 = vrot.lane.b32.xlu1 %v3770_v53, %s7127_s21  ;;  %v2834_v17 = vshll.u32 %v8080_v46, 16  ;;  %v3773_v28 = vor.u32 %v3771_v31, %v3769_v51  ;;  %v4171_v51 = vsel %vm2212_vm3, %v7984_v47, %v8100_v14 }
 0x159   :  { %v6256_v10 = vpack.c.bf16 %v1042_v20, %v1042_v20  ;;  %v644_v32 = vmax.f32 %v481_v22, 0.0  ;;  %v3184_v5 = vsel %vm2212_vm3, %v3181_v37, %v3183_v44  ;;  %v6896_v37 = vld [vmem:[%s9211_s4 + $0x34] ss:$8 sps:$4 sm:$0xff]   ;;  %4237 = vst.msk [vmem:[#allocation3 + $0xe8] sm:$0xff] %vm1549_vm5, %v4171_v51 }
 0x15a   :  { %v485_v58 = vpop.f32.mrb[62].mxu0  ;;  %v8088_v55 = vld [vmem:[#allocation2 + $0x68] sm:$0xff]   ;;  %3231 = vrot.lane.b32.xlu0 %v3184_v5, %s7127_s21  ;;  %4898 = vmatprep.subr.bf16.mxu0 %v6896_v37  ;;  %v2836_v1 = vrot.slane %v2834_v17, 1 }
 0x15b   :  { %1329 = vst.msk [vmem:[#allocation2 + $0x74] sm:$0xf] %vm1299_vm2, %v6256_v10  ;;  %v1043_v29 = vmul.f32 %v881_v52, %v644_v32  ;;  %v486_v62 = vadd.f32 %v8011_v50, %v485_v58  ;;  %v6448_v3 = vpop.f32.mrb[63].mxu0  ;;  %v6916_v11 = vld [vmem:[#allocation2 + $0x68] sm:$0xff]   ;;  %v3775_v15 = vshll.u32 %v8088_v55, 16  ;;  %4899 = vmatpush1.bf16.msra.mxu0 %v6894_v63  ;;  %v3779_v58 = vshrl.u32 %v8088_v55, 16 }
 0x15c   :  { %980 = vperm.xlu1 %6792, %v721_v0   ;;  %3509 = vst.msk [vmem:[#allocation3 + $0x1a8] sm:$0xff] %vm1549_vm5, %v6916_v11  ;;  %v2837_v33 = vsel %vm1746_vm4, %v2832_v30, %v2836_v1  ;;  %v6910_v55 = vld [vmem:[%s9211_s4 + $0x44] ss:$8 sps:$4 sm:$0xff]   ;;  %v896_v11 = vpop.permute.xlu0 %895  ;;  %v901_v30 = vpop.permute.xlu1 %900 }
 0x15d   :  { %v6257_v19 = vpack.c.bf16 %v1043_v29, %v1043_v29  ;;  %v645_v40 = vmax.f32 %v486_v62, 0.0  ;;  %v3777_v59 = vrot.slane %v3775_v15, 1  ;;  %2976 = vst.msk [vmem:[#allocation3 + $0x1a0] sm:$0xff] %vm1549_vm5, %v2837_v33  ;;  %v6907_v29 = vld [vmem:[%s9211_s4 + $0x204] ss:$8 sps:$4 sm:$0xff]   ;;  %4900 = vmatprep.subr.bf16.mxu0 %v6910_v55 }
 0x15e   :  { %v490_v2 = vpop.f32.mrb[64].mxu0  ;;  %v8113_v18 = vld [vmem:[#allocation2 + $0x6c] sm:$0xff]   ;;  %995 = vperm.xlu0 %6791, %v724_v9   ;;  %v6908_v62 = vld [vmem:[%s9211_s4 + $0x40] ss:$8 sps:$4 sm:$0xff]   ;;  %v2838_v9 = vshrl.u32 %v8080_v46, 16  ;;  %5374 = vmatprep.subr.bf16.mxu1 %v6907_v29 }
 0x15f   :  { %1330 = vst.msk [vmem:[#allocation2 + $0x78] sm:$0xf] %vm1299_vm2, %v6257_v19  ;;  %v1044_v12 = vmul.f32 %v886_v39, %v645_v40  ;;  %v491_v24 = vadd.f32 %v8011_v50, %v490_v2  ;;  %v6451_v8 = vpop.f32.mrb[65].mxu0  ;;  %v3778_v45 = vsel %vm1746_vm4, %v3773_v28, %v3777_v59  ;;  %v8116_v27 = vld [vmem:[#allocation2 + $0x6c] sm:$0xff]   ;;  %v3185_v13 = vrot.slane %v8113_v18, 1  ;;  %4901 = vmatpush1.bf16.msra.mxu0 %v6908_v62 }
 0x160   :  { %3909 = vrot.lane.b32.xlu1 %v3778_v45, %s7127_s21  ;;  %v2842_v63 = vshll.u32 %v8116_v27, 16  ;;  %v3781_v15 = vor.u32 %v3779_v58, %v3777_v59  ;;  %v2840_v39 = vor.u32 %v2838_v9, %v2836_v1  ;;  %v671_v1 = vld [vmem:[%s9209_s3] sm:$0xff]  ;;  %v906_v58 = vpop.permute.xlu0 %905 }
 0x161   :  { %v6258_v20 = vpack.c.bf16 %v1044_v12, %v1044_v12  ;;  %v646_v22 = vmax.f32 %v491_v24, 0.0  ;;  %v3186_v38 = vsel %vm2212_vm3, %v3183_v44, %v3185_v13  ;;  %v672_v44 = vld [vmem:[%s9209_s3 + $0x8] sm:$0xff]  ;;  %v673_v24 = vld [vmem:[%s9209_s3 + $0x10] sm:$0xff] }
 0x162   :  { %v495_v25 = vpop.f32.mrb[66].mxu0  ;;  %v8128_v53 = vld [vmem:[#allocation2 + $0x70] sm:$0xff]   ;;  %3233 = vrot.lane.b32.xlu0 %v3186_v38, %s7127_s21  ;;  %v2844_v46 = vrot.slane %v2842_v63, 1 }
 0x163   :  { %1331 = vst.msk [vmem:[#allocation2 + $0x7c] sm:$0xf] %vm1299_vm2, %v6258_v20  ;;  %v1045_v47 = vmul.f32 %v891_v34, %v646_v22  ;;  %v496_v10 = vadd.f32 %v8011_v50, %v495_v25  ;;  %v6454_v32 = vpop.f32.mrb[67].mxu0  ;;  %v6923_v52 = vld [vmem:[#allocation2 + $0x70] sm:$0xff]   ;;  %v3783_v0 = vshll.u32 %v8128_v53, 16 }
 0x164   :  { %990 = vperm.xlu1 %6792, %v723_v41   ;;  %3510 = vst.msk [vmem:[#allocation3 + $0x1d0] sm:$0xff] %vm1549_vm5, %v6923_v52  ;;  %v2845_v8 = vsel %vm1746_vm4, %v2840_v39, %v2844_v46  ;;  %v3787_v41 = vshrl.u32 %v8128_v53, 16  ;;  %v2846_v52 = vshrl.u32 %v8116_v27, 16 }
 0x165   :  { %v6259_v3 = vpack.c.bf16 %v1045_v47, %v1045_v47  ;;  %v647_v5 = vmax.f32 %v496_v10, 0.0  ;;  %v3785_v37 = vrot.slane %v3783_v0, 1  ;;  %2977 = vst.msk [vmem:[#allocation3 + $0x1c8] sm:$0xff] %vm1549_vm5, %v2845_v8 }
 0x166   :  { %v500_v31 = vpop.f32.mrb[68].mxu0  ;;  %v8156_v6 = vld [vmem:[#allocation2 + $0x74] sm:$0xff]   ;;  %735 = vperm.xlu0 %6791, %v672_v44   ;;  %v2848_v44 = vor.u32 %v2846_v52, %v2844_v46 }
 0x167   :  { %1332 = vst.msk [vmem:[#allocation2 + $0x80] sm:$0xf] %vm1299_vm2, %v6259_v3  ;;  %v1046_v17 = vmul.f32 %v896_v11, %v647_v5  ;;  %v501_v19 = vadd.f32 %v8011_v50, %v500_v31  ;;  %v6457_v40 = vpop.f32.mrb[69].mxu0  ;;  %v3786_v2 = vsel %vm1746_vm4, %v3781_v15, %v3785_v37  ;;  %v6921_v28 = vld [vmem:[#allocation2 + $0x74] sm:$0xff]   ;;  %v3187_v51 = vrot.slane %v8156_v6, 1  ;;  %v675_v31 = vld [vmem:[%s9209_s3 + $0x20] sm:$0xff] }
 0x168   :  { %3911 = vrot.lane.b32.xlu1 %v3786_v2, %s7127_s21  ;;  %v2850_v10 = vshll.u32 %v6921_v28, 16  ;;  %v3789_v0 = vor.u32 %v3787_v41, %v3785_v37  ;;  %v6918_v40 = vld [vmem:[%s9211_s4 + $0x50] ss:$8 sps:$4 sm:$0xff]  }
 0x169   :  { %v6260_v12 = vpack.c.bf16 %v1046_v17, %v1046_v17  ;;  %v648_v59 = vmax.f32 %v501_v19, 0.0  ;;  %v3188_v53 = vsel %vm2212_vm3, %v3185_v13, %v3187_v51  ;;  %v674_v13 = vld [vmem:[%s9209_s3 + $0x18] sm:$0xff]  ;;  %v2854_v17 = vshrl.u32 %v6921_v28, 16 }
 0x16a   :  { %v505_v45 = vpop.f32.mrb[70].mxu0  ;;  %v6830_v20 = vld [vmem:[#allocation2 + $0x78] sm:$0xff]   ;;  %740 = vperm.xlu0 %6791, %v673_v24   ;;  %v2852_v55 = vrot.slane %v2850_v10, 1 }
 0x16b   :  { %1333 = vst.msk [vmem:[#allocation2 + $0x84] sm:$0xf] %vm1299_vm2, %v6260_v12  ;;  %v1047_v22 = vmul.f32 %v901_v30, %v648_v59  ;;  %v506_v33 = vadd.f32 %v8011_v50, %v505_v45  ;;  %v6460_v34 = vpop.f32.mrb[71].mxu0  ;;  %v6926_v25 = vld [vmem:[#allocation2 + $0x78] sm:$0xff]   ;;  %v3791_v47 = vshll.u32 %v6830_v20, 16  ;;  %v3795_v39 = vshrl.u32 %v6830_v20, 16 }
 0x16c   :  { %730 = vperm.xlu1 %6792, %v671_v1   ;;  %3511 = vst.msk [vmem:[#allocation3 + $0x1f8] sm:$0xff] %vm1549_vm5, %v6926_v25  ;;  %v2853_v18 = vsel %vm1746_vm4, %v2848_v44, %v2852_v55  ;;  %v6920_v12 = vld [vmem:[%s9211_s4 + $0x54] ss:$8 sps:$4 sm:$0xff]   ;;  %v2856_v59 = vor.u32 %v2854_v17, %v2852_v55 }
 0x16d   :  { %v6261_v32 = vpack.c.bf16 %v1047_v22, %v1047_v22  ;;  %v649_v38 = vmax.f32 %v506_v33, 0.0  ;;  %v3793_v29 = vrot.slane %v3791_v47, 1  ;;  %2978 = vst.msk [vmem:[#allocation3 + $0x1f0] sm:$0xff] %vm1549_vm5, %v2853_v18  ;;  %4902 = vmatprep.subr.bf16.mxu0 %v6920_v12  ;;  %v6930_v47 = vld [vmem:[%s9211_s4 + $0x64] ss:$8 sps:$4 sm:$0xff]  }
 0x16e   :  { %v6835_v62 = vld [vmem:[#allocation2 + $0x7c] sm:$0xff]   ;;  %v8178_v5 = vpop.f32.mrb[72].mxu0  ;;  %3235 = vrot.lane.b32.xlu0 %v3188_v53, %s7127_s21  ;;  %4903 = vmatpush1.bf16.msra.mxu0 %v6918_v40 }
 0x16f   :  { %1334 = vst.msk [vmem:[#allocation2 + $0x88] sm:$0xf] %vm1299_vm2, %v6261_v32  ;;  %v1048_v3 = vmul.f32 %v906_v58, %v649_v38  ;;  %v3794_v27 = vsel %vm1746_vm4, %v3789_v0, %v3793_v29  ;;  %v6463_v9 = vpop.f32.mrb[73].mxu0  ;;  %v6925_v63 = vld [vmem:[#allocation2 + $0x7c] sm:$0xff]   ;;  %v3189_v15 = vrot.slane %v6835_v62, 1  ;;  %v3797_v24 = vor.u32 %v3795_v39, %v3793_v29  ;;  %v725_v32 = vld [vmem:[%s9209_s3 + $0x1b0] sm:$0xff]  ;;  %4904 = vmatprep.subr.bf16.mxu0 %v6930_v47 }
 0x170   :  { %3913 = vrot.lane.b32.xlu1 %v3794_v27, %s7127_s21  ;;  %v2858_v6 = vshll.u32 %v6925_v63, 16  ;;  %v2862_v52 = vshrl.u32 %v6925_v63, 16  ;;  %v4002_v27 = vld [vmem:[#allocation2 + $0x54] sm:$0xf] }
 0x171   :  { %v6262_v11 = vpack.c.bf16 %v1048_v3, %v1048_v3  ;;  %v3190_v45 = vsel %vm2212_vm3, %v3187_v51, %v3189_v15  ;;  %v6928_v51 = vld [vmem:[%s9211_s4 + $0x60] ss:$8 sps:$4 sm:$0xff]  }
 0x172   :  { %v6838_v37 = vld [vmem:[#allocation2 + $0x80] sm:$0xff]   ;;  %v8192_v19 = vpop.f32.mrb[74].mxu0  ;;  %750 = vperm.xlu0 %6791, %v675_v31   ;;  %v2860_v28 = vrot.slane %v2858_v6, 1  ;;  %4905 = vmatpush1.bf16.msra.mxu0 %v6928_v51 }
 0x173   :  { %1335 = vst.msk [vmem:[#allocation2 + $0x8c] sm:$0xf] %vm1299_vm2, %v6262_v11  ;;  %v3799_v46 = vshll.u32 %v6838_v37, 16  ;;  %v6466_v2 = vpop.f32.mrb[75].mxu0  ;;  %v6933_v41 = vld [vmem:[#allocation2 + $0x80] sm:$0xff]   ;;  %v3803_v29 = vshrl.u32 %v6838_v37, 16 }
 0x174   :  { %745 = vperm.xlu1 %6792, %v674_v13   ;;  %v2861_v20 = vsel %vm1746_vm4, %v2856_v59, %v2860_v28  ;;  %3512 = vst.msk [vmem:[#allocation3 + $0x220] sm:$0xff] %vm1549_vm5, %v6933_v41  ;;  %v2864_v53 = vor.u32 %v2862_v52, %v2860_v28  ;;  %v4003_v59 = vld [vmem:[#allocation2 + $0x58] sm:$0xf] }
 0x175   :  { %v3801_v8 = vrot.slane %v3799_v46, 1  ;;  %2979 = vst.msk [vmem:[#allocation3 + $0x218] sm:$0xff] %vm1549_vm5, %v2861_v20  ;;  %v4004_v46 = vld [vmem:[#allocation2 + $0x5c] sm:$0xf] }
 0x176   :  { %v8200_v30 = vld [vmem:[#allocation2 + $0x84] sm:$0xff]   ;;  %v8203_v1 = vpop.f32.mrb[76].mxu0  ;;  %3237 = vrot.lane.b32.xlu0 %v3190_v45, %s7127_s21  ;;  %v6114_v28 = vcombine.low %v4003_v59, %v4004_v46  ;;  %v6937_v45 = vld [vmem:[%s9211_s4 + $0x74] ss:$8 sps:$4 sm:$0xff]  }
 0x177   :  { %v3802_v22 = vsel %vm1746_vm4, %v3797_v24, %v3801_v8  ;;  %v3191_v33 = vrot.slane %v8200_v30, 1  ;;  %v6469_v34 = vpop.f32.mrb[77].mxu0  ;;  %v8210_v25 = vld [vmem:[#allocation2 + $0x84] sm:$0xff]   ;;  %v3805_v9 = vor.u32 %v3803_v29, %v3801_v8  ;;  %v6935_v8 = vld [vmem:[%s9211_s4 + $0x70] ss:$8 sps:$4 sm:$0xff]   ;;  %4906 = vmatprep.subr.bf16.mxu0 %v6937_v45 }
 0x178   :  { %3915 = vrot.lane.b32.xlu1 %v3802_v22, %s7127_s21  ;;  %v2866_v0 = vshll.u32 %v8210_v25, 16  ;;  %v4006_v34 = vld [vmem:[#allocation2 + $0x64] sm:$0xf]  ;;  %4907 = vmatpush1.bf16.msra.mxu0 %v6935_v8  ;;  %v4174_v51 = vrot.slane %v6114_v28, 1  ;;  %v79_v52 = vld [vmem:[%s9210_s0 + $0x1b8] sm:$0xff]  ;;  %v7053_v8 = vld [vmem:[#allocation2 + $0x28] sm:$0xff]  }
 0x179   :  { %v3192_v10 = vsel %vm2212_vm3, %v3189_v15, %v3191_v33  ;;  %v4001_v15 = vld [vmem:[#allocation2 + $0x50] sm:$0xf]  ;;  %6519 = vmatmul.mubr.msk.f32.gmra.mrb[110].mxu0 %vm92_vm1, %v79_v52  ;;  %v6905_v59 = vld [vmem:[%s9211_s4 + $0x200] ss:$8 sps:$4 sm:$0xff]  }
 0x17a   :  { %v8225_v38 = vld [vmem:[#allocation2 + $0x88] sm:$0xff]   ;;  %v8228_v58 = vpop.f32.mrb[78].mxu0  ;;  %3239 = vrot.lane.b32.xlu0 %v3192_v10, %s7127_s21  ;;  %v8233_v44 = vrot.slane %v2866_v0, 1  ;;  %v6113_v37 = vcombine.low %v4001_v15, %v4002_v27  ;;  %6521 = vmatprep.mubr.msk.f32.mxu0 %vm7124_vm0, %v7125_v4  ;;  %v8278_v27 = vld [vmem:[#allocation2 + $0x18] sm:$0xff]   ;;  %v7055_v52 = vld [vmem:[#allocation2 + $0x30] sm:$0xff]  }
 0x17b   :  { %v3807_v62 = vshll.u32 %v8225_v38, 16  ;;  %v6472_v3 = vpop.f32.mrb[79].mxu0  ;;  %v6965_v55 = vld [vmem:[#allocation2 + $0x88] sm:$0xff]   ;;  %v2218_v15 = vrot.slane %v8278_v27, 1 }
 0x17c   :  { %1000 = vperm.xlu1 %6792, %v725_v32   ;;  %v2869_v18 = vsel %vm1746_vm4, %v2864_v53, %v8233_v44  ;;  %3513 = vst.msk [vmem:[#allocation3 + $0x248] sm:$0xff] %vm1549_vm5, %v6965_v55  ;;  %v4172_v39 = vrot.slane %v6113_v37, 1  ;;  %v4005_v32 = vld [vmem:[#allocation2 + $0x60] sm:$0xf]  ;;  %v6950_v4 = vld [vmem:[%s9211_s4 + $0x84] ss:$8 sps:$4 sm:$0xff]  }
 0x17d   :  { %v8235_v63 = vrot.slane %v3807_v62, 1  ;;  %2980 = vst.msk [vmem:[#allocation3 + $0x240] sm:$0xff] %vm1549_vm5, %v2869_v18  ;;  %v6115_v0 = vcombine.low %v4005_v32, %v4006_v34  ;;  %v7048_v62 = vld [vmem:[#allocation2 + $0x18] sm:$0xff]   ;;  %v7050_v37 = vld [vmem:[#allocation2 + $0x20] sm:$0xff]   ;;  %4908 = vmatprep.subr.bf16.mxu0 %v6950_v4  ;;  %v7054_v32 = vld [vmem:[#allocation2 + $0x30] sm:$0xff]  }
 0x17e   :  { %v8237_v11 = vpop.f32.mrb[80].mxu0  ;;  %v4173_v20 = vsel %vm2212_vm3, %v8100_v14, %v4172_v39  ;;  %v8270_v14 = vadd.f32 %v8011_v50, %v8192_v19  ;;  %v4175_v3 = vsel %vm2212_vm3, %v4172_v39, %v4174_v51  ;;  %v6948_v19 = vld [vmem:[%s9211_s4 + $0x80] ss:$8 sps:$4 sm:$0xff]   ;;  %1553 = vst.msk [vmem:[#allocation3 + $0x78] sm:$0xff] %vm1549_vm5, %v7048_v62  ;;  %1554 = vst.msk [vmem:[#allocation3 + $0xa0] sm:$0xff] %vm1549_vm5, %v7050_v37  ;;  %v7057_v4 = vld [vmem:[#allocation2 + $0x38] sm:$0xff]  }
 0x17f   :  { %v6475_v31 = vpop.f32.mrb[81].mxu0  ;;  %v3810_v13 = vsel %vm1746_vm4, %v3805_v9, %v8235_v63  ;;  %4238 = vst.msk [vmem:[#allocation3 + $0x110] sm:$0xff] %vm1549_vm5, %v4173_v20  ;;  %4239 = vst.msk [vmem:[#allocation3 + $0x138] sm:$0xff] %vm1549_vm5, %v4175_v3  ;;  %v4008_v9 = vld [vmem:[#allocation2 + $0x6c] sm:$0xf]  ;;  %v8292_v18 = vrot.slane %v6115_v0, 1  ;;  %4909 = vmatpush1.bf16.msra.mxu0 %v6948_v19  ;;  %v511_v19 = vadd.f32 %v8011_v50, %v8178_v5 }
 0x180   :  { %3917 = vrot.lane.b32.xlu1 %v3810_v13, %s7127_s21  ;;  %v80_v31 = vld [vmem:[%s9210_s0 + $0x1c0] sm:$0xff]  ;;  %v651_v13 = vmax.f32 %v8270_v14, 0.0  ;;  %v6942_v20 = vld [vmem:[%s9211_s4 + $0x214] ss:$8 sps:$4 sm:$0xff]   ;;  %1556 = vst.msk [vmem:[#allocation3 + $0xf0] sm:$0xff] %vm1549_vm5, %v7054_v32  ;;  %v2226_v50 = vrot.slane %v7057_v4, 1 }
 0x181   :  { %6522 = vmatmul.mubr.msk.f32.gmra.mrb[112].mxu0 %vm92_vm1, %v80_v31  ;;  %v7051_v39 = vld [vmem:[#allocation2 + $0x20] sm:$0xff]   ;;  %v4177_v0 = vsel %vm2212_vm3, %v4174_v51, %v8292_v18  ;;  %v6940_v51 = vld [vmem:[%s9211_s4 + $0x210] ss:$8 sps:$4 sm:$0xff]  }
 0x182   :  { %v8246_v17 = vpop.f32.mrb[82].mxu0  ;;  %v2220_v28 = vrot.slane %v7051_v39, 1  ;;  %4240 = vst.msk [vmem:[#allocation3 + $0x160] sm:$0xff] %vm1549_vm5, %v4177_v0  ;;  %v7058_v39 = vld [vmem:[#allocation2 + $0x40] sm:$0xff]   ;;  %v7063_v4 = vld [vmem:[#allocation2 + $0x50] sm:$0xff]  }
 0x183   :  { %v6478_v40 = vpop.f32.mrb[83].mxu0  ;;  %v8334_v5 = vld [vmem:[%s9212_s2] ss:$0 sm:$0xff]  ;;  %1558 = vst.msk [vmem:[#allocation3 + $0x140] sm:$0xff] %vm1549_vm5, %v7058_v39 }
 0x184   :  { %v3214_v6 = vpop.permute.xlu0 %3213  ;;  %v4007_v40 = vld [vmem:[#allocation2 + $0x68] sm:$0xf] }
 0x185   :  { %3284 = vst.msk [vmem:[#allocation3 + $0x38] sm:$0xff] %vm2015_vm6, %v3214_v6  ;;  %v6116_v45 = vcombine.low %v4007_v40, %v4008_v9  ;;  %v6977_v30 = vld [vmem:[%s9211_s4 + $0x220] ss:$8 sps:$4 sm:$0xff]  }
 0x186   :  { %v8249_v2 = vpop.f32.mrb[84].mxu0 }
 0x187   :  { %v6481_v12 = vpop.f32.mrb[85].mxu0  ;;  %v8318_v9 = vrot.slane %v6116_v45, 1  ;;  %v650_v45 = vmax.f32 %v511_v19, 0.0  ;;  %v521_v19 = vadd.f32 %v8334_v5, %v8203_v1  ;;  %v2232_v1 = vrot.slane %v7063_v4, 1 }
 0x188   :  { %v7052_v12 = vld [vmem:[#allocation2 + $0x28] sm:$0xff]  }
 0x189   :  { %1555 = vst.msk [vmem:[#allocation3 + $0xc8] sm:$0xff] %vm1549_vm5, %v7052_v12 }
 0x18a   :  { %v8251_v24 = vpop.f32.mrb[86].mxu0 }
 0x18b   :  { %v6484_v22 = vpop.f32.mrb[87].mxu0 }
 0x18c   :  { %v3216_v41 = vpop.permute.xlu0 %3215  ;;  %v4263_v22 = vld [vmem:[#allocation3 + $0x38] sm:$0xff] }
 0x18d   :  { %3285 = vst.msk [vmem:[#allocation3 + $0x60] sm:$0xff] %vm2015_vm6, %v3216_v41  ;;  %v2221_v41 = vsel %vm2212_vm3, %v2218_v15, %v2220_v28 }
 0x18e   :  { %v8263_v47 = vpop.f32.mrb[88].mxu0  ;;  %2289 = vst.msk [vmem:[#allocation3 + $0x80] sm:$0xff] %vm1549_vm5, %v2221_v41  ;;  %v7060_v41 = vld [vmem:[#allocation2 + $0x48] sm:$0xff]  }
 0x18f   :  { %v6487_v10 = vpop.f32.mrb[89].mxu0  ;;  %1559 = vst.msk [vmem:[#allocation3 + $0x168] sm:$0xff] %vm1549_vm5, %v7060_v41 }
 0x190   :  { %v2222_v10 = vrot.slane %v7053_v8, 1  ;;  %v7059_v8 = vld [vmem:[#allocation2 + $0x40] sm:$0xff]  }
 0x192   :  { %v8273_v29 = vpop.f32.mrb[90].mxu0  ;;  %v3894_v53 = vpop.permute.xlu1 %3893  ;;  %v2223_v3 = vsel %vm2212_vm3, %v2220_v28, %v2222_v10  ;;  %v526_v28 = vadd.f32 %v8334_v5, %v8228_v58  ;;  %v2228_v58 = vrot.slane %v7059_v8, 1 }
 0x193   :  { %v6490_v55 = vpop.f32.mrb[91].mxu0  ;;  %3964 = vst.msk [vmem:[#allocation3 + $0x40] sm:$0xff] %vm2015_vm6, %v3894_v53  ;;  %v2224_v53 = vrot.slane %v7055_v52, 1  ;;  %v4179_v52 = vsel %vm2212_vm3, %v8292_v18, %v8318_v9 }
 0x194   :  { %v7056_v55 = vld [vmem:[#allocation2 + $0x38] sm:$0xff]   ;;  %2290 = vst.msk [vmem:[#allocation3 + $0xa8] sm:$0xff] %vm1549_vm5, %v2223_v3  ;;  %4241 = vst.msk [vmem:[#allocation3 + $0x188] sm:$0xff] %vm1549_vm5, %v4179_v52 }
 0x195   :  { %v2225_v40 = vsel %vm2212_vm3, %v2222_v10, %v2224_v53  ;;  %1557 = vst.msk [vmem:[#allocation3 + $0x118] sm:$0xff] %vm1549_vm5, %v7056_v55  ;;  %v7062_v55 = vld [vmem:[#allocation2 + $0x50] sm:$0xff]  }
 0x196   :  { %v8297_v6 = vpop.f32.mrb[92].mxu0  ;;  %2291 = vst.msk [vmem:[#allocation3 + $0xd0] sm:$0xff] %vm1549_vm5, %v2225_v40  ;;  %v536_v40 = vadd.f32 %v8334_v5, %v8246_v17  ;;  %1560 = vst.msk [vmem:[#allocation3 + $0x190] sm:$0xff] %vm1549_vm5, %v7062_v55 }
 0x197   :  { %v6493_v46 = vpop.f32.mrb[93].mxu0 }
 0x19a   :  { %v8307_v34 = vpop.f32.mrb[94].mxu0  ;;  %v4264_v14 = vld [vmem:[#allocation3 + $0x40] sm:$0xff] }
 0x19b   :  { %v6496_v62 = vpop.f32.mrb[95].mxu0  ;;  %5175 = vmatprep.mubr.bf16.mxu1 %v4264_v14  ;;  %v7061_v14 = vld [vmem:[#allocation2 + $0x48] sm:$0xff]  }
 0x19c   :  { %5176 = vmatmul.mubr.bf16.vlgmr.msra.gmra.mrb[0].mxu1 %v4263_v22  ;;  %v2227_v22 = vsel %vm2212_vm3, %v2224_v53, %v2226_v50  ;;  %v653_v62 = vmax.f32 %v526_v28, 0.0  ;;  %v2229_v53 = vsel %vm2212_vm3, %v2226_v50, %v2228_v58 }
 0x19d   :  { %v916_v31 = vpop.permute.xlu0 %915  ;;  %5375 = vmatpush1.bf16.msra.mxu1 %v6905_v59  ;;  %v6957_v59 = vld [vmem:[%s9211_s4 + $0x90] ss:$8 sps:$4 sm:$0xff]   ;;  %2292 = vst.msk [vmem:[#allocation3 + $0xf8] sm:$0xff] %vm1549_vm5, %v2227_v22  ;;  %2293 = vst.msk [vmem:[#allocation3 + $0x120] sm:$0xff] %vm1549_vm5, %v2229_v53  ;;  %v7066_v22 = vld [vmem:[#allocation2 + $0x60] sm:$0xff]   ;;  %v531_v53 = vadd.f32 %v8334_v5, %v8237_v11 }
 0x19e   :  { %v8326_v37 = vpop.f32.mrb[96].mxu0  ;;  %v1050_v46 = vmul.f32 %v916_v31, %v651_v13  ;;  %5376 = vmatprep.subr.bf16.mxu1 %v6942_v20  ;;  %v6959_v13 = vld [vmem:[%s9211_s4 + $0x94] ss:$8 sps:$4 sm:$0xff]   ;;  %1562 = vst.msk [vmem:[#allocation3 + $0x1e0] sm:$0xff] %vm1549_vm5, %v7066_v22 }
 0x19f   :  { %v6499_v12 = vpop.f32.mrb[97].mxu0  ;;  %4910 = vmatprep.subr.bf16.mxu0 %v6959_v13  ;;  %v7064_v31 = vld [vmem:[#allocation2 + $0x58] sm:$0xff]   ;;  %v654_v11 = vmax.f32 %v531_v53, 0.0 }
 0x1a0   :  { %v6264_v20 = vpack.c.bf16 %v1050_v46, %v1050_v46  ;;  %4911 = vmatpush1.bf16.msra.mxu0 %v6957_v59  ;;  %v7065_v46 = vld [vmem:[#allocation2 + $0x58] sm:$0xff]   ;;  %1561 = vst.msk [vmem:[#allocation3 + $0x1b8] sm:$0xff] %vm1549_vm5, %v7064_v31 }
 0x1a1   :  { %v3218_v10 = vpop.permute.xlu0 %3217  ;;  %5377 = vmatpush1.bf16.msra.mxu1 %v6940_v51  ;;  %v2230_v51 = vrot.slane %v7061_v14, 1 }
 0x1a2   :  { %v8346_v32 = vpop.f32.mrb[98].mxu0  ;;  %1337 = vst.msk [vmem:[#allocation2 + $0x94] sm:$0xf] %vm1299_vm2, %v6264_v20  ;;  %v652_v20 = vmax.f32 %v521_v19, 0.0 }
 0x1a3   :  { %3286 = vst.msk [vmem:[#allocation3 + $0x88] sm:$0xff] %vm2015_vm6, %v3218_v10  ;;  %v6502_v0 = vpop.f32.mrb[99].mxu0  ;;  %v911_v3 = vpop.permute.xlu1 %910  ;;  %v2231_v59 = vsel %vm2212_vm3, %v2228_v58, %v2230_v51  ;;  %v2233_v17 = vsel %vm2212_vm3, %v2230_v51, %v2232_v1  ;;  %v655_v10 = vmax.f32 %v536_v40, 0.0  ;;  %v7068_v51 = vld [vmem:[#allocation2 + $0x68] sm:$0xff]  }
 0x1a4   :  { %v1049_v18 = vmul.f32 %v911_v3, %v650_v45  ;;  %2294 = vst.msk [vmem:[#allocation3 + $0x148] sm:$0xff] %vm1549_vm5, %v2231_v59  ;;  %v2234_v45 = vrot.slane %v7065_v46, 1  ;;  %2295 = vst.msk [vmem:[#allocation3 + $0x170] sm:$0xff] %vm1549_vm5, %v2233_v17 }
 0x1a5   :  { %v926_v50 = vpop.permute.xlu0 %925  ;;  %1563 = vst.msk [vmem:[#allocation3 + $0x208] sm:$0xff] %vm1549_vm5, %v7068_v51 }
 0x1a6   :  { %v8362_v39 = vpop.f32.mrb[100].mxu0  ;;  %v6263_v12 = vpack.c.bf16 %v1049_v18, %v1049_v18  ;;  %v1052_v13 = vmul.f32 %v926_v50, %v653_v62  ;;  %v2235_v58 = vsel %vm2212_vm3, %v2232_v1, %v2234_v45  ;;  %v7067_v62 = vld [vmem:[#allocation2 + $0x60] sm:$0xff]  }
 0x1a7   :  { %v6505_v28 = vpop.f32.mrb[101].mxu0  ;;  %v3896_v8 = vpop.permute.xlu1 %3895  ;;  %2296 = vst.msk [vmem:[#allocation3 + $0x198] sm:$0xff] %vm1549_vm5, %v2235_v58  ;;  %v2236_v19 = vrot.slane %v7067_v62, 1  ;;  %v4268_v1 = vld [vmem:[#allocation3 + $0x60] sm:$0xff]  ;;  %v541_v62 = vadd.f32 %v8334_v5, %v8249_v2 }
 0x1a8   :  { %1336 = vst.msk [vmem:[#allocation2 + $0x90] sm:$0xf] %vm1299_vm2, %v6263_v12  ;;  %v6266_v41 = vpack.c.bf16 %v1052_v13, %v1052_v13  ;;  %v8384_v12 = vld [vmem:[#allocation2 + $0x68] sm:$0xff]   ;;  %v546_v13 = vadd.f32 %v8334_v5, %v8251_v24  ;;  %v3811_v24 = vshrl.u32 %v8225_v38, 16 }
 0x1a9   :  { %3965 = vst.msk [vmem:[#allocation3 + $0x68] sm:$0xff] %vm2015_vm6, %v3896_v8  ;;  %v3220_v0 = vpop.permute.xlu0 %3219  ;;  %v2237_v46 = vsel %vm2212_vm3, %v2234_v45, %v2236_v19 }
 0x1aa   :  { %v8371_v52 = vpop.f32.mrb[102].mxu0  ;;  %1339 = vst.msk [vmem:[#allocation2 + $0x9c] sm:$0xf] %vm1299_vm2, %v6266_v41  ;;  %v657_v38 = vmax.f32 %v546_v13, 0.0  ;;  %v3813_v53 = vor.u32 %v3811_v24, %v8235_v63 }
 0x1ab   :  { %v6508_v14 = vpop.f32.mrb[103].mxu0  ;;  %3287 = vst.msk [vmem:[#allocation3 + $0xb0] sm:$0xff] %vm2015_vm6, %v3220_v0  ;;  %v921_v3 = vpop.permute.xlu1 %920 }
 0x1ac   :  { %v1051_v55 = vmul.f32 %v921_v3, %v652_v20  ;;  %2297 = vst.msk [vmem:[#allocation3 + $0x1c0] sm:$0xff] %vm1549_vm5, %v2237_v46  ;;  %v2238_v20 = vrot.slane %v8384_v12, 1  ;;  %v6971_v14 = vld [vmem:[%s9211_s4 + $0xa0] ss:$8 sps:$4 sm:$0xff]   ;;  %v6973_v46 = vld [vmem:[%s9211_s4 + $0xa4] ss:$8 sps:$4 sm:$0xff]  }
 0x1ad   :  { %v936_v31 = vpop.permute.xlu0 %935  ;;  %4912 = vmatprep.subr.bf16.mxu0 %v6973_v46  ;;  %v551_v46 = vadd.f32 %v8334_v5, %v8263_v47  ;;  %v6986_v47 = vld [vmem:[%s9211_s4 + $0xb0] ss:$8 sps:$4 sm:$0xff]  }
 0x1ae   :  { %v8381_v18 = vpop.f32.mrb[104].mxu0  ;;  %v6265_v4 = vpack.c.bf16 %v1051_v55, %v1051_v55  ;;  %v1054_v50 = vmul.f32 %v936_v31, %v655_v10  ;;  %v2239_v51 = vsel %vm2212_vm3, %v2236_v19, %v2238_v20  ;;  %v2870_v19 = vshrl.u32 %v8210_v25, 16  ;;  %4913 = vmatpush1.bf16.msra.mxu0 %v6971_v14 }
 0x1af   :  { %v6511_v40 = vpop.f32.mrb[105].mxu0  ;;  %v3898_v28 = vpop.permute.xlu1 %3897  ;;  %v8392_v8 = vld [vmem:[#allocation2 + $0x8c] sm:$0xff]   ;;  %2298 = vst.msk [vmem:[#allocation3 + $0x1e8] sm:$0xff] %vm1549_vm5, %v2239_v51 }
 0x1b0   :  { %v4269_v59 = vld [vmem:[#allocation3 + $0x68] sm:$0xff]  ;;  %1338 = vst.msk [vmem:[#allocation2 + $0x98] sm:$0xf] %vm1299_vm2, %v6265_v4  ;;  %v6268_v17 = vpack.c.bf16 %v1054_v50, %v1054_v50  ;;  %v3193_v58 = vrot.slane %v8392_v8, 1 }
 0x1b1   :  { %3966 = vst.msk [vmem:[#allocation3 + $0x90] sm:$0xff] %vm2015_vm6, %v3898_v28  ;;  %5183 = vmatprep.mubr.bf16.mxu1 %v4269_v59  ;;  %v8394_v45 = vld [vmem:[#allocation2 + $0x90] sm:$0xff]   ;;  %v3222_v10 = vpop.permute.xlu0 %3221 }
 0x1b2   :  { %5184 = vmatmul.mubr.bf16.gmra.mrb[4].mxu1 %v4268_v1  ;;  %v8398_v22 = vpop.f32.mrb[106].mxu0  ;;  %v8400_v41 = vld [vmem:[#allocation2 + $0x8c] sm:$0xff]   ;;  %v3815_v0 = vshll.u32 %v8394_v45, 16  ;;  %1341 = vst.msk [vmem:[#allocation2 + $0xa4] sm:$0xf] %vm1299_vm2, %v6268_v17  ;;  %v3194_v31 = vsel %vm2212_vm3, %v3191_v33, %v3193_v58  ;;  %v556_v1 = vadd.f32 %v8334_v5, %v8273_v29 }
 0x1b3   :  { %3288 = vst.msk [vmem:[#allocation3 + $0xd8] sm:$0xff] %vm2015_vm6, %v3222_v10  ;;  %v931_v3 = vpop.permute.xlu1 %930  ;;  %v6514_v55 = vpop.f32.mrb[107].mxu0  ;;  %v2874_v2 = vshll.u32 %v8400_v41, 16  ;;  %3241 = vrot.lane.b32.xlu0 %v3194_v31, %s7127_s21  ;;  %v6974_v50 = vld [vmem:[#allocation2 + $0x90] sm:$0xff]  }
 0x1b4   :  { %v1053_v4 = vmul.f32 %v931_v3, %v654_v11  ;;  %v3817_v40 = vrot.slane %v3815_v0, 1  ;;  %v6979_v11 = vld [vmem:[%s9211_s4 + $0x224] ss:$8 sps:$4 sm:$0xff]   ;;  %v2872_v0 = vor.u32 %v2870_v19, %v8233_v44  ;;  %3514 = vst.msk [vmem:[#allocation3 + $0x270] sm:$0xff] %vm1549_vm5, %v6974_v50  ;;  %v659_v31 = vmax.f32 %v556_v1, 0.0 }
 0x1b5   :  { %v946_v28 = vpop.permute.xlu0 %945  ;;  %v4273_v10 = vld [vmem:[#allocation3 + $0x88] sm:$0xff]  ;;  %v2876_v3 = vrot.slane %v2874_v2, 1  ;;  %5378 = vmatprep.subr.bf16.mxu1 %v6979_v11  ;;  %v2878_v50 = vshrl.u32 %v8400_v41, 16  ;;  %v6988_v41 = vld [vmem:[%s9211_s4 + $0xb4] ss:$8 sps:$4 sm:$0xff]  }
 0x1b6   :  { %v8426_v63 = vpop.f32.mrb[108].mxu0  ;;  %v6267_v33 = vpack.c.bf16 %v1053_v4, %v1053_v4  ;;  %v3818_v59 = vsel %vm1746_vm4, %v3813_v53, %v3817_v40  ;;  %v1056_v17 = vmul.f32 %v946_v28, %v657_v38  ;;  %v656_v53 = vmax.f32 %v541_v62, 0.0  ;;  %5379 = vmatpush1.bf16.msra.mxu1 %v6977_v30  ;;  %4914 = vmatprep.subr.bf16.mxu0 %v6988_v41 }
 0x1b7   :  { %v6517_v13 = vpop.f32.mrb[109].mxu0  ;;  %v3900_v25 = vpop.permute.xlu1 %3899  ;;  %3919 = vrot.lane.b32.xlu1 %v3818_v59, %s7127_s21  ;;  %v8443_v29 = vld [vmem:[#allocation2 + $0x94] sm:$0xff]   ;;  %v2877_v51 = vsel %vm1746_vm4, %v2872_v0, %v2876_v3  ;;  %v3819_v62 = vshrl.u32 %v8394_v45, 16  ;;  %4915 = vmatpush1.bf16.msra.mxu0 %v6986_v47 }
 0x1b8   :  { %v4274_v24 = vld [vmem:[#allocation3 + $0x90] sm:$0xff]  ;;  %1340 = vst.msk [vmem:[#allocation2 + $0xa0] sm:$0xf] %vm1299_vm2, %v6267_v33  ;;  %v6270_v55 = vpack.c.bf16 %v1056_v17, %v1056_v17  ;;  %v3195_v14 = vrot.slane %v8443_v29, 1  ;;  %v2880_v13 = vor.u32 %v2878_v50, %v2876_v3 }
 0x1b9   :  { %3967 = vst.msk [vmem:[#allocation3 + $0xb8] sm:$0xff] %vm2015_vm6, %v3900_v25  ;;  %5191 = vmatprep.mubr.bf16.mxu1 %v4274_v24  ;;  %v8445_v38 = vld [vmem:[#allocation2 + $0x98] sm:$0xff]   ;;  %v3224_v4 = vpop.permute.xlu0 %3223  ;;  %v3821_v59 = vor.u32 %v3819_v62, %v3817_v40 }
 0x1ba   :  { %5192 = vmatmul.mubr.bf16.gmra.mrb[8].mxu1 %v4273_v10  ;;  %v8448_v44 = vld [vmem:[#allocation2 + $0x94] sm:$0xff]   ;;  %v3823_v2 = vshll.u32 %v8445_v38, 16  ;;  %2981 = vst.msk [vmem:[#allocation3 + $0x268] sm:$0xff] %vm1549_vm5, %v2877_v51  ;;  %v3196_v45 = vsel %vm2212_vm3, %v3193_v58, %v3195_v14  ;;  %v566_v58 = vadd.f32 %v8334_v5, %v8307_v34 }
 0x1bb   :  { %1343 = vst.msk [vmem:[#allocation2 + $0xac] sm:$0xf] %vm1299_vm2, %v6270_v55  ;;  %v941_v19 = vpop.permute.xlu1 %940  ;;  %v2882_v33 = vshll.u32 %v8448_v44, 16  ;;  %v6983_v30 = vld [vmem:[#allocation2 + $0x98] sm:$0xff]   ;;  %3243 = vrot.lane.b32.xlu0 %v3196_v45, %s7127_s21 }
 0x1bc   :  { %3289 = vst.msk [vmem:[#allocation3 + $0x100] sm:$0xff] %vm2015_vm6, %v3224_v4  ;;  %v1055_v28 = vmul.f32 %v941_v19, %v656_v53  ;;  %v3825_v1 = vrot.slane %v3823_v2, 1  ;;  %v4278_v0 = vld [vmem:[#allocation3 + $0xb0] sm:$0xff]  ;;  %v658_v53 = vmax.f32 %v551_v46, 0.0  ;;  %v3827_v2 = vshrl.u32 %v8445_v38, 16 }
 0x1bd   :  { %v2884_v11 = vrot.slane %v2882_v33, 1  ;;  %v956_v25 = vpop.permute.xlu0 %955  ;;  %3515 = vst.msk [vmem:[#allocation3 + $0x298] sm:$0xff] %vm1549_vm5, %v6983_v30  ;;  %v561_v46 = vadd.f32 %v8334_v5, %v8297_v6  ;;  %v2886_v33 = vshrl.u32 %v8448_v44, 16 }
 0x1be   :  { %v6269_v17 = vpack.c.bf16 %v1055_v28, %v1055_v28  ;;  %v3826_v8 = vsel %vm1746_vm4, %v3821_v59, %v3825_v1  ;;  %v1058_v40 = vmul.f32 %v956_v25, %v659_v31  ;;  %v661_v31 = vmax.f32 %v566_v58, 0.0 }
 0x1bf   :  { %v3902_v24 = vpop.permute.xlu1 %3901  ;;  %3921 = vrot.lane.b32.xlu1 %v3826_v8, %s7127_s21  ;;  %v2885_v3 = vsel %vm1746_vm4, %v2880_v13, %v2884_v11  ;;  %v6890_v29 = vld [vmem:[#allocation2 + $0x9c] sm:$0xff]   ;;  %v3829_v30 = vor.u32 %v3827_v2, %v3825_v1  ;;  %v2888_v38 = vor.u32 %v2886_v33, %v2884_v11  ;;  %v576_v8 = vadd.f32 %v8334_v5, %v8346_v32 }
 0x1c0   :  { %v4279_v10 = vld [vmem:[#allocation3 + $0xb8] sm:$0xff]  ;;  %1342 = vst.msk [vmem:[#allocation2 + $0xa8] sm:$0xf] %vm1299_vm2, %v6269_v17  ;;  %v6272_v34 = vpack.c.bf16 %v1058_v40, %v1058_v40  ;;  %v3197_v62 = vrot.slane %v6890_v29, 1 }
 0x1c1   :  { %3968 = vst.msk [vmem:[#allocation3 + $0xe0] sm:$0xff] %vm2015_vm6, %v3902_v24  ;;  %5201 = vmatprep.mubr.bf16.mxu1 %v4279_v10  ;;  %v6892_v55 = vld [vmem:[#allocation2 + $0xa0] sm:$0xff]   ;;  %v3226_v4 = vpop.permute.xlu0 %3225  ;;  %v660_v24 = vmax.f32 %v561_v46, 0.0 }
 0x1c2   :  { %2982 = vst.msk [vmem:[#allocation3 + $0x290] sm:$0xff] %vm1549_vm5, %v2885_v3  ;;  %5202 = vmatmul.mubr.bf16.gmra.mrb[12].mxu1 %v4278_v0  ;;  %v6980_v51 = vld [vmem:[#allocation2 + $0x9c] sm:$0xff]   ;;  %v3831_v19 = vshll.u32 %v6892_v55, 16  ;;  %v3198_v59 = vsel %vm2212_vm3, %v3195_v14, %v3197_v62 }
 0x1c3   :  { %1345 = vst.msk [vmem:[#allocation2 + $0xb4] sm:$0xf] %vm1299_vm2, %v6272_v34  ;;  %v951_v50 = vpop.permute.xlu1 %950  ;;  %v2890_v28 = vshll.u32 %v6980_v51, 16  ;;  %v6992_v47 = vld [vmem:[#allocation2 + $0xa0] sm:$0xff]   ;;  %3245 = vrot.lane.b32.xlu0 %v3198_v59, %s7127_s21  ;;  %v3835_v34 = vshrl.u32 %v6892_v55, 16 }
 0x1c4   :  { %3290 = vst.msk [vmem:[#allocation3 + $0x128] sm:$0xff] %vm2015_vm6, %v3226_v4  ;;  %v1057_v45 = vmul.f32 %v951_v50, %v658_v53  ;;  %v3833_v13 = vrot.slane %v3831_v19, 1  ;;  %v4283_v1 = vld [vmem:[#allocation3 + $0xd8] sm:$0xff]  ;;  %v663_v53 = vmax.f32 %v576_v8, 0.0  ;;  %v2894_v19 = vshrl.u32 %v6980_v51, 16 }
 0x1c5   :  { %v2892_v41 = vrot.slane %v2890_v28, 1  ;;  %v966_v25 = vpop.permute.xlu0 %965  ;;  %3516 = vst.msk [vmem:[#allocation3 + $0x2c0] sm:$0xff] %vm1549_vm5, %v6992_v47  ;;  %v7001_v55 = vld [vmem:[%s9211_s4 + $0xc0] ss:$8 sps:$4 sm:$0xff]   ;;  %v7003_v51 = vld [vmem:[%s9211_s4 + $0xc4] ss:$8 sps:$4 sm:$0xff]  }
 0x1c6   :  { %v6271_v17 = vpack.c.bf16 %v1057_v45, %v1057_v45  ;;  %v3834_v6 = vsel %vm1746_vm4, %v3829_v30, %v3833_v13  ;;  %v1060_v44 = vmul.f32 %v966_v25, %v661_v31  ;;  %v571_v31 = vadd.f32 %v8334_v5, %v8326_v37  ;;  %4916 = vmatprep.subr.bf16.mxu0 %v7003_v51 }
 0x1c7   :  { %v3904_v58 = vpop.permute.xlu1 %3903  ;;  %3923 = vrot.lane.b32.xlu1 %v3834_v6, %s7127_s21  ;;  %v2893_v40 = vsel %vm1746_vm4, %v2888_v38, %v2892_v41  ;;  %v8495_v11 = vld [vmem:[#allocation2 + $0xa4] sm:$0xff]   ;;  %v3837_v28 = vor.u32 %v3835_v34, %v3833_v13  ;;  %v2896_v30 = vor.u32 %v2894_v19, %v2892_v41  ;;  %4917 = vmatpush1.bf16.msra.mxu0 %v7001_v55 }
 0x1c8   :  { %v4284_v14 = vld [vmem:[#allocation3 + $0xe0] sm:$0xff]  ;;  %1344 = vst.msk [vmem:[#allocation2 + $0xb0] sm:$0xf] %vm1299_vm2, %v6271_v17  ;;  %v6274_v32 = vpack.c.bf16 %v1060_v44, %v1060_v44  ;;  %v3199_v29 = vrot.slane %v8495_v11, 1  ;;  %v662_v44 = vmax.f32 %v571_v31, 0.0 }
 0x1c9   :  { %3969 = vst.msk [vmem:[#allocation3 + $0x108] sm:$0xff] %vm2015_vm6, %v3904_v58  ;;  %5209 = vmatprep.mubr.bf16.mxu1 %v4284_v14  ;;  %v8497_v10 = vld [vmem:[#allocation2 + $0xa8] sm:$0xff]   ;;  %v3228_v3 = vpop.permute.xlu0 %3227 }
 0x1ca   :  { %2983 = vst.msk [vmem:[#allocation3 + $0x2b8] sm:$0xff] %vm1549_vm5, %v2893_v40  ;;  %5210 = vmatmul.mubr.bf16.gmra.mrb[16].mxu1 %v4283_v1  ;;  %v8500_v0 = vld [vmem:[#allocation2 + $0xa4] sm:$0xff]   ;;  %v3839_v4 = vshll.u32 %v8497_v10, 16  ;;  %v3200_v33 = vsel %vm2212_vm3, %v3197_v62, %v3199_v29  ;;  %v586_v62 = vadd.f32 %v8334_v5, %v8371_v52 }
 0x1cb   :  { %1347 = vst.msk [vmem:[#allocation2 + $0xbc] sm:$0xf] %vm1299_vm2, %v6274_v32  ;;  %v961_v2 = vpop.permute.xlu1 %960  ;;  %v2898_v46 = vshll.u32 %v8500_v0, 16  ;;  %v6998_v59 = vld [vmem:[#allocation2 + $0xa8] sm:$0xff]   ;;  %3247 = vrot.lane.b32.xlu0 %v3200_v33, %s7127_s21  ;;  %v3843_v32 = vshrl.u32 %v8497_v10, 16 }
 0x1cc   :  { %3291 = vst.msk [vmem:[#allocation3 + $0x150] sm:$0xff] %vm2015_vm6, %v3228_v3  ;;  %v1059_v50 = vmul.f32 %v961_v2, %v660_v24  ;;  %v3841_v45 = vrot.slane %v3839_v4, 1  ;;  %v4288_v41 = vld [vmem:[#allocation3 + $0x100] sm:$0xff]  ;;  %v665_v24 = vmax.f32 %v586_v62, 0.0  ;;  %v2902_v4 = vshrl.u32 %v8500_v0, 16 }
 0x1cd   :  { %v2900_v37 = vrot.slane %v2898_v46, 1  ;;  %v976_v38 = vpop.permute.xlu0 %975  ;;  %3517 = vst.msk [vmem:[#allocation3 + $0x2e8] sm:$0xff] %vm1549_vm5, %v6998_v59 }
 0x1ce   :  { %v6273_v47 = vpack.c.bf16 %v1059_v50, %v1059_v50  ;;  %v3842_v17 = vsel %vm1746_vm4, %v3837_v28, %v3841_v45  ;;  %v1062_v13 = vmul.f32 %v976_v38, %v663_v53  ;;  %v581_v53 = vadd.f32 %v8334_v5, %v8362_v39 }
 0x1cf   :  { %v3906_v25 = vpop.permute.xlu1 %3905  ;;  %3925 = vrot.lane.b32.xlu1 %v3842_v17, %s7127_s21  ;;  %v2901_v8 = vsel %vm1746_vm4, %v2896_v30, %v2900_v37  ;;  %v6901_v58 = vld [vmem:[#allocation2 + $0xac] sm:$0xff]   ;;  %v3845_v46 = vor.u32 %v3843_v32, %v3841_v45  ;;  %v2904_v10 = vor.u32 %v2902_v4, %v2900_v37  ;;  %v596_v30 = vadd.f32 %v8334_v5, %v8398_v22 }
 0x1d0   :  { %v4289_v6 = vld [vmem:[#allocation3 + $0x108] sm:$0xff]  ;;  %1346 = vst.msk [vmem:[#allocation2 + $0xb8] sm:$0xf] %vm1299_vm2, %v6273_v47  ;;  %v6276_v52 = vpack.c.bf16 %v1062_v13, %v1062_v13  ;;  %v3201_v11 = vrot.slane %v6901_v58, 1  ;;  %v664_v38 = vmax.f32 %v581_v53, 0.0 }
 0x1d1   :  { %3970 = vst.msk [vmem:[#allocation3 + $0x130] sm:$0xff] %vm2015_vm6, %v3906_v25  ;;  %5217 = vmatprep.mubr.bf16.mxu1 %v4289_v6  ;;  %v6903_v14 = vld [vmem:[#allocation2 + $0xb0] sm:$0xff]   ;;  %v3230_v40 = vpop.permute.xlu0 %3229  ;;  %v667_v25 = vmax.f32 %v596_v30, 0.0 }
 0x1d2   :  { %2984 = vst.msk [vmem:[#allocation3 + $0x2e0] sm:$0xff] %vm1549_vm5, %v2901_v8  ;;  %5218 = vmatmul.mubr.bf16.gmra.mrb[20].mxu1 %v4288_v41  ;;  %v6995_v1 = vld [vmem:[#allocation2 + $0xac] sm:$0xff]   ;;  %v3847_v3 = vshll.u32 %v6903_v14, 16  ;;  %v3202_v19 = vsel %vm2212_vm3, %v3199_v29, %v3201_v11  ;;  %v3851_v41 = vshrl.u32 %v6903_v14, 16 }
 0x1d3   :  { %1349 = vst.msk [vmem:[#allocation2 + $0xc4] sm:$0xf] %vm1299_vm2, %v6276_v52  ;;  %v971_v34 = vpop.permute.xlu1 %970  ;;  %v2906_v31 = vshll.u32 %v6995_v1, 16  ;;  %v7007_v33 = vld [vmem:[#allocation2 + $0xb0] sm:$0xff]   ;;  %3249 = vrot.lane.b32.xlu0 %v3202_v19, %s7127_s21  ;;  %v2910_v52 = vshrl.u32 %v6995_v1, 16 }
 0x1d4   :  { %3292 = vst.msk [vmem:[#allocation3 + $0x178] sm:$0xff] %vm2015_vm6, %v3230_v40  ;;  %v1061_v2 = vmul.f32 %v971_v34, %v662_v44  ;;  %v3849_v50 = vrot.slane %v3847_v3, 1  ;;  %v4293_v45 = vld [vmem:[#allocation3 + $0x128] sm:$0xff]  ;;  %v591_v44 = vadd.f32 %v8334_v5, %v8381_v18 }
 0x1d5   :  { %v2908_v28 = vrot.slane %v2906_v31, 1  ;;  %v986_v55 = vpop.permute.xlu0 %985  ;;  %3518 = vst.msk [vmem:[#allocation3 + $0x310] sm:$0xff] %vm1549_vm5, %v7007_v33  ;;  %v7016_v1 = vld [vmem:[%s9211_s4 + $0xd0] ss:$8 sps:$4 sm:$0xff]  }
 0x1d6   :  { %v6275_v59 = vpack.c.bf16 %v1061_v2, %v1061_v2  ;;  %v3850_v39 = vsel %vm1746_vm4, %v3845_v46, %v3849_v50  ;;  %v1064_v0 = vmul.f32 %v986_v55, %v665_v24  ;;  %v3853_v3 = vor.u32 %v3851_v41, %v3849_v50  ;;  %v4298_v33 = vld [vmem:[#allocation3 + $0x150] sm:$0xff] }
 0x1d7   :  { %v3908_v51 = vpop.permute.xlu1 %3907  ;;  %3927 = vrot.lane.b32.xlu1 %v3850_v39, %s7127_s21  ;;  %v2909_v47 = vsel %vm1746_vm4, %v2904_v10, %v2908_v28  ;;  %v8542_v37 = vld [vmem:[#allocation2 + $0xb4] sm:$0xff]   ;;  %v2912_v14 = vor.u32 %v2910_v52, %v2908_v28  ;;  %v666_v28 = vmax.f32 %v591_v44, 0.0  ;;  %v336_v39 = vadd.f32 %v8334_v5, %v7624_v43 }
 0x1d8   :  { %v4294_v29 = vld [vmem:[#allocation3 + $0x130] sm:$0xff]  ;;  %1348 = vst.msk [vmem:[#allocation2 + $0xc0] sm:$0xf] %vm1299_vm2, %v6275_v59  ;;  %v6278_v22 = vpack.c.bf16 %v1064_v0, %v1064_v0  ;;  %v3203_v6 = vrot.slane %v8542_v37, 1 }
 0x1d9   :  { %3971 = vst.msk [vmem:[#allocation3 + $0x158] sm:$0xff] %vm2015_vm6, %v3908_v51  ;;  %5227 = vmatprep.mubr.bf16.mxu1 %v4294_v29  ;;  %v6913_v17 = vld [vmem:[#allocation2 + $0xb8] sm:$0xff]   ;;  %v3232_v13 = vpop.permute.xlu0 %3231 }
 0x1da   :  { %2985 = vst.msk [vmem:[#allocation3 + $0x308] sm:$0xff] %vm1549_vm5, %v2909_v47  ;;  %5228 = vmatmul.mubr.bf16.gmra.mrb[24].mxu1 %v4293_v45  ;;  %v8545_v62 = vld [vmem:[#allocation2 + $0xb4] sm:$0xff]   ;;  %v3855_v8 = vshll.u32 %v6913_v17, 16  ;;  %v3204_v32 = vsel %vm2212_vm3, %v3201_v11, %v3203_v6  ;;  %v3859_v45 = vshrl.u32 %v6913_v17, 16  ;;  %v615_v17 = vmax.f32 %v336_v39, 0.0 }
 0x1db   :  { %1351 = vst.msk [vmem:[#allocation2 + $0xcc] sm:$0xf] %vm1299_vm2, %v6278_v22  ;;  %v981_v58 = vpop.permute.xlu1 %980  ;;  %v2914_v40 = vshll.u32 %v8545_v62, 16  ;;  %v7013_v34 = vld [vmem:[#allocation2 + $0xb8] sm:$0xff]   ;;  %3251 = vrot.lane.b32.xlu0 %v3204_v32, %s7127_s21  ;;  %v2918_v43 = vshrl.u32 %v8545_v62, 16 }
 0x1dc   :  { %3293 = vst.msk [vmem:[#allocation3 + $0x1a0] sm:$0xff] %vm2015_vm6, %v3232_v13  ;;  %v1063_v24 = vmul.f32 %v981_v58, %v664_v38  ;;  %v3857_v53 = vrot.slane %v3855_v8, 1  ;;  %v7018_v11 = vld [vmem:[%s9211_s4 + $0xd4] ss:$8 sps:$4 sm:$0xff]   ;;  %v331_v38 = vadd.f32 %v8334_v5, %v7604_v36  ;;  %v341_v58 = vadd.f32 %v8334_v5, %v7641_v49 }
 0x1dd   :  { %v2916_v4 = vrot.slane %v2914_v40, 1  ;;  %v996_v2 = vpop.permute.xlu0 %995  ;;  %3519 = vst.msk [vmem:[#allocation3 + $0x338] sm:$0xff] %vm1549_vm5, %v7013_v34  ;;  %4918 = vmatprep.subr.bf16.mxu0 %v7018_v11 }
 0x1de   :  { %v6277_v31 = vpack.c.bf16 %v1063_v24, %v1063_v24  ;;  %v3858_v18 = vsel %vm1746_vm4, %v3853_v3, %v3857_v53  ;;  %v1066_v19 = vmul.f32 %v996_v2, %v667_v25  ;;  %4919 = vmatpush1.bf16.msra.mxu0 %v7016_v1  ;;  %v3861_v41 = vor.u32 %v3859_v45, %v3857_v53  ;;  %v4303_v53 = vld [vmem:[#allocation3 + $0x178] sm:$0xff] }
 0x1df   :  { %v3910_v46 = vpop.permute.xlu1 %3909  ;;  %3929 = vrot.lane.b32.xlu1 %v3858_v18, %s7127_s21  ;;  %v2917_v10 = vsel %vm1746_vm4, %v2912_v14, %v2916_v4  ;;  %v8567_v59 = vld [vmem:[#allocation2 + $0xbc] sm:$0xff]   ;;  %v2920_v36 = vor.u32 %v2918_v43, %v2916_v4  ;;  %v614_v14 = vmax.f32 %v331_v38, 0.0  ;;  %v346_v1 = vadd.f32 %v8334_v5, %v7657_v56 }
 0x1e0   :  { %v4299_v50 = vld [vmem:[#allocation3 + $0x158] sm:$0xff]  ;;  %1350 = vst.msk [vmem:[#allocation2 + $0xc8] sm:$0xf] %vm1299_vm2, %v6277_v31  ;;  %v6280_v30 = vpack.c.bf16 %v1066_v19, %v1066_v19  ;;  %v3205_v29 = vrot.slane %v8567_v59, 1  ;;  %v616_v31 = vmax.f32 %v341_v58, 0.0 }
 0x1e1   :  { %3972 = vst.msk [vmem:[#allocation3 + $0x180] sm:$0xff] %vm2015_vm6, %v3910_v46  ;;  %5235 = vmatprep.mubr.bf16.mxu1 %v4299_v50  ;;  %v8569_v55 = vld [vmem:[#allocation2 + $0xc0] sm:$0xff]   ;;  %v3234_v51 = vpop.permute.xlu0 %3233  ;;  %v4010_v58 = vld [vmem:[#allocation2 + $0x74] sm:$0xf] }
 0x1e2   :  { %2986 = vst.msk [vmem:[#allocation3 + $0x330] sm:$0xff] %vm1549_vm5, %v2917_v10  ;;  %5236 = vmatmul.mubr.bf16.gmra.mrb[28].mxu1 %v4298_v33  ;;  %v7010_v0 = vld [vmem:[#allocation2 + $0xbc] sm:$0xff]   ;;  %v3863_v47 = vshll.u32 %v8569_v55, 16  ;;  %v3206_v25 = vsel %vm2212_vm3, %v3203_v6, %v3205_v29  ;;  %v3867_v46 = vshrl.u32 %v8569_v55, 16  ;;  %v351_v33 = vadd.f32 %v8334_v5, %v7668_v61  ;;  %v7025_v61 = vld [vmem:[%s9211_s4 + $0x230] ss:$8 sps:$4 sm:$0xff]  }
 0x1e3   :  { %1353 = vst.msk [vmem:[#allocation2 + $0xd4] sm:$0xf] %vm1299_vm2, %v6280_v30  ;;  %v991_v37 = vpop.permute.xlu1 %990  ;;  %v2922_v22 = vshll.u32 %v7010_v0, 16  ;;  %v7022_v44 = vld [vmem:[#allocation2 + $0xc0] sm:$0xff]   ;;  %3253 = vrot.lane.b32.xlu0 %v3206_v25, %s7127_s21  ;;  %v2926_v59 = vshrl.u32 %v7010_v0, 16 }
 0x1e4   :  { %3294 = vst.msk [vmem:[#allocation3 + $0x1c8] sm:$0xff] %vm2015_vm6, %v3234_v51  ;;  %v1065_v13 = vmul.f32 %v991_v37, %v666_v28  ;;  %v3865_v8 = vrot.slane %v3863_v47, 1 }
 0x1e5   :  { %v2924_v52 = vrot.slane %v2922_v22, 1  ;;  %v736_v24 = vpop.permute.xlu0 %735  ;;  %3520 = vst.msk [vmem:[#allocation3 + $0x360] sm:$0xff] %vm1549_vm5, %v7022_v44  ;;  %v4308_v44 = vld [vmem:[#allocation3 + $0x1a0] sm:$0xff] }
 0x1e6   :  { %v6279_v40 = vpack.c.bf16 %v1065_v13, %v1065_v13  ;;  %v3866_v32 = vsel %vm1746_vm4, %v3861_v41, %v3865_v8  ;;  %v1014_v62 = vmul.f32 %v736_v24, %v615_v17  ;;  %v3869_v51 = vor.u32 %v3867_v46, %v3865_v8  ;;  %v7031_v24 = vld [vmem:[%s9211_s4 + $0xe0] ss:$8 sps:$4 sm:$0xff]   ;;  %v7041_v46 = vld [vmem:[%s9211_s4 + $0xf4] ss:$8 sps:$4 sm:$0xff]  }
 0x1e7   :  { %v3912_v3 = vpop.permute.xlu1 %3911  ;;  %3931 = vrot.lane.b32.xlu1 %v3866_v32, %s7127_s21  ;;  %v2925_v34 = vsel %vm1746_vm4, %v2920_v36, %v2924_v52  ;;  %v8591_v49 = vld [vmem:[#allocation2 + $0xc4] sm:$0xff]   ;;  %v2928_v55 = vor.u32 %v2926_v59, %v2924_v52  ;;  %v617_v41 = vmax.f32 %v346_v1, 0.0  ;;  %v618_v8 = vmax.f32 %v351_v33, 0.0 }
 0x1e8   :  { %v4304_v6 = vld [vmem:[#allocation3 + $0x180] sm:$0xff]  ;;  %1352 = vst.msk [vmem:[#allocation2 + $0xd0] sm:$0xf] %vm1299_vm2, %v6279_v40  ;;  %v6228_v2 = vpack.c.bf16 %v1014_v62, %v1014_v62  ;;  %v3207_v19 = vrot.slane %v8591_v49, 1 }
 0x1e9   :  { %3973 = vst.msk [vmem:[#allocation3 + $0x1a8] sm:$0xff] %vm2015_vm6, %v3912_v3  ;;  %5243 = vmatprep.mubr.bf16.mxu1 %v4304_v6  ;;  %v6924_v4 = vld [vmem:[#allocation2 + $0xc8] sm:$0xff]   ;;  %v741_v11 = vpop.permute.xlu0 %740  ;;  %v4009_v6 = vld [vmem:[#allocation2 + $0x70] sm:$0xf] }
 0x1ea   :  { %2987 = vst.msk [vmem:[#allocation3 + $0x358] sm:$0xff] %vm1549_vm5, %v2925_v34  ;;  %5244 = vmatmul.mubr.bf16.gmra.mrb[32].mxu1 %v4303_v53  ;;  %v8594_v18 = vld [vmem:[#allocation2 + $0xc4] sm:$0xff]   ;;  %v3871_v50 = vshll.u32 %v6924_v4, 16  ;;  %v1015_v10 = vmul.f32 %v741_v11, %v616_v31  ;;  %v3208_v56 = vsel %vm2212_vm3, %v3205_v29, %v3207_v19  ;;  %v7027_v29 = vld [vmem:[%s9211_s4 + $0x234] ss:$8 sps:$4 sm:$0xff]   ;;  %v3875_v52 = vshrl.u32 %v6924_v4, 16 }
 0x1eb   :  { %1301 = vst.msk [vmem:[#allocation2 + $0x4] sm:$0xf] %vm1299_vm2, %v6228_v2  ;;  %v731_v28 = vpop.permute.xlu1 %730  ;;  %v2930_v39 = vshll.u32 %v8594_v18, 16  ;;  %3255 = vrot.lane.b32.xlu0 %v3208_v56, %s7127_s21  ;;  %v7030_v5 = vld [vmem:[#allocation2 + $0xc8] sm:$0xff]   ;;  %5380 = vmatprep.subr.bf16.mxu1 %v7027_v29  ;;  %v7095_v34 = vld [vmem:[%s9212_s2] ss:$0 sm:$0xff]  ;;  %v6117_v2 = vcombine.low %v4009_v6, %v4010_v58 }
 0x1ec   :  { %v1013_v30 = vmul.f32 %v731_v28, %v614_v14  ;;  %v3873_v45 = vrot.slane %v3871_v50, 1  ;;  %v6229_v47 = vpack.c.bf16 %v1015_v10, %v1015_v10  ;;  %3521 = vst.msk [vmem:[#allocation3 + $0x388] sm:$0xff] %vm1549_vm5, %v7030_v5  ;;  %5381 = vmatpush1.bf16.msra.mxu1 %v7025_v61  ;;  %v7033_v3 = vld [vmem:[%s9211_s4 + $0xe4] ss:$8 sps:$4 sm:$0xff]   ;;  %v601_v14 = vadd.f32 %v7095_v34, %v8426_v63  ;;  %v8641_v11 = vld [vmem:[#allocation2 + $0x18] sm:$0xff]  }
 0x1ed   :  { %v8608_v38 = vrot.slane %v2930_v39, 1  ;;  %v3236_v37 = vpop.permute.xlu0 %3235  ;;  %4920 = vmatprep.subr.bf16.mxu0 %v7033_v3  ;;  %v7039_v63 = vld [vmem:[%s9211_s4 + $0xf0] ss:$8 sps:$4 sm:$0xff]  }
 0x1ee   :  { %v6227_v0 = vpack.c.bf16 %v1013_v30, %v1013_v30  ;;  %v3874_v43 = vsel %vm1746_vm4, %v3869_v51, %v3873_v45  ;;  %1302 = vst.msk [vmem:[#allocation2 + $0x8] sm:$0xf] %vm1299_vm2, %v6229_v47  ;;  %v3877_v4 = vor.u32 %v3875_v52, %v3873_v45  ;;  %4921 = vmatpush1.bf16.msra.mxu0 %v7031_v24  ;;  %v4012_v30 = vld [vmem:[#allocation2 + $0x7c] sm:$0xf]  ;;  %v668_v56 = vmax.f32 %v601_v14, 0.0  ;;  %v4313_v51 = vld [vmem:[#allocation3 + $0x1c8] sm:$0xff] }
 0x1ef   :  { %3295 = vst.msk [vmem:[#allocation3 + $0x1f0] sm:$0xff] %vm2015_vm6, %v3236_v37  ;;  %v3914_v22 = vpop.permute.xlu1 %3913  ;;  %3933 = vrot.lane.b32.xlu1 %v3874_v43, %s7127_s21  ;;  %v2933_v25 = vsel %vm1746_vm4, %v2928_v55, %v8608_v38  ;;  %v8625_v17 = vld [vmem:[#allocation2 + $0xd0] sm:$0xff]   ;;  %4922 = vmatprep.subr.bf16.mxu0 %v7041_v46  ;;  %v8658_v45 = vrot.slane %v6117_v2, 1  ;;  %v1771_v47 = vshll.u32 %v8641_v11, 16  ;;  %v4011_v5 = vld [vmem:[#allocation2 + $0x78] sm:$0xf] }
 0x1f0   :  { %v4309_v13 = vld [vmem:[#allocation3 + $0x1a8] sm:$0xff]  ;;  %1300 = vst.msk [vmem:[#allocation2] sm:$0xf] %vm1299_vm2, %v6227_v0  ;;  %v3879_v40 = vshll.u32 %v8625_v17, 16  ;;  %v2934_v37 = vshrl.u32 %v8594_v18, 16  ;;  %v6118_v58 = vcombine.low %v4011_v5, %v4012_v30 }
 0x1f1   :  { %3974 = vst.msk [vmem:[#allocation3 + $0x1d0] sm:$0xff] %vm2015_vm6, %v3914_v22  ;;  %5253 = vmatprep.mubr.bf16.mxu1 %v4309_v13  ;;  %v751_v36 = vpop.permute.xlu0 %750  ;;  %v7045_v61 = vld [vmem:[#allocation2 + $0xd0] sm:$0xff]   ;;  %v7043_v43 = vld [vmem:[#allocation2 + $0xcc] ss:$0 sps:$4 sm:$0x11]   ;;  %v4181_v52 = vsel %vm2212_vm3, %v8318_v9, %v8658_v45  ;;  %v8695_v30 = vrot.slane %v1771_v47, 1 }
 0x1f2   :  { %2988 = vst.msk [vmem:[#allocation3 + $0x380] sm:$0xff] %vm1549_vm5, %v2933_v25  ;;  %5254 = vmatmul.mubr.bf16.gmra.mrb[36].mxu1 %v4308_v44  ;;  %v1017_v32 = vmul.f32 %v751_v36, %v618_v8  ;;  %v8639_v31 = vrot.slane %v3879_v40, 1  ;;  %4923 = vmatpush1.bf16.msra.mxu0 %v7039_v63  ;;  %3522 = vst.msk [vmem:[#allocation3 + $0x3b0] sm:$0xff] %vm1549_vm5, %v7045_v61  ;;  %v7096_v13 = vld [vmem:[%s9211_s4 + $0x104] ss:$8 sps:$4 sm:$0xff]   ;;  %v7070_v25 = vld [vmem:[#allocation2 + $0x70] sm:$0xff]   ;;  %v2936_v8 = vor.u32 %v2934_v37, %v8608_v38 }
 0x1f3   :  { %v746_v62 = vpop.permute.xlu1 %745  ;;  %5133 = vmatprep.subr.bf16.mxu0 %v7096_v13  ;;  %v2938_v18 = vshll.u32 %v7043_v43, 16  ;;  %v8670_v44 = vld [vmem:[#allocation2 + $0x70] sm:$0xff]   ;;  %v4014_v36 = vld [vmem:[#allocation2 + $0x84] sm:$0xf]  ;;  %1564 = vst.msk [vmem:[#allocation3 + $0x230] sm:$0xff] %vm1549_vm5, %v7070_v25  ;;  %4242 = vst.msk [vmem:[#allocation3 + $0x1b0] sm:$0xff] %vm1549_vm5, %v4181_v52 }
 0x1f4   :  { %v1016_v53 = vmul.f32 %v746_v62, %v617_v41  ;;  %v6231_v1 = vpack.c.bf16 %v1017_v32, %v1017_v32  ;;  %v3882_v10 = vsel %vm1746_vm4, %v3877_v4, %v8639_v31  ;;  %v4013_v62 = vld [vmem:[#allocation2 + $0x80] sm:$0xf]  ;;  %v2240_v34 = vrot.slane %v8670_v44, 1  ;;  %v4015_v52 = vld [vmem:[#allocation2 + $0x88] sm:$0xf]  ;;  %v7078_v44 = vld [vmem:[#allocation2 + $0x90] sm:$0xff]  }
 0x1f5   :  { %v3238_v33 = vpop.permute.xlu0 %3237  ;;  %3935 = vrot.lane.b32.xlu1 %v3882_v10, %s7127_s21  ;;  %v2940_v32 = vrot.slane %v2938_v18, 1  ;;  %v8709_v18 = vld [vmem:[#allocation2 + $0x20] sm:$0xff]   ;;  %1568 = vst.msk [vmem:[#allocation3 + $0x2d0] sm:$0xff] %vm1549_vm5, %v7078_v44  ;;  %v6966_v44 = vld [vmem:[#allocation2 + $0x48] sm:$0xff]  }
 0x1f6   :  { %v6230_v50 = vpack.c.bf16 %v1016_v53, %v1016_v53  ;;  %1304 = vst.msk [vmem:[#allocation2 + $0x10] sm:$0xf] %vm1299_vm2, %v6231_v1  ;;  %v4318_v24 = vld [vmem:[#allocation3 + $0x1f0] sm:$0xff]  ;;  %v1775_v53 = vshrl.u32 %v8641_v11, 16  ;;  %v8682_v1 = vrot.slane %v6118_v58, 1  ;;  %v8712_v58 = vld [vmem:[#allocation2 + $0x28] sm:$0xff]  }
 0x1f7   :  { %3296 = vst.msk [vmem:[#allocation3 + $0x218] sm:$0xff] %vm2015_vm6, %v3238_v33  ;;  %v3916_v28 = vpop.permute.xlu1 %3915  ;;  %v8654_v39 = vld [vmem:[#allocation2] sm:$0xff]   ;;  %v2941_v2 = vsel %vm1746_vm4, %v2936_v8, %v2940_v32  ;;  %v6119_v33 = vcombine.low %v4013_v62, %v4014_v36  ;;  %v3883_v32 = vshrl.u32 %v8625_v17, 16  ;;  %v1779_v27 = vshll.u32 %v8709_v18, 16 }
 0x1f8   :  { %v4314_v59 = vld [vmem:[#allocation3 + $0x1d0] sm:$0xff]  ;;  %1303 = vst.msk [vmem:[#allocation2 + $0xc] sm:$0xf] %vm1299_vm2, %v6230_v50  ;;  %v7042_v55 = vld [vmem:[#allocation2] sm:$0xff]   ;;  %v1750_v22 = vshll.u32 %v8654_v39, 16  ;;  %v2241_v50 = vsel %vm2212_vm3, %v2238_v20, %v2240_v34  ;;  %v1748_v10 = vshrl.u32 %v8654_v39, 16  ;;  %v4183_v39 = vsel %vm2212_vm3, %v8658_v45, %v8682_v1 }
 0x1f9   :  { %3975 = vst.msk [vmem:[#allocation3 + $0x1f8] sm:$0xff] %vm2015_vm6, %v3916_v28  ;;  %5261 = vmatprep.mubr.bf16.mxu1 %v4314_v59  ;;  %v3240_v0 = vpop.permute.xlu0 %3239  ;;  %v7037_v4 = vld [vmem:[#allocation2] sm:$0xfe]   ;;  %v6943_v28 = vld [vmem:[#allocation2 + $0xcc] ss:$0 sps:$4 sm:$0x11]  }
 0x1fa   :  { %5262 = vmatmul.mubr.bf16.gmra.mrb[40].mxu1 %v4313_v51  ;;  %3297 = vst.msk [vmem:[#allocation3 + $0x240] sm:$0xff] %vm2015_vm6, %v3240_v0  ;;  %v1752_v9 = vrot.slane %v1750_v22, 1  ;;  %v2213_v61 = vrot.slane %v7037_v4, 1  ;;  %v8702_v37 = vrot.slane %v6119_v33, 1  ;;  %v4016_v22 = vld [vmem:[#allocation2 + $0x8c] sm:$0xf] }
 0x1fb   :  { %v1001_v29 = vpop.permute.xlu1 %1000  ;;  %1550 = vst.msk [vmem:[#allocation3] sm:$0xff] %vm1549_vm5, %v7042_v55  ;;  %2989 = vst.msk [vmem:[#allocation3 + $0x3a8] sm:$0xff] %vm1549_vm5, %v2941_v2  ;;  %v7074_v4 = vld [vmem:[#allocation2 + $0x80] sm:$0xff]   ;;  %v6120_v17 = vcombine.low %v4015_v52, %v4016_v22  ;;  %v3885_v2 = vor.u32 %v3883_v32, %v8639_v31 }
 0x1fc   :  { %v1067_v41 = vmul.f32 %v1001_v29, %v668_v56  ;;  %2299 = vst.msk [vmem:[#allocation3 + $0x210] sm:$0xff] %vm1549_vm5, %v2241_v50  ;;  %v1753_v51 = vor.u32 %v1752_v9, %v1748_v10  ;;  %v7072_v29 = vld [vmem:[#allocation2 + $0x78] sm:$0xff]   ;;  %4243 = vst.msk [vmem:[#allocation3 + $0x1d8] sm:$0xff] %vm1549_vm5, %v4183_v39  ;;  %v7076_v50 = vld [vmem:[#allocation2 + $0x88] sm:$0xff]  }
 0x1fd   :  { %v8685_v46 = vld [vmem:[#allocation2 + $0x10] sm:$0xff]   ;;  %1565 = vst.msk [vmem:[#allocation3 + $0x258] sm:$0xff] %vm1549_vm5, %v7072_v29  ;;  %1566 = vst.msk [vmem:[#allocation3 + $0x280] sm:$0xff] %vm1549_vm5, %v7074_v4  ;;  %v7077_v10 = vld [vmem:[#allocation2 + $0x88] sm:$0xff]  }
 0x1fe   :  { %v6281_v40 = vpack.c.bf16 %v1067_v41, %v1067_v41  ;;  %v7046_v0 = vld [vmem:[#allocation2 + $0x10] sm:$0xff]   ;;  %v1763_v12 = vshll.u32 %v8685_v46, 16  ;;  %v4323_v25 = vld [vmem:[#allocation3 + $0x218] sm:$0xff]  ;;  %v3209_v41 = vrot.slane %v6943_v28, 1  ;;  %v1767_v62 = vshrl.u32 %v8685_v46, 16  ;;  %1567 = vst.msk [vmem:[#allocation3 + $0x2a8] sm:$0xff] %vm1549_vm5, %v7076_v50 }
 0x1ff   :  { %v3918_v3 = vpop.permute.xlu1 %3917  ;;  %v6934_v38 = vld [vmem:[#allocation2 + $0xc] sm:$0xff]   ;;  %1552 = vst.msk [vmem:[#allocation3 + $0x50] sm:$0xff] %vm1549_vm5, %v7046_v0  ;;  %v6952_v29 = vld [vmem:[#allocation2 + $0x1c] sm:$0xff]  }
 0x200   :  { %v4319_v6 = vld [vmem:[#allocation3 + $0x1f8] sm:$0xff]  ;;  %1354 = vst.msk [vmem:[#allocation2 + $0xd8] sm:$0xf] %vm1299_vm2, %v6281_v40  ;;  %v6939_v14 = vld [vmem:[#allocation2 + $0x8] sm:$0xff]   ;;  %2478 = vrot.lane.b32.xlu1 %v6934_v38, %s7127_s21  ;;  %v7047_v20 = vld [vmem:[#allocation2 + $0x10] sm:$0xff]   ;;  %v3210_v40 = vsel %vm2212_vm3, %v3207_v19, %v3209_v41  ;;  %v1777_v41 = vor.u32 %v1775_v53, %v8695_v30 }
 0x201   :  { %3976 = vst.msk [vmem:[#allocation3 + $0x220] sm:$0xff] %vm2015_vm6, %v3918_v3  ;;  %5269 = vmatprep.mubr.bf16.mxu1 %v4319_v6  ;;  %v1755_v63 = vshll.u32 %v6939_v14, 16  ;;  %v7038_v59 = vld [vmem:[#allocation2 + $0x8] sm:$0xff]   ;;  %v1759_v8 = vshrl.u32 %v6939_v14, 16  ;;  %v2216_v36 = vrot.slane %v7047_v20, 1  ;;  %v7073_v3 = vld [vmem:[#allocation2 + $0x78] sm:$0xff]  }
 0x202   :  { %5270 = vmatmul.mubr.bf16.gmra.mrb[44].mxu1 %v4318_v24  ;;  %v7044_v56 = vld [vmem:[#allocation2 + $0x8] sm:$0xff]   ;;  %v2214_v5 = vrot.slane %v7038_v59, 1  ;;  %v1765_v24 = vrot.slane %v1763_v12, 1  ;;  %v2242_v49 = vrot.slane %v7073_v3, 1  ;;  %v7075_v19 = vld [vmem:[#allocation2 + $0x80] sm:$0xff]   ;;  %v7081_v20 = vld [vmem:[#allocation2 + $0x98] sm:$0xff]  }
 0x203   :  { %v1757_v55 = vrot.slane %v1755_v63, 1  ;;  %1551 = vst.msk [vmem:[#allocation3 + $0x28] sm:$0xff] %vm1549_vm5, %v7044_v56  ;;  %v2219_v9 = vsel %vm2212_vm3, %v2216_v36, %v2218_v15  ;;  %v2244_v33 = vrot.slane %v7075_v19, 1  ;;  %v4185_v63 = vsel %vm2212_vm3, %v8682_v1, %v8702_v37  ;;  %v6960_v53 = vld [vmem:[#allocation2 + $0x38] sm:$0xff]   ;;  %v6954_v3 = vld [vmem:[#allocation2 + $0x24] sm:$0xff]   ;;  %v7087_v4 = vld [vmem:[#allocation2 + $0xb0] sm:$0xff]  }
 0x204   :  { %v2215_v43 = vsel %vm2212_vm3, %v2213_v61, %v2214_v5  ;;  %v2217_v14 = vsel %vm2212_vm3, %v2214_v5, %v2216_v36  ;;  %2288 = vst.msk [vmem:[#allocation3 + $0x58] sm:$0xff] %vm1549_vm5, %v2219_v9  ;;  %v2243_v15 = vsel %vm2212_vm3, %v2240_v34, %v2242_v49  ;;  %v1769_v59 = vor.u32 %v1767_v62, %v1765_v24  ;;  %v6947_v34 = vld [vmem:[#allocation2 + $0x14] sm:$0xff]  }
 0x205   :  { %v1758_v47 = vsel %vm1746_vm4, %v1753_v51, %v1757_v55  ;;  %2286 = vst.msk [vmem:[#allocation3 + $0x8] sm:$0xff] %vm1549_vm5, %v2215_v43  ;;  %v1761_v6 = vor.u32 %v1759_v8, %v1757_v55  ;;  %2287 = vst.msk [vmem:[#allocation3 + $0x30] sm:$0xff] %vm1549_vm5, %v2217_v14  ;;  %v1787_v56 = vshll.u32 %v8712_v58, 16  ;;  %v2245_v1 = vsel %vm2212_vm3, %v2242_v49, %v2244_v33  ;;  %v7079_v55 = vld [vmem:[#allocation2 + $0x90] sm:$0xff]   ;;  %v7080_v5 = vld [vmem:[#allocation2 + $0x98] sm:$0xff]  }
 0x206   :  { %1943 = vrot.lane.b32.xlu0 %v1758_v47, %s7127_s21  ;;  %2300 = vst.msk [vmem:[#allocation3 + $0x238] sm:$0xff] %vm1549_vm5, %v2243_v15  ;;  %4244 = vst.msk [vmem:[#allocation3 + $0x200] sm:$0xff] %vm1549_vm5, %v4185_v63  ;;  %v2246_v51 = vrot.slane %v7077_v10, 1  ;;  %v8745_v61 = vrot.slane %v6120_v17, 1  ;;  %v2248_v12 = vrot.slane %v7079_v55, 1  ;;  %v1774_v39 = vsel %vm1746_vm4, %v1769_v59, %v8695_v30  ;;  %v8752_v43 = vld [vmem:[#allocation2 + $0x30] sm:$0xff]  }
 0x207   :  { %v6945_v45 = vld [vmem:[#allocation2 + $0xd8] ss:$0 sps:$4 sm:$0x11]   ;;  %v1766_v28 = vsel %vm1746_vm4, %v1761_v6, %v1765_v24  ;;  %2301 = vst.msk [vmem:[#allocation3 + $0x260] sm:$0xff] %vm1549_vm5, %v2245_v1  ;;  %v1781_v47 = vrot.slane %v1779_v27, 1  ;;  %1569 = vst.msk [vmem:[#allocation3 + $0x2f8] sm:$0xff] %vm1549_vm5, %v7080_v5 }
 0x208   :  { %v4324_v13 = vld [vmem:[#allocation3 + $0x220] sm:$0xff]  ;;  %v3887_v38 = vshll.u32 %v6945_v45, 16  ;;  %v2247_v0 = vsel %vm2212_vm3, %v2244_v33, %v2246_v51  ;;  %v2249_v22 = vsel %vm2212_vm3, %v2246_v51, %v2248_v12  ;;  %v1783_v8 = vshrl.u32 %v8709_v18, 16  ;;  %v7089_v50 = vld [vmem:[#allocation2 + $0xb8] sm:$0xff]   ;;  %v6956_v63 = vld [vmem:[#allocation2 + $0x2c] sm:$0xff]  }
 0x209   :  { %5279 = vmatprep.mubr.bf16.mxu1 %v4324_v13  ;;  %2302 = vst.msk [vmem:[#allocation3 + $0x288] sm:$0xff] %vm1549_vm5, %v2247_v0  ;;  %v2250_v13 = vrot.slane %v7081_v20, 1  ;;  %2303 = vst.msk [vmem:[#allocation3 + $0x2b0] sm:$0xff] %vm1549_vm5, %v2249_v22  ;;  %v7083_v45 = vld [vmem:[#allocation2 + $0xa0] sm:$0xff]   ;;  %v1789_v36 = vrot.slane %v1787_v56, 1  ;;  %v4187_v24 = vsel %vm2212_vm3, %v8702_v37, %v8745_v61  ;;  %v1782_v32 = vsel %vm1746_vm4, %v1777_v41, %v1781_v47  ;;  %v7085_v18 = vld [vmem:[#allocation2 + $0xa8] sm:$0xff]  }
 0x20a   :  { %5280 = vmatmul.mubr.bf16.gmra.mrb[48].mxu1 %v4323_v25  ;;  %3257 = vrot.lane.b32.xlu0 %v3210_v40, %s7127_s21  ;;  %v3889_v46 = vrot.slane %v3887_v38, 1  ;;  %v7082_v25 = vld [vmem:[#allocation2 + $0xa0] sm:$0xff]   ;;  %v7084_v40 = vld [vmem:[#allocation2 + $0xa8] sm:$0xff]   ;;  %v1795_v11 = vshll.u32 %v8752_v43, 16  ;;  %v2252_v30 = vrot.slane %v7083_v45, 1  ;;  %4245 = vst.msk [vmem:[#allocation3 + $0x228] sm:$0xff] %vm1549_vm5, %v4187_v24  ;;  %v1785_v62 = vor.u32 %v1783_v8, %v1781_v47 }
 0x20b   :  { %v2251_v52 = vsel %vm2212_vm3, %v2248_v12, %v2250_v13  ;;  %1570 = vst.msk [vmem:[#allocation3 + $0x320] sm:$0xff] %vm1549_vm5, %v7082_v25  ;;  %v1791_v6 = vshrl.u32 %v8712_v58, 16  ;;  %v6963_v37 = vld [vmem:[#allocation2 + $0x40] sm:$0xff]   ;;  %1571 = vst.msk [vmem:[#allocation3 + $0x348] sm:$0xff] %vm1549_vm5, %v7084_v40  ;;  %v7086_v38 = vld [vmem:[#allocation2 + $0xb0] sm:$0xff]   ;;  %v2254_v9 = vrot.slane %v7085_v18, 1 }
 0x20c   :  { %v3890_v31 = vsel %vm1746_vm4, %v3885_v2, %v3889_v46  ;;  %2304 = vst.msk [vmem:[#allocation3 + $0x2d8] sm:$0xff] %vm1549_vm5, %v2251_v52  ;;  %v2253_v14 = vsel %vm2212_vm3, %v2250_v13, %v2252_v30  ;;  %v1790_v49 = vsel %vm1746_vm4, %v1785_v62, %v1789_v36  ;;  %1572 = vst.msk [vmem:[#allocation3 + $0x370] sm:$0xff] %vm1549_vm5, %v7086_v38  ;;  %v1797_v19 = vrot.slane %v1795_v11, 1  ;;  %v7088_v58 = vld [vmem:[#allocation2 + $0xb8] sm:$0xff]   ;;  %v6969_v20 = vld [vmem:[#allocation2 + $0x50] sm:$0xff]  }
 0x20d   :  { %3937 = vrot.lane.b32.xlu1 %v3890_v31, %s7127_s21  ;;  %2305 = vst.msk [vmem:[#allocation3 + $0x300] sm:$0xff] %vm1549_vm5, %v2253_v14  ;;  %v1803_v17 = vshll.u32 %v6960_v53, 16  ;;  %v2255_v2 = vsel %vm2212_vm3, %v2252_v30, %v2254_v9  ;;  %v2256_v46 = vrot.slane %v7087_v4, 1  ;;  %v1793_v27 = vor.u32 %v1791_v6, %v1789_v36  ;;  %1573 = vst.msk [vmem:[#allocation3 + $0x398] sm:$0xff] %vm1549_vm5, %v7088_v58  ;;  %v7092_v10 = vld [vmem:[#allocation2 + $0x18] sm:$0xff]   ;;  %v6967_v24 = vld [vmem:[#allocation2 + $0x44] sm:$0xff]  }
 0x20e   :  { %1945 = vrot.lane.b32.xlu0 %v1766_v28, %s7127_s21  ;;  %2306 = vst.msk [vmem:[#allocation3 + $0x328] sm:$0xff] %vm1549_vm5, %v2255_v2  ;;  %v2258_v33 = vrot.slane %v7089_v50, 1  ;;  %v1811_v28 = vshll.u32 %v6963_v37, 16  ;;  %v1799_v59 = vshrl.u32 %v8752_v43, 16  ;;  %3499 = vst.msk [vmem:[#allocation3 + $0x18] sm:$0xff] %vm1549_vm5, %v7092_v10  ;;  %v6961_v51 = vld [vmem:[#allocation2 + $0x34] sm:$0xff]  }
 0x20f   :  { %v2257_v15 = vsel %vm2212_vm3, %v2254_v9, %v2256_v46  ;;  %v1798_v31 = vsel %vm1746_vm4, %v1793_v27, %v1797_v19  ;;  %v1805_v56 = vrot.slane %v1803_v17, 1  ;;  %v1807_v55 = vshrl.u32 %v6960_v53, 16  ;;  %v6964_v22 = vld [vmem:[#allocation2 + $0x3c] sm:$0xff]   ;;  %v6984_v9 = vld [vmem:[#allocation2 + $0x68] sm:$0xff]   ;;  %v6976_v58 = vld [vmem:[#allocation2 + $0x54] sm:$0xff]  }
 0x210   :  { %2307 = vst.msk [vmem:[#allocation3 + $0x350] sm:$0xff] %vm1549_vm5, %v2257_v15  ;;  %v1801_v1 = vor.u32 %v1799_v59, %v1797_v19  ;;  %v1813_v5 = vrot.slane %v1811_v28, 1  ;;  %v1819_v12 = vshll.u32 %v6966_v44, 16  ;;  %v1815_v13 = vshrl.u32 %v6963_v37, 16  ;;  %v6975_v8 = vld [vmem:[#allocation2 + $0x58] sm:$0xff]   ;;  %v6981_v18 = vld [vmem:[#allocation2 + $0x60] sm:$0xff]  }
 0x211   :  { %2480 = vrot.lane.b32.xlu1 %v6947_v34, %s7127_s21  ;;  %v2259_v34 = vsel %vm2212_vm3, %v2256_v46, %v2258_v33  ;;  %v1809_v47 = vor.u32 %v1807_v55, %v1805_v56  ;;  %v1827_v41 = vshll.u32 %v6969_v20, 16  ;;  %v1823_v11 = vshrl.u32 %v6966_v44, 16  ;;  %v4328_v2 = vld [vmem:[#allocation3 + $0x240] sm:$0xff]  ;;  %v6982_v28 = vld [vmem:[#allocation2 + $0x5c] sm:$0xff]  }
 0x212   :  { %1947 = vrot.lane.b32.xlu0 %v1774_v39, %s7127_s21  ;;  %2308 = vst.msk [vmem:[#allocation3 + $0x378] sm:$0xff] %vm1549_vm5, %v2259_v34  ;;  %v1806_v0 = vsel %vm1746_vm4, %v1801_v1, %v1805_v56  ;;  %v7091_v39 = vld [vmem:[#allocation2 + $0xc0] ss:$0 sps:$4 sm:$0x11]   ;;  %v1821_v25 = vrot.slane %v1819_v12, 1  ;;  %v1817_v52 = vor.u32 %v1815_v13, %v1813_v5  ;;  %v1835_v30 = vshll.u32 %v6975_v8, 16 }
 0x213   :  { %v2260_v43 = vrot.slane %v7091_v39, 1  ;;  %v1829_v53 = vrot.slane %v1827_v41, 1  ;;  %v1831_v37 = vshrl.u32 %v6969_v20, 16  ;;  %v1843_v14 = vshll.u32 %v6981_v18, 16  ;;  %v6993_v44 = vld [vmem:[#allocation2 + $0x78] sm:$0xff]   ;;  %v6985_v20 = vld [vmem:[#allocation2 + $0x64] sm:$0xff]  }
 0x214   :  { %v1825_v62 = vor.u32 %v1823_v11, %v1821_v25  ;;  %v1837_v38 = vrot.slane %v1835_v30, 1  ;;  %v1839_v50 = vshrl.u32 %v6975_v8, 16  ;;  %v1851_v15 = vshll.u32 %v6984_v9, 16 }
 0x215   :  { %2482 = vrot.lane.b32.xlu1 %v6952_v29, %s7127_s21  ;;  %v1814_v29 = vsel %vm1746_vm4, %v1809_v47, %v1813_v5  ;;  %v2261_v45 = vsel %vm2212_vm3, %v2258_v33, %v2260_v43  ;;  %v1845_v27 = vrot.slane %v1843_v14, 1  ;;  %v6990_v33 = vld [vmem:[#allocation2 + $0x70] sm:$0xff]   ;;  %v6996_v5 = vld [vmem:[#allocation2 + $0x80] sm:$0xff]   ;;  %v1855_v39 = vshrl.u32 %v6984_v9, 16 }
 0x216   :  { %1949 = vrot.lane.b32.xlu0 %v1782_v32, %s7127_s21  ;;  %2309 = vst.msk [vmem:[#allocation3 + $0x3a0] sm:$0xff] %vm1549_vm5, %v2261_v45  ;;  %v1822_v32 = vsel %vm1746_vm4, %v1817_v52, %v1821_v25  ;;  %v1830_v6 = vsel %vm1746_vm4, %v1825_v62, %v1829_v53  ;;  %v1841_v10 = vor.u32 %v1839_v50, %v1837_v38  ;;  %v1853_v59 = vrot.slane %v1851_v15, 1  ;;  %v6991_v25 = vld [vmem:[#allocation2 + $0x6c] sm:$0xff]  }
 0x217   :  { %v1859_v56 = vshll.u32 %v6990_v33, 16  ;;  %v1867_v43 = vshll.u32 %v6993_v44, 16  ;;  %v1863_v41 = vshrl.u32 %v6990_v33, 16  ;;  %v6999_v45 = vld [vmem:[#allocation2 + $0x88] sm:$0xff]   ;;  %v4017_v52 = vld [vmem:[#allocation2 + $0x90] sm:$0xf] }
 0x218   :  { %v1871_v30 = vshrl.u32 %v6993_v44, 16  ;;  %v1887_v44 = vshrl.u32 %v6999_v45, 16 }
 0x219   :  { %2484 = vrot.lane.b32.xlu1 %v6954_v3, %s7127_s21  ;;  %v6970_v3 = vld [vmem:[#allocation2 + $0x4c] sm:$0xff]   ;;  %v1861_v47 = vrot.slane %v1859_v56, 1  ;;  %v1869_v8 = vrot.slane %v1867_v43, 1  ;;  %v7000_v56 = vld [vmem:[#allocation2 + $0x84] sm:$0xff]  }
 0x21a   :  { %1951 = vrot.lane.b32.xlu0 %v1790_v49, %s7127_s21  ;;  %v1833_v49 = vor.u32 %v1831_v37, %v1829_v53  ;;  %v6994_v53 = vld [vmem:[#allocation2 + $0x74] sm:$0xff]  }
 0x21b   :  { %v7005_v37 = vld [vmem:[#allocation2 + $0x90] sm:$0xff]   ;;  %v1873_v9 = vor.u32 %v1871_v30, %v1869_v8 }
 0x21c   :  { %v1838_v46 = vsel %vm1746_vm4, %v1833_v49, %v1837_v38  ;;  %v7090_v38 = vld [vmem:[#allocation2 + $0xc] sm:$0xff]  }
 0x21d   :  { %2486 = vrot.lane.b32.xlu1 %v6956_v63, %s7127_s21  ;;  %v1846_v63 = vsel %vm1746_vm4, %v1841_v10, %v1845_v27  ;;  %v2747_v50 = vshrl.u32 %v7090_v38, 16  ;;  %v4019_v10 = vld [vmem:[#allocation2 + $0x98] sm:$0xf] }
 0x21e   :  { %1953 = vrot.lane.b32.xlu0 %v1798_v31, %s7127_s21  ;;  %v1847_v31 = vshrl.u32 %v6981_v18, 16 }
 0x220   :  { %v1849_v1 = vor.u32 %v1847_v31, %v1845_v27 }
 0x221   :  { %2488 = vrot.lane.b32.xlu1 %v6961_v51, %s7127_s21 }
 0x222   :  { %1955 = vrot.lane.b32.xlu0 %v1806_v0, %s7127_s21  ;;  %v1854_v12 = vsel %vm1746_vm4, %v1849_v1, %v1853_v59 }
 0x225   :  { %v3242_v36 = vpop.permute.xlu0 %3241  ;;  %2490 = vrot.lane.b32.xlu1 %v6964_v22, %s7127_s21  ;;  %v1875_v22 = vshll.u32 %v6996_v5, 16 }
 0x226   :  { %1957 = vrot.lane.b32.xlu0 %v1814_v29, %s7127_s21  ;;  %3298 = vst.msk [vmem:[#allocation3 + $0x268] sm:$0xff] %vm2015_vm6, %v3242_v36  ;;  %v1857_v29 = vor.u32 %v1855_v39, %v1853_v59 }
 0x227   :  { %v1877_v18 = vrot.slane %v1875_v22, 1  ;;  %v1895_v22 = vshrl.u32 %v7005_v37, 16 }
 0x228   :  { %v1862_v13 = vsel %vm1746_vm4, %v1857_v29, %v1861_v47  ;;  %v7006_v29 = vld [vmem:[#allocation2 + $0x8c] sm:$0xff]  }
 0x229   :  { %v3920_v40 = vpop.permute.xlu1 %3919  ;;  %2492 = vrot.lane.b32.xlu1 %v6967_v24, %s7127_s21  ;;  %v4018_v24 = vld [vmem:[#allocation2 + $0x94] sm:$0xf]  ;;  %v1878_v49 = vsel %vm1746_vm4, %v1873_v9, %v1877_v18 }
 0x22a   :  { %3977 = vst.msk [vmem:[#allocation3 + $0x248] sm:$0xff] %vm2015_vm6, %v3920_v40  ;;  %1959 = vrot.lane.b32.xlu0 %v1822_v32, %s7127_s21  ;;  %v1865_v40 = vor.u32 %v1863_v41, %v1861_v47  ;;  %v6121_v14 = vcombine.low %v4017_v52, %v4018_v24 }
 0x22c   :  { %v4188_v15 = vrot.slane %v6121_v14, 1  ;;  %v7012_v14 = vld [vmem:[#allocation2 + $0x9c] sm:$0xff]  }
 0x22d   :  { %v3244_v4 = vpop.permute.xlu0 %3243  ;;  %2494 = vrot.lane.b32.xlu1 %v6970_v3, %s7127_s21  ;;  %v4333_v0 = vld [vmem:[#allocation3 + $0x268] sm:$0xff]  ;;  %v1870_v3 = vsel %vm1746_vm4, %v1865_v40, %v1869_v8 }
 0x22e   :  { %1961 = vrot.lane.b32.xlu0 %v1830_v6, %s7127_s21  ;;  %3299 = vst.msk [vmem:[#allocation3 + $0x290] sm:$0xff] %vm2015_vm6, %v3244_v4  ;;  %v1883_v6 = vshll.u32 %v6999_v45, 16  ;;  %v2749_v4 = vshll.u32 %v7090_v38, 16  ;;  %v4189_v39 = vsel %vm2212_vm3, %v8745_v61, %v4188_v15  ;;  %v4021_v45 = vld [vmem:[#allocation2 + $0xa0] sm:$0xf] }
 0x22f   :  { %4246 = vst.msk [vmem:[#allocation3 + $0x250] sm:$0xff] %vm1549_vm5, %v4189_v39 }
 0x230   :  { %v2751_v27 = vrot.slane %v2749_v4, 1 }
 0x231   :  { %v3922_v19 = vpop.permute.xlu1 %3921  ;;  %v4329_v17 = vld [vmem:[#allocation3 + $0x248] sm:$0xff]  ;;  %2496 = vrot.lane.b32.xlu1 %v6976_v58, %s7127_s21  ;;  %v8833_v58 = vld [vmem:[#allocation2 + $0x98] sm:$0xff]  }
 0x232   :  { %3978 = vst.msk [vmem:[#allocation3 + $0x270] sm:$0xff] %vm2015_vm6, %v3922_v19  ;;  %5287 = vmatprep.mubr.bf16.mxu1 %v4329_v17  ;;  %1963 = vrot.lane.b32.xlu0 %v1838_v46, %s7127_s21  ;;  %v1879_v19 = vshrl.u32 %v6996_v5, 16  ;;  %v6997_v17 = vld [vmem:[#allocation2 + $0x7c] sm:$0xff]   ;;  %v1891_v46 = vshll.u32 %v7005_v37, 16  ;;  %v1899_v5 = vshll.u32 %v8833_v58, 16 }
 0x233   :  { %5288 = vmatmul.mubr.bf16.gmra.mrb[52].mxu1 %v4328_v2  ;;  %v1885_v2 = vrot.slane %v1883_v6, 1 }
 0x235   :  { %v3246_v34 = vpop.permute.xlu0 %3245  ;;  %2498 = vrot.lane.b32.xlu1 %v6982_v28, %s7127_s21  ;;  %v4338_v62 = vld [vmem:[#allocation3 + $0x290] sm:$0xff]  ;;  %v2752_v28 = vor.u32 %v2751_v27, %v2747_v50  ;;  %v1889_v47 = vor.u32 %v1887_v44, %v1885_v2  ;;  %v4024_v50 = vld [vmem:[#allocation2 + $0xac] sm:$0xf] }
 0x236   :  { %1965 = vrot.lane.b32.xlu0 %v1846_v63, %s7127_s21  ;;  %3300 = vst.msk [vmem:[#allocation3 + $0x2b8] sm:$0xff] %vm2015_vm6, %v3246_v34  ;;  %v1881_v63 = vor.u32 %v1879_v19, %v1877_v18  ;;  %v4020_v34 = vld [vmem:[#allocation2 + $0x9c] sm:$0xf] }
 0x237   :  { %v7023_v19 = vld [vmem:[#allocation2 + $0xb8] sm:$0xff]  }
 0x239   :  { %v3924_v51 = vpop.permute.xlu1 %3923  ;;  %v4334_v55 = vld [vmem:[#allocation3 + $0x270] sm:$0xff]  ;;  %2500 = vrot.lane.b32.xlu1 %v6985_v20, %s7127_s21  ;;  %v6122_v20 = vcombine.low %v4019_v10, %v4020_v34 }
 0x23a   :  { %3979 = vst.msk [vmem:[#allocation3 + $0x298] sm:$0xff] %vm2015_vm6, %v3924_v51  ;;  %5295 = vmatprep.mubr.bf16.mxu1 %v4334_v55  ;;  %1967 = vrot.lane.b32.xlu0 %v1854_v12, %s7127_s21  ;;  %v1886_v51 = vsel %vm1746_vm4, %v1881_v63, %v1885_v2  ;;  %v1893_v55 = vrot.slane %v1891_v46, 1  ;;  %v2757_v12 = vsel %vm1746_vm4, %v2752_v28, %v7755_v21  ;;  %v4023_v46 = vld [vmem:[#allocation2 + $0xa8] sm:$0xf] }
 0x23b   :  { %5296 = vmatmul.mubr.bf16.gmra.mrb[56].mxu1 %v4333_v0  ;;  %v7011_v0 = vld [vmem:[#allocation2 + $0xa0] sm:$0xff]   ;;  %2966 = vst.msk [vmem:[#allocation3 + $0x10] sm:$0xff] %vm1549_vm5, %v2757_v12  ;;  %v4190_v41 = vrot.slane %v6122_v20, 1  ;;  %v6124_v44 = vcombine.low %v4023_v46, %v4024_v50 }
 0x23c   :  { %v1894_v43 = vsel %vm1746_vm4, %v1889_v47, %v1893_v55  ;;  %v1907_v21 = vshll.u32 %v7011_v0, 16  ;;  %v1897_v61 = vor.u32 %v1895_v22, %v1893_v55  ;;  %v1911_v9 = vshrl.u32 %v7011_v0, 16  ;;  %v7021_v55 = vld [vmem:[#allocation2 + $0xac] sm:$0xff]  }
 0x23d   :  { %v3248_v36 = vpop.permute.xlu0 %3247  ;;  %2502 = vrot.lane.b32.xlu1 %v6991_v25, %s7127_s21  ;;  %v4343_v1 = vld [vmem:[#allocation3 + $0x2b8] sm:$0xff]  ;;  %v7014_v25 = vld [vmem:[#allocation2 + $0xa8] sm:$0xff]   ;;  %v4191_v6 = vsel %vm2212_vm3, %v4188_v15, %v4190_v41  ;;  %v4194_v20 = vrot.slane %v6124_v44, 1  ;;  %v4025_v47 = vld [vmem:[#allocation2 + $0xb0] sm:$0xf] }
 0x23e   :  { %1969 = vrot.lane.b32.xlu0 %v1862_v13, %s7127_s21  ;;  %3301 = vst.msk [vmem:[#allocation3 + $0x2e0] sm:$0xff] %vm2015_vm6, %v3248_v36  ;;  %v1901_v13 = vrot.slane %v1899_v5, 1  ;;  %v4022_v36 = vld [vmem:[#allocation2 + $0xa4] sm:$0xf]  ;;  %v1909_v30 = vrot.slane %v1907_v21, 1  ;;  %v1915_v18 = vshll.u32 %v7014_v25, 16 }
 0x23f   :  { %4247 = vst.msk [vmem:[#allocation3 + $0x278] sm:$0xff] %vm1549_vm5, %v4191_v6  ;;  %v1919_v10 = vshrl.u32 %v7014_v25, 16  ;;  %v7036_v21 = vld [vmem:[#allocation2 + $0x18] sm:$0xff]  }
 0x240   :  { %v1917_v4 = vrot.slane %v1915_v18, 1 }
 0x241   :  { %v3926_v32 = vpop.permute.xlu1 %3925  ;;  %v4339_v11 = vld [vmem:[#allocation3 + $0x298] sm:$0xff]  ;;  %2504 = vrot.lane.b32.xlu1 %v6994_v53, %s7127_s21  ;;  %v1903_v53 = vshrl.u32 %v8833_v58, 16  ;;  %v1913_v58 = vor.u32 %v1911_v9, %v1909_v30 }
 0x242   :  { %3980 = vst.msk [vmem:[#allocation3 + $0x2c0] sm:$0xff] %vm2015_vm6, %v3926_v32  ;;  %5305 = vmatprep.mubr.bf16.mxu1 %v4339_v11  ;;  %1971 = vrot.lane.b32.xlu0 %v1870_v3, %s7127_s21  ;;  %v1902_v32 = vsel %vm1746_vm4, %v1897_v61, %v1901_v13  ;;  %v7009_v11 = vld [vmem:[#allocation2 + $0x94] sm:$0xff]   ;;  %v6123_v3 = vcombine.low %v4021_v45, %v4022_v36  ;;  %v1935_v45 = vshrl.u32 %v7023_v19, 16  ;;  %v7034_v36 = vld [vmem:[#allocation2 + $0xc] sm:$0xfe]  }
 0x243   :  { %5306 = vmatmul.mubr.bf16.gmra.mrb[60].mxu1 %v4338_v62  ;;  %v7020_v62 = vld [vmem:[#allocation2 + $0xb0] sm:$0xff]   ;;  %v1905_v37 = vor.u32 %v1903_v53, %v1901_v13  ;;  %v1918_v28 = vsel %vm1746_vm4, %v1913_v58, %v1917_v4  ;;  %v7029_v53 = vld [vmem:[#allocation2 + $0xbc] sm:$0xff]   ;;  %v3696_v58 = vshrl.u32 %v7036_v21, 16 }
 0x244   :  { %v1927_v5 = vshrl.u32 %v7020_v62, 16 }
 0x245   :  { %v3250_v33 = vpop.permute.xlu0 %3249  ;;  %2506 = vrot.lane.b32.xlu1 %v6997_v17, %s7127_s21  ;;  %v4348_v24 = vld [vmem:[#allocation3 + $0x2e0] sm:$0xff]  ;;  %v1910_v38 = vsel %vm1746_vm4, %v1905_v37, %v1909_v30  ;;  %v4192_v17 = vrot.slane %v6123_v3, 1  ;;  %v3162_v30 = vrot.slane %v7034_v36, 1  ;;  %v4027_v3 = vld [vmem:[#allocation2 + $0xb8] sm:$0xf] }
 0x246   :  { %1973 = vrot.lane.b32.xlu0 %v1878_v49, %s7127_s21  ;;  %3302 = vst.msk [vmem:[#allocation3 + $0x308] sm:$0xff] %vm2015_vm6, %v3250_v33  ;;  %v1923_v49 = vshll.u32 %v7020_v62, 16  ;;  %v7015_v33 = vld [vmem:[#allocation2 + $0xa4] sm:$0xff]  }
 0x247   :  { %v4193_v34 = vsel %vm2212_vm3, %v4190_v41, %v4192_v17 }
 0x248   :  { %4248 = vst.msk [vmem:[#allocation3 + $0x2a0] sm:$0xff] %vm1549_vm5, %v4193_v34  ;;  %v4031_v34 = vld [vmem:[#allocation2 + $0xc8] sm:$0xf] }
 0x249   :  { %v3928_v31 = vpop.permute.xlu1 %3927  ;;  %v4344_v59 = vld [vmem:[#allocation3 + $0x2c0] sm:$0xff]  ;;  %2508 = vrot.lane.b32.xlu1 %v7000_v56, %s7127_s21  ;;  %v7028_v56 = vld [vmem:[#allocation2 + $0xc0] ss:$0 sps:$4 sm:$0x11]  }
 0x24a   :  { %3981 = vst.msk [vmem:[#allocation3 + $0x2e8] sm:$0xff] %vm2015_vm6, %v3928_v31  ;;  %5313 = vmatprep.mubr.bf16.mxu1 %v4344_v59  ;;  %1975 = vrot.lane.b32.xlu0 %v1886_v51, %s7127_s21  ;;  %v1925_v31 = vrot.slane %v1923_v49, 1  ;;  %v1931_v59 = vshll.u32 %v7023_v19, 16  ;;  %v1939_v12 = vshll.u32 %v7028_v56, 16  ;;  %v3164_v19 = vsel %vm2212_vm3, %v3162_v30, %v3163_v26 }
 0x24b   :  { %5314 = vmatmul.mubr.bf16.gmra.mrb[64].mxu1 %v4343_v1  ;;  %v1921_v1 = vor.u32 %v1919_v10, %v1917_v4  ;;  %v4028_v4 = vld [vmem:[#allocation2 + $0xbc] sm:$0xf] }
 0x24c   :  { %v1933_v0 = vrot.slane %v1931_v59, 1  ;;  %v1941_v61 = vrot.slane %v1939_v12, 1  ;;  %v605_v62 = vpop.f32.mrb[110].mxu0  ;;  %v6126_v46 = vcombine.low %v4027_v3, %v4028_v4  ;;  %v7100_v3 = vld [vmem:[%s9211_s4 + $0x144] ss:$8 sps:$4 sm:$0xff]  }
 0x24d   :  { %v3252_v8 = vpop.permute.xlu0 %3251  ;;  %2510 = vrot.lane.b32.xlu1 %v7006_v29, %s7127_s21  ;;  %v4353_v63 = vld [vmem:[#allocation3 + $0x308] sm:$0xff]  ;;  %v1926_v51 = vsel %vm1746_vm4, %v1921_v1, %v1925_v31  ;;  %v4026_v29 = vld [vmem:[#allocation2 + $0xb4] sm:$0xf]  ;;  %v6520_v6 = vpop.f32.mrb[111].mxu0 }
 0x24e   :  { %1977 = vrot.lane.b32.xlu0 %v1894_v43, %s7127_s21  ;;  %3303 = vst.msk [vmem:[#allocation3 + $0x330] sm:$0xff] %vm2015_vm6, %v3252_v8  ;;  %v1929_v43 = vor.u32 %v1927_v5, %v1925_v31  ;;  %v7024_v8 = vld [vmem:[#allocation2 + $0xb4] sm:$0xff]   ;;  %v4260_v6 = vld [vmem:[#allocation3 + $0x20] sm:$0xff] }
 0x250   :  { %v1934_v41 = vsel %vm1746_vm4, %v1929_v43, %v1933_v0 }
 0x251   :  { %v3930_v52 = vpop.permute.xlu1 %3929  ;;  %v4349_v40 = vld [vmem:[#allocation3 + $0x2e8] sm:$0xff]  ;;  %2512 = vrot.lane.b32.xlu1 %v7009_v11, %s7127_s21 }
 0x252   :  { %3982 = vst.msk [vmem:[#allocation3 + $0x310] sm:$0xff] %vm2015_vm6, %v3930_v52  ;;  %5321 = vmatprep.mubr.bf16.mxu1 %v4349_v40  ;;  %1979 = vrot.lane.b32.xlu0 %v1902_v32, %s7127_s21  ;;  %v6125_v52 = vcombine.low %v4025_v47, %v4026_v29  ;;  %v4195_v40 = vsel %vm2212_vm3, %v4192_v17, %v4194_v20  ;;  %v3698_v32 = vshll.u32 %v7036_v21, 16  ;;  %v7035_v17 = vld [vmem:[#allocation2 + $0xc4] sm:$0xff]  }
 0x253   :  { %5322 = vmatmul.mubr.bf16.gmra.mrb[68].mxu1 %v4348_v24  ;;  %v1937_v24 = vor.u32 %v1935_v45, %v1933_v0  ;;  %4249 = vst.msk [vmem:[#allocation3 + $0x2c8] sm:$0xff] %vm1549_vm5, %v4195_v40 }
 0x254   :  { %v4196_v18 = vrot.slane %v6125_v52, 1  ;;  %v610_v9 = vpop.f32.mrb[112].mxu0 }
 0x255   :  { %v3254_v2 = vpop.permute.xlu0 %3253  ;;  %2514 = vrot.lane.b32.xlu1 %v7012_v14, %s7127_s21  ;;  %v4358_v25 = vld [vmem:[#allocation3 + $0x330] sm:$0xff]  ;;  %v1942_v11 = vsel %vm1746_vm4, %v1937_v24, %v1941_v61  ;;  %v3700_v14 = vrot.slane %v3698_v32, 1 }
 0x256   :  { %1981 = vrot.lane.b32.xlu0 %v1910_v38, %s7127_s21  ;;  %3304 = vst.msk [vmem:[#allocation3 + $0x358] sm:$0xff] %vm2015_vm6, %v3254_v2  ;;  %v6523_v2 = vpop.f32.mrb[113].mxu0  ;;  %v4197_v50 = vsel %vm2212_vm3, %v4194_v20, %v4196_v18  ;;  %v7099_v24 = vld [vmem:[%s9211_s4 + $0x134] ss:$8 sps:$4 sm:$0xff]  }
 0x257   :  { %4250 = vst.msk [vmem:[#allocation3 + $0x2f0] sm:$0xff] %vm1549_vm5, %v4197_v50  ;;  %v3701_v16 = vor.u32 %v3700_v14, %v3696_v58  ;;  %v7102_v14 = vld [vmem:[%s9211_s4 + $0x154] ss:$8 sps:$4 sm:$0xff]   ;;  %v7104_v2 = vld [vmem:[%s9211_s4 + $0x164] ss:$8 sps:$4 sm:$0xff]  }
 0x258   :  { %v4265_v58 = vld [vmem:[#allocation3 + $0x48] sm:$0xff]  ;;  %v7105_v50 = vld [vmem:[%s9211_s4 + $0x160] ss:$8 sps:$4 sm:$0xff]  }
 0x259   :  { %v3932_v27 = vpop.permute.xlu1 %3931  ;;  %v4354_v15 = vld [vmem:[#allocation3 + $0x310] sm:$0xff]  ;;  %2516 = vrot.lane.b32.xlu1 %v7015_v33, %s7127_s21  ;;  %v3706_v26 = vsel %vm1746_vm4, %v3701_v16, %v7811_v23  ;;  %v4029_v33 = vld [vmem:[#allocation2 + $0xc0] sm:$0xf] }
 0x25a   :  { %3983 = vst.msk [vmem:[#allocation3 + $0x338] sm:$0xff] %vm2015_vm6, %v3932_v27  ;;  %5331 = vmatprep.mubr.bf16.mxu1 %v4354_v15  ;;  %1983 = vrot.lane.b32.xlu0 %v1918_v28, %s7127_s21  ;;  %v727_v27 = vld [vmem:[%s9209_s3 + $0x1c0] sm:$0xff]  ;;  %v4198_v15 = vrot.slane %v6126_v46, 1  ;;  %v6932_v46 = vld [vmem:[#allocation2 + $0xd8] ss:$0 sps:$4 sm:$0x11]  }
 0x25b   :  { %5332 = vmatmul.mubr.bf16.gmra.mrb[72].mxu1 %v4353_v63  ;;  %v726_v63 = vld [vmem:[%s9209_s3 + $0x1b8] sm:$0xff]  ;;  %v4030_v28 = vld [vmem:[#allocation2 + $0xc4] sm:$0xf] }
 0x25c   :  { %v6127_v59 = vcombine.low %v4029_v33, %v4030_v28  ;;  %v4199_v44 = vsel %vm2212_vm3, %v4196_v18, %v4198_v15 }
 0x25d   :  { %v3256_v39 = vpop.permute.xlu0 %3255  ;;  %2518 = vrot.lane.b32.xlu1 %v7021_v55, %s7127_s21  ;;  %v4363_v49 = vld [vmem:[#allocation3 + $0x358] sm:$0xff]  ;;  %4251 = vst.msk [vmem:[#allocation3 + $0x318] sm:$0xff] %vm1549_vm5, %v4199_v44 }
 0x25e   :  { %1985 = vrot.lane.b32.xlu0 %v1926_v51, %s7127_s21  ;;  %3305 = vst.msk [vmem:[#allocation3 + $0x380] sm:$0xff] %vm2015_vm6, %v3256_v39  ;;  %v4200_v23 = vrot.slane %v6127_v59, 1  ;;  %v4032_v51 = vld [vmem:[#allocation2 + $0xcc] sm:$0xf]  ;;  %v4033_v39 = vld [vmem:[#allocation2 + $0xd0] sm:$0xf] }
 0x25f   :  { %v6128_v55 = vcombine.low %v4031_v34, %v4032_v51  ;;  %v7108_v59 = vld [vmem:[%s9211_s4 + $0x184] ss:$8 sps:$4 sm:$0xff]  }
 0x260   :  { %v4201_v0 = vsel %vm2212_vm3, %v4198_v15, %v4200_v23  ;;  %v7106_v15 = vld [vmem:[%s9211_s4 + $0x174] ss:$8 sps:$4 sm:$0xff]  }
 0x261   :  { %v3934_v22 = vpop.permute.xlu1 %3933  ;;  %v4359_v13 = vld [vmem:[#allocation3 + $0x338] sm:$0xff]  ;;  %2520 = vrot.lane.b32.xlu1 %v7024_v8, %s7127_s21  ;;  %4252 = vst.msk [vmem:[#allocation3 + $0x340] sm:$0xff] %vm1549_vm5, %v4201_v0  ;;  %v4202_v20 = vrot.slane %v6128_v55, 1  ;;  %v7111_v0 = vld [vmem:[%s9211_s4 + $0x190] ss:$8 sps:$4 sm:$0xff]  }
 0x262   :  { %3984 = vst.msk [vmem:[#allocation3 + $0x360] sm:$0xff] %vm2015_vm6, %v3934_v22  ;;  %5339 = vmatprep.mubr.bf16.mxu1 %v4359_v13  ;;  %1987 = vrot.lane.b32.xlu0 %v1934_v41, %s7127_s21  ;;  %v4034_v22 = vld [vmem:[#allocation2 + $0xd4] sm:$0xf] }
 0x263   :  { %5340 = vmatmul.mubr.bf16.gmra.mrb[76].mxu1 %v4358_v25  ;;  %v6129_v13 = vcombine.low %v4033_v39, %v4034_v22  ;;  %v4203_v21 = vsel %vm2212_vm3, %v4200_v23, %v4202_v20  ;;  %v7097_v25 = vld [vmem:[%s9211_s4 + $0x114] ss:$8 sps:$4 sm:$0xff]   ;;  %v7109_v23 = vld [vmem:[%s9211_s4 + $0x180] ss:$8 sps:$4 sm:$0xff]  }
 0x264   :  { %4253 = vst.msk [vmem:[#allocation3 + $0x368] sm:$0xff] %vm1549_vm5, %v4203_v21 }
 0x265   :  { %2522 = vrot.lane.b32.xlu1 %v7029_v53, %s7127_s21  ;;  %v4368_v31 = vld [vmem:[#allocation3 + $0x380] sm:$0xff]  ;;  %v8917_v45 = vrot.slane %v6129_v13, 1 }
 0x266   :  { %1989 = vrot.lane.b32.xlu0 %v1942_v11, %s7127_s21 }
 0x267   :  { %v3936_v37 = vpop.permute.xlu1 %3935 }
 0x268   :  { %3985 = vst.msk [vmem:[#allocation3 + $0x388] sm:$0xff] %vm2015_vm6, %v3936_v37 }
 0x269   :  { %v4364_v38 = vld [vmem:[#allocation3 + $0x360] sm:$0xff]  ;;  %2524 = vrot.lane.b32.xlu1 %v7035_v17, %s7127_s21 }
 0x26a   :  { %5347 = vmatprep.mubr.bf16.mxu1 %v4364_v38  ;;  %3211 = vrot.lane.b32.xlu0 %v3164_v19, %s7127_s21 }
 0x26b   :  { %5348 = vmatmul.mubr.bf16.gmra.mrb[80].mxu1 %v4363_v49  ;;  %v7103_v49 = vld [vmem:[%s9211_s4 + $0x150] ss:$8 sps:$4 sm:$0xff]  }
 0x26d   :  { %3891 = vrot.lane.b32.xlu1 %v3706_v26, %s7127_s21  ;;  %v4206_v26 = vrot.slane %v6932_v46, 1 }
 0x26e   :  { %1010 = vperm.xlu0 %6791, %v727_v27  }
 0x26f   :  { %v4369_v10 = vld [vmem:[#allocation3 + $0x388] sm:$0xff]  ;;  %v4207_v44 = vsel %vm2212_vm3, %v8917_v45, %v4206_v26  ;;  %v4300_v26 = vld [vmem:[#allocation3 + $0x160] sm:$0xff] }
 0x270   :  { %5357 = vmatprep.mubr.bf16.mxu1 %v4369_v10  ;;  %4255 = vst.msk [vmem:[#allocation3 + $0x3b8] sm:$0xff] %vm1549_vm5, %v4207_v44 }
 0x271   :  { %1005 = vperm.xlu1 %6792, %v726_v63   ;;  %v7107_v63 = vld [vmem:[%s9211_s4 + $0x170] ss:$8 sps:$4 sm:$0xff]  }
 0x272   :  { %v2479_v56 = vpop.permute.xlu1 %2478 }
 0x273   :  { %5358 = vmatmul.mubr.bf16.gmra.mrb[84].mxu1 %v4368_v31  ;;  %2550 = vst.msk [vmem:[#allocation3 + $0x8] sm:$0xff] %vm2015_vm6, %v2479_v56  ;;  %v4270_v56 = vld [vmem:[#allocation3 + $0x70] sm:$0xff] }
 0x278   :  { %v1944_v1 = vpop.permute.xlu0 %1943 }
 0x279   :  { %2016 = vst.msk [vmem:[#allocation3] sm:$0xff] %vm2015_vm6, %v1944_v1  ;;  %v7110_v1 = vld [vmem:[%s9211_s4 + $0x194] ss:$8 sps:$4 sm:$0xff]  }
 0x27a   :  { %v4257_v5 = vld [vmem:[#allocation3 + $0x8] sm:$0xff] }
 0x27b   :  { %4924 = vmatprep.mubr.bf16.mxu0 %v4257_v5 }
 0x27c   :  { %v3258_v12 = vpop.permute.xlu0 %3257 }
 0x27d   :  { %3306 = vst.msk [vmem:[#allocation3 + $0x3a8] sm:$0xff] %vm2015_vm6, %v3258_v12 }
 0x27f   :  { %v3938_v43 = vpop.permute.xlu1 %3937 }
 0x280   :  { %v1946_v47 = vpop.permute.xlu0 %1945  ;;  %v4256_v29 = vld [vmem:[#allocation3] sm:$0xff]  ;;  %3986 = vst.msk [vmem:[#allocation3 + $0x3b0] sm:$0xff] %vm2015_vm6, %v3938_v43 }
 0x281   :  { %2017 = vst.msk [vmem:[#allocation3 + $0x28] sm:$0xff] %vm2015_vm6, %v1946_v47  ;;  %4925 = vmatmul.mubr.bf16.vlgmr.msra.gmra.mrb[116].mxu0 %v4256_v29  ;;  %v4275_v47 = vld [vmem:[#allocation3 + $0x98] sm:$0xff] }
 0x282   :  { %5134 = vmatpush1.bf16.msra.mxu0 %v7602_v35  ;;  %v7098_v35 = vld [vmem:[%s9211_s4 + $0x124] ss:$8 sps:$4 sm:$0xff]   ;;  %v7113_v29 = vld [vmem:[%s9211_s4 + $0x1b4] ss:$8 sps:$4 sm:$0xff]  }
 0x283   :  { %5135 = vmatprep.subr.bf16.mxu0 %v7097_v25  ;;  %v2481_v8 = vpop.permute.xlu1 %2480  ;;  %v7114_v25 = vld [vmem:[%s9211_s4 + $0x1b0] ss:$8 sps:$4 sm:$0xff]  }
 0x284   :  { %v1948_v41 = vpop.permute.xlu0 %1947  ;;  %2551 = vst.msk [vmem:[#allocation3 + $0x30] sm:$0xff] %vm2015_vm6, %v2481_v8  ;;  %v4373_v40 = vld [vmem:[#allocation3 + $0x3a8] sm:$0xff] }
 0x285   :  { %2018 = vst.msk [vmem:[#allocation3 + $0x50] sm:$0xff] %vm2015_vm6, %v1948_v41  ;;  %v7115_v41 = vld [vmem:[%s9211_s4 + $0x1c4] ss:$8 sps:$4 sm:$0xff]  }
 0x286   :  { %5136 = vmatpush1.bf16.msra.mxu0 %v7622_v42  ;;  %v4205_v42 = vsel %vm2212_vm3, %v4202_v20, %v8917_v45  ;;  %v7112_v20 = vld [vmem:[%s9211_s4 + $0x1a4] ss:$8 sps:$4 sm:$0xff]  }
 0x287   :  { %5137 = vmatprep.subr.bf16.mxu0 %v7098_v35  ;;  %v2483_v36 = vpop.permute.xlu1 %2482  ;;  %v4374_v52 = vld [vmem:[#allocation3 + $0x3b0] sm:$0xff]  ;;  %4254 = vst.msk [vmem:[#allocation3 + $0x390] sm:$0xff] %vm1549_vm5, %v4205_v42  ;;  %v4280_v45 = vld [vmem:[#allocation3 + $0xc0] sm:$0xff] }
 0x288   :  { %v1950_v61 = vpop.permute.xlu0 %1949  ;;  %2552 = vst.msk [vmem:[#allocation3 + $0x58] sm:$0xff] %vm2015_vm6, %v2483_v36  ;;  %5365 = vmatprep.mubr.bf16.mxu1 %v4374_v52  ;;  %v7117_v42 = vld [vmem:[%s9211_s4 + $0x1d0] ss:$8 sps:$4 sm:$0xff]  }
 0x289   :  { %2019 = vst.msk [vmem:[#allocation3 + $0x78] sm:$0xff] %vm2015_vm6, %v1950_v61  ;;  %5366 = vmatmul.mubr.bf16.gmra.mrb[88].mxu1 %v4373_v40  ;;  %v7116_v61 = vld [vmem:[%s9211_s4 + $0x1d4] ss:$8 sps:$4 sm:$0xff]  }
 0x28a   :  { %5138 = vmatpush1.bf16.msra.mxu0 %v7639_v48  ;;  %5406 = vmatprep.mubr.bf16.mxu1 %v7126_v7  ;;  %v4261_v48 = vld [vmem:[#allocation3 + $0x28] sm:$0xff] }
 0x28b   :  { %5139 = vmatprep.subr.bf16.mxu0 %v7099_v24  ;;  %v2485_v11 = vpop.permute.xlu1 %2484  ;;  %v4262_v53 = vld [vmem:[#allocation3 + $0x30] sm:$0xff]  ;;  %v7118_v24 = vld [vmem:[%s9211_s4 + $0x1e4] ss:$8 sps:$4 sm:$0xff]  }
 0x28c   :  { %v1952_v32 = vpop.permute.xlu0 %1951  ;;  %2553 = vst.msk [vmem:[#allocation3 + $0x80] sm:$0xff] %vm2015_vm6, %v2485_v11  ;;  %4934 = vmatprep.mubr.bf16.mxu0 %v4262_v53  ;;  %v4266_v9 = vld [vmem:[#allocation3 + $0x50] sm:$0xff]  ;;  %v4285_v11 = vld [vmem:[#allocation3 + $0xe8] sm:$0xff]  ;;  %v7119_v53 = vld [vmem:[%s9211_s4 + $0x1e0] ss:$8 sps:$4 sm:$0xff]  }
 0x28d   :  { %2020 = vst.msk [vmem:[#allocation3 + $0xa0] sm:$0xff] %vm2015_vm6, %v1952_v32  ;;  %4935 = vmatmul.mubr.bf16.gmra.mrb[120].mxu0 %v4261_v48 }
 0x28e   :  { %5140 = vmatpush1.bf16.msra.mxu0 %v7653_v54  ;;  %v7101_v54 = vld [vmem:[%s9211_s4 + $0x140] ss:$8 sps:$4 sm:$0xff]  }
 0x28f   :  { %v2487_v18 = vpop.permute.xlu1 %2486  ;;  %v4267_v62 = vld [vmem:[#allocation3 + $0x58] sm:$0xff]  ;;  %5141 = vmatprep.subr.bf16.mxu0 %v7100_v3 }
 0x290   :  { %v1954_v30 = vpop.permute.xlu0 %1953  ;;  %2554 = vst.msk [vmem:[#allocation3 + $0xa8] sm:$0xff] %vm2015_vm6, %v2487_v18  ;;  %4942 = vmatprep.mubr.bf16.mxu0 %v4267_v62  ;;  %v4271_v33 = vld [vmem:[#allocation3 + $0x78] sm:$0xff] }
 0x291   :  { %2021 = vst.msk [vmem:[#allocation3 + $0xc8] sm:$0xff] %vm2015_vm6, %v1954_v30  ;;  %6203 = vmatmul.mubr.msk.bf16.vlgmr.msra.gmra.mrb[92].mxu1 %vm1549_vm5, %v4260_v6  ;;  %v7120_v30 = vld [vmem:[%s9211_s4 + $0x1f4] ss:$8 sps:$4 sm:$0xff]   ;;  %v7121_v6 = vld [vmem:[%s9211_s4 + $0x1f0] ss:$8 sps:$4 sm:$0xff]  }
 0x292   :  { %5416 = vmatprep.mubr.bf16.mxu1 %v7126_v7  ;;  %5142 = vmatpush1.bf16.msra.mxu0 %v7101_v54 }
 0x293   :  { %v2489_v38 = vpop.permute.xlu1 %2488  ;;  %5143 = vmatprep.subr.bf16.mxu0 %v7102_v14  ;;  %v4272_v4 = vld [vmem:[#allocation3 + $0x80] sm:$0xff] }
 0x294   :  { %v1956_v37 = vpop.permute.xlu0 %1955  ;;  %2555 = vst.msk [vmem:[#allocation3 + $0xd0] sm:$0xff] %vm2015_vm6, %v2489_v38  ;;  %v4276_v55 = vld [vmem:[#allocation3 + $0xa0] sm:$0xff]  ;;  %v4290_v38 = vld [vmem:[#allocation3 + $0x110] sm:$0xff] }
 0x295   :  { %2022 = vst.msk [vmem:[#allocation3 + $0xf0] sm:$0xff] %vm2015_vm6, %v1956_v37  ;;  %4943 = vmatmul.mubr.bf16.gmra.mrb[124].mxu0 %v4266_v9 }
 0x296   :  { %4950 = vmatprep.mubr.bf16.mxu0 %v4272_v4  ;;  %5144 = vmatpush1.bf16.msra.mxu0 %v7103_v49 }
 0x297   :  { %v2491_v17 = vpop.permute.xlu1 %2490  ;;  %5145 = vmatprep.subr.bf16.mxu0 %v7104_v2  ;;  %v4277_v10 = vld [vmem:[#allocation3 + $0xa8] sm:$0xff]  ;;  %v4295_v2 = vld [vmem:[#allocation3 + $0x138] sm:$0xff] }
 0x298   :  { %v1958_v19 = vpop.permute.xlu0 %1957  ;;  %2556 = vst.msk [vmem:[#allocation3 + $0xf8] sm:$0xff] %vm2015_vm6, %v2491_v17  ;;  %v4281_v13 = vld [vmem:[#allocation3 + $0xc8] sm:$0xff] }
 0x299   :  { %2023 = vst.msk [vmem:[#allocation3 + $0x118] sm:$0xff] %vm2015_vm6, %v1958_v19  ;;  %6204 = vmatmul.mubr.msk.bf16.gmra.mrb[0].mxu1 %vm1549_vm5, %v4265_v58 }
 0x29a   :  { %5424 = vmatprep.mubr.bf16.mxu1 %v7126_v7  ;;  %5146 = vmatpush1.bf16.msra.mxu0 %v7105_v50 }
 0x29b   :  { %v2493_v16 = vpop.permute.xlu1 %2492  ;;  %5147 = vmatprep.subr.bf16.mxu0 %v7106_v15  ;;  %v4282_v5 = vld [vmem:[#allocation3 + $0xd0] sm:$0xff] }
 0x29c   :  { %v1960_v27 = vpop.permute.xlu0 %1959  ;;  %2557 = vst.msk [vmem:[#allocation3 + $0x120] sm:$0xff] %vm2015_vm6, %v2493_v16  ;;  %v4286_v52 = vld [vmem:[#allocation3 + $0xf0] sm:$0xff] }
 0x29d   :  { %2024 = vst.msk [vmem:[#allocation3 + $0x140] sm:$0xff] %vm2015_vm6, %v1960_v27  ;;  %4951 = vmatmul.mubr.bf16.gmra.mrb[128].mxu0 %v4271_v33 }
 0x29e   :  { %4960 = vmatprep.mubr.bf16.mxu0 %v4277_v10  ;;  %5148 = vmatpush1.bf16.msra.mxu0 %v7107_v63 }
 0x29f   :  { %v2495_v31 = vpop.permute.xlu1 %2494  ;;  %5149 = vmatprep.subr.bf16.mxu0 %v7108_v59  ;;  %v4287_v21 = vld [vmem:[#allocation3 + $0xf8] sm:$0xff] }
 0x2a0   :  { %v1962_v28 = vpop.permute.xlu0 %1961  ;;  %2558 = vst.msk [vmem:[#allocation3 + $0x148] sm:$0xff] %vm2015_vm6, %v2495_v31  ;;  %v4291_v62 = vld [vmem:[#allocation3 + $0x118] sm:$0xff] }
 0x2a1   :  { %2025 = vst.msk [vmem:[#allocation3 + $0x168] sm:$0xff] %vm2015_vm6, %v1962_v28  ;;  %6205 = vmatmul.mubr.msk.bf16.gmra.mrb[4].mxu1 %vm1549_vm5, %v4270_v56  ;;  %v4305_v56 = vld [vmem:[#allocation3 + $0x188] sm:$0xff] }
 0x2a2   :  { %5432 = vmatprep.mubr.bf16.mxu1 %v7126_v7  ;;  %5150 = vmatpush1.bf16.msra.mxu0 %v7109_v23 }
 0x2a3   :  { %5151 = vmatprep.subr.bf16.mxu0 %v7110_v1  ;;  %v2497_v51 = vpop.permute.xlu1 %2496  ;;  %v4292_v40 = vld [vmem:[#allocation3 + $0x120] sm:$0xff] }
 0x2a4   :  { %v1964_v34 = vpop.permute.xlu0 %1963  ;;  %2559 = vst.msk [vmem:[#allocation3 + $0x170] sm:$0xff] %vm2015_vm6, %v2497_v51  ;;  %v4296_v4 = vld [vmem:[#allocation3 + $0x140] sm:$0xff] }
 0x2a5   :  { %2026 = vst.msk [vmem:[#allocation3 + $0x190] sm:$0xff] %vm2015_vm6, %v1964_v34  ;;  %4961 = vmatmul.mubr.bf16.gmra.mrb[132].mxu0 %v4276_v55  ;;  %v4310_v55 = vld [vmem:[#allocation3 + $0x1b0] sm:$0xff] }
 0x2a6   :  { %4968 = vmatprep.mubr.bf16.mxu0 %v4282_v5  ;;  %5152 = vmatpush1.bf16.msra.mxu0 %v7111_v0 }
 0x2a7   :  { %5153 = vmatprep.subr.bf16.mxu0 %v7112_v20  ;;  %v2499_v39 = vpop.permute.xlu1 %2498  ;;  %v4297_v3 = vld [vmem:[#allocation3 + $0x148] sm:$0xff] }
 0x2a8   :  { %v1966_v12 = vpop.permute.xlu0 %1965  ;;  %2560 = vst.msk [vmem:[#allocation3 + $0x198] sm:$0xff] %vm2015_vm6, %v2499_v39  ;;  %v4301_v50 = vld [vmem:[#allocation3 + $0x168] sm:$0xff] }
 0x2a9   :  { %2027 = vst.msk [vmem:[#allocation3 + $0x1b8] sm:$0xff] %vm2015_vm6, %v1966_v12  ;;  %6206 = vmatmul.mubr.msk.bf16.gmra.mrb[8].mxu1 %vm1549_vm5, %v4275_v47  ;;  %v4315_v12 = vld [vmem:[#allocation3 + $0x1d8] sm:$0xff] }
 0x2aa   :  { %5442 = vmatprep.mubr.bf16.mxu1 %v7126_v7  ;;  %5154 = vmatpush1.bf16.msra.mxu0 %v7727_v57 }
 0x2ab   :  { %5155 = vmatprep.subr.bf16.mxu0 %v7113_v29  ;;  %v2501_v22 = vpop.permute.xlu1 %2500  ;;  %v4302_v49 = vld [vmem:[#allocation3 + $0x170] sm:$0xff] }
 0x2ac   :  { %v1968_v43 = vpop.permute.xlu0 %1967  ;;  %2561 = vst.msk [vmem:[#allocation3 + $0x1c0] sm:$0xff] %vm2015_vm6, %v2501_v22  ;;  %v4306_v63 = vld [vmem:[#allocation3 + $0x190] sm:$0xff] }
 0x2ad   :  { %2028 = vst.msk [vmem:[#allocation3 + $0x1e0] sm:$0xff] %vm2015_vm6, %v1968_v43  ;;  %4969 = vmatmul.mubr.bf16.gmra.mrb[136].mxu0 %v4281_v13  ;;  %v4320_v43 = vld [vmem:[#allocation3 + $0x200] sm:$0xff] }
 0x2ae   :  { %4976 = vmatprep.mubr.bf16.mxu0 %v4287_v21  ;;  %5156 = vmatpush1.bf16.msra.mxu0 %v7114_v25  ;;  %v4325_v21 = vld [vmem:[#allocation3 + $0x228] sm:$0xff] }
 0x2af   :  { %5157 = vmatprep.subr.bf16.mxu0 %v7115_v41  ;;  %v2503_v8 = vpop.permute.xlu1 %2502  ;;  %v4307_v27 = vld [vmem:[#allocation3 + $0x198] sm:$0xff]  ;;  %v4330_v41 = vld [vmem:[#allocation3 + $0x250] sm:$0xff] }
 0x2b0   :  { %v1970_v57 = vpop.permute.xlu0 %1969  ;;  %2562 = vst.msk [vmem:[#allocation3 + $0x1e8] sm:$0xff] %vm2015_vm6, %v2503_v8  ;;  %v4311_v34 = vld [vmem:[#allocation3 + $0x1b8] sm:$0xff] }
 0x2b1   :  { %2029 = vst.msk [vmem:[#allocation3 + $0x208] sm:$0xff] %vm2015_vm6, %v1970_v57  ;;  %6207 = vmatmul.mubr.msk.bf16.gmra.mrb[12].mxu1 %vm1549_vm5, %v4280_v45 }
 0x2b2   :  { %5450 = vmatprep.mubr.bf16.mxu1 %v7126_v7  ;;  %5158 = vmatpush1.bf16.msra.mxu0 %v7757_v60 }
 0x2b3   :  { %5159 = vmatprep.subr.bf16.mxu0 %v7116_v61  ;;  %v2505_v36 = vpop.permute.xlu1 %2504  ;;  %v4312_v28 = vld [vmem:[#allocation3 + $0x1c0] sm:$0xff] }
 0x2b4   :  { %v1972_v35 = vpop.permute.xlu0 %1971  ;;  %2563 = vst.msk [vmem:[#allocation3 + $0x210] sm:$0xff] %vm2015_vm6, %v2505_v36  ;;  %v4316_v5 = vld [vmem:[#allocation3 + $0x1e0] sm:$0xff] }
 0x2b5   :  { %2030 = vst.msk [vmem:[#allocation3 + $0x230] sm:$0xff] %vm2015_vm6, %v1972_v35  ;;  %4977 = vmatmul.mubr.bf16.gmra.mrb[140].mxu0 %v4286_v52  ;;  %v4335_v35 = vld [vmem:[#allocation3 + $0x278] sm:$0xff]  ;;  %v4340_v52 = vld [vmem:[#allocation3 + $0x2a0] sm:$0xff] }
 0x2b6   :  { %4986 = vmatprep.mubr.bf16.mxu0 %v4292_v40  ;;  %5160 = vmatpush1.bf16.msra.mxu0 %v7117_v42 }
 0x2b7   :  { %5161 = vmatprep.subr.bf16.mxu0 %v7118_v24  ;;  %v2507_v32 = vpop.permute.xlu1 %2506  ;;  %v4317_v1 = vld [vmem:[#allocation3 + $0x1e8] sm:$0xff] }
 0x2b8   :  { %v1974_v60 = vpop.permute.xlu0 %1973  ;;  %2564 = vst.msk [vmem:[#allocation3 + $0x238] sm:$0xff] %vm2015_vm6, %v2507_v32  ;;  %v4321_v39 = vld [vmem:[#allocation3 + $0x208] sm:$0xff] }
 0x2b9   :  { %2031 = vst.msk [vmem:[#allocation3 + $0x258] sm:$0xff] %vm2015_vm6, %v1974_v60  ;;  %6208 = vmatmul.mubr.msk.bf16.gmra.mrb[16].mxu1 %vm1549_vm5, %v4285_v11  ;;  %v4345_v60 = vld [vmem:[#allocation3 + $0x2c8] sm:$0xff]  ;;  %v4350_v11 = vld [vmem:[#allocation3 + $0x2f0] sm:$0xff] }
 0x2ba   :  { %5458 = vmatprep.mubr.bf16.mxu1 %v7126_v7  ;;  %5162 = vmatpush1.bf16.msra.mxu0 %v7119_v53 }
 0x2bb   :  { %5163 = vmatprep.subr.bf16.mxu0 %v7120_v30  ;;  %v2509_v18 = vpop.permute.xlu1 %2508  ;;  %v4322_v0 = vld [vmem:[#allocation3 + $0x210] sm:$0xff]  ;;  %v4355_v30 = vld [vmem:[#allocation3 + $0x318] sm:$0xff] }
 0x2bc   :  { %v1976_v48 = vpop.permute.xlu0 %1975  ;;  %2565 = vst.msk [vmem:[#allocation3 + $0x260] sm:$0xff] %vm2015_vm6, %v2509_v18  ;;  %v4326_v22 = vld [vmem:[#allocation3 + $0x230] sm:$0xff] }
 0x2bd   :  { %2032 = vst.msk [vmem:[#allocation3 + $0x280] sm:$0xff] %vm2015_vm6, %v1976_v48  ;;  %4987 = vmatmul.mubr.bf16.gmra.mrb[144].mxu0 %v4291_v62 }
 0x2be   :  { %4994 = vmatprep.mubr.bf16.mxu0 %v4297_v3  ;;  %5164 = vmatpush1.bf16.msra.mxu0 %v7121_v6  ;;  %v4360_v3 = vld [vmem:[#allocation3 + $0x340] sm:$0xff] }
 0x2bf   :  { %v2511_v37 = vpop.permute.xlu1 %2510  ;;  %v4327_v47 = vld [vmem:[#allocation3 + $0x238] sm:$0xff] }
 0x2c0   :  { %v1978_v54 = vpop.permute.xlu0 %1977  ;;  %2566 = vst.msk [vmem:[#allocation3 + $0x288] sm:$0xff] %vm2015_vm6, %v2511_v37  ;;  %v4331_v25 = vld [vmem:[#allocation3 + $0x258] sm:$0xff]  ;;  %v4365_v37 = vld [vmem:[#allocation3 + $0x368] sm:$0xff] }
 0x2c1   :  { %2033 = vst.msk [vmem:[#allocation3 + $0x2a8] sm:$0xff] %vm2015_vm6, %v1978_v54  ;;  %6209 = vmatmul.mubr.msk.bf16.gmra.mrb[20].mxu1 %vm1549_vm5, %v4290_v38 }
 0x2c2   :  { %5468 = vmatprep.mubr.bf16.mxu1 %v7126_v7 }
 0x2c3   :  { %v2513_v9 = vpop.permute.xlu1 %2512  ;;  %v4332_v13 = vld [vmem:[#allocation3 + $0x260] sm:$0xff] }
 0x2c4   :  { %v1980_v14 = vpop.permute.xlu0 %1979  ;;  %2567 = vst.msk [vmem:[#allocation3 + $0x2b0] sm:$0xff] %vm2015_vm6, %v2513_v9  ;;  %v4336_v8 = vld [vmem:[#allocation3 + $0x280] sm:$0xff]  ;;  %v4370_v9 = vld [vmem:[#allocation3 + $0x390] sm:$0xff] }
 0x2c5   :  { %2034 = vst.msk [vmem:[#allocation3 + $0x2d0] sm:$0xff] %vm2015_vm6, %v1980_v14  ;;  %4995 = vmatmul.mubr.bf16.gmra.mrb[148].mxu0 %v4296_v4 }
 0x2c6   :  { %5002 = vmatprep.mubr.bf16.mxu0 %v4302_v49  ;;  %v4375_v49 = vld [vmem:[#allocation3 + $0x3b8] sm:$0xff] }
 0x2c7   :  { %v2515_v17 = vpop.permute.xlu1 %2514  ;;  %v4337_v57 = vld [vmem:[#allocation3 + $0x288] sm:$0xff] }
 0x2c8   :  { %v1982_v19 = vpop.permute.xlu0 %1981  ;;  %2568 = vst.msk [vmem:[#allocation3 + $0x2d8] sm:$0xff] %vm2015_vm6, %v2515_v17  ;;  %v4341_v61 = vld [vmem:[#allocation3 + $0x2a8] sm:$0xff] }
 0x2c9   :  { %2035 = vst.msk [vmem:[#allocation3 + $0x2f8] sm:$0xff] %vm2015_vm6, %v1982_v19  ;;  %6210 = vmatmul.mubr.msk.bf16.gmra.mrb[24].mxu1 %vm1549_vm5, %v4295_v2  ;;  %v4450_v19 = vlaneseq }
 0x2ca   :  { %5476 = vmatprep.mubr.bf16.mxu1 %v7126_v7 }
 0x2cb   :  { %v2517_v58 = vpop.permute.xlu1 %2516  ;;  %v4342_v45 = vld [vmem:[#allocation3 + $0x2b0] sm:$0xff] }
 0x2cc   :  { %v1984_v46 = vpop.permute.xlu0 %1983  ;;  %2569 = vst.msk [vmem:[#allocation3 + $0x300] sm:$0xff] %vm2015_vm6, %v2517_v58  ;;  %v4346_v40 = vld [vmem:[#allocation3 + $0x2d0] sm:$0xff] }
 0x2cd   :  { %2036 = vst.msk [vmem:[#allocation3 + $0x320] sm:$0xff] %vm2015_vm6, %v1984_v46  ;;  %5003 = vmatmul.mubr.bf16.gmra.mrb[152].mxu0 %v4301_v50  ;;  %v4451_v46 = vshrl.u32 %v4450_v19, 7 }
 0x2ce   :  { %5012 = vmatprep.mubr.bf16.mxu0 %v4307_v27 }
 0x2cf   :  { %v2519_v15 = vpop.permute.xlu1 %2518  ;;  %v4347_v36 = vld [vmem:[#allocation3 + $0x2d8] sm:$0xff] }
 0x2d0   :  { %v1986_v16 = vpop.permute.xlu0 %1985  ;;  %2570 = vst.msk [vmem:[#allocation3 + $0x328] sm:$0xff] %vm2015_vm6, %v2519_v15  ;;  %v4351_v24 = vld [vmem:[#allocation3 + $0x2f8] sm:$0xff] }
 0x2d1   :  { %2037 = vst.msk [vmem:[#allocation3 + $0x348] sm:$0xff] %vm2015_vm6, %v1986_v16  ;;  %6211 = vmatmul.mubr.msk.bf16.gmra.mrb[28].mxu1 %vm1549_vm5, %v4300_v26  ;;  %v4452_v16 = vsub.s32 0, %v4451_v46  ;;  %v4456_v26 = vsub.s32 1, %v4451_v46 }
 0x2d2   :  { %5484 = vmatprep.mubr.bf16.mxu1 %v7126_v7 }
 0x2d3   :  { %v2521_v10 = vpop.permute.xlu1 %2520  ;;  %v4352_v42 = vld [vmem:[#allocation3 + $0x300] sm:$0xff] }
 0x2d4   :  { %v1988_v33 = vpop.permute.xlu0 %1987  ;;  %2571 = vst.msk [vmem:[#allocation3 + $0x350] sm:$0xff] %vm2015_vm6, %v2521_v10  ;;  %v4356_v53 = vld [vmem:[#allocation3 + $0x320] sm:$0xff] }
 0x2d5   :  { %2038 = vst.msk [vmem:[#allocation3 + $0x370] sm:$0xff] %vm2015_vm6, %v1988_v33  ;;  %5013 = vmatmul.mubr.bf16.gmra.mrb[156].mxu0 %v4306_v63 }
 0x2d6   :  { %5020 = vmatprep.mubr.bf16.mxu0 %v4312_v28 }
 0x2d7   :  { %v2523_v59 = vpop.permute.xlu1 %2522  ;;  %v4357_v32 = vld [vmem:[#allocation3 + $0x328] sm:$0xff] }
 0x2d8   :  { %v1990_v31 = vpop.permute.xlu0 %1989  ;;  %2572 = vst.msk [vmem:[#allocation3 + $0x378] sm:$0xff] %vm2015_vm6, %v2523_v59  ;;  %v4361_v18 = vld [vmem:[#allocation3 + $0x348] sm:$0xff] }
 0x2d9   :  { %2039 = vst.msk [vmem:[#allocation3 + $0x398] sm:$0xff] %vm2015_vm6, %v1990_v31  ;;  %6212 = vmatmul.mubr.msk.bf16.gmra.mrb[32].mxu1 %vm1549_vm5, %v4305_v56 }
 0x2da   :  { %5494 = vmatprep.mubr.bf16.mxu1 %v7126_v7 }
 0x2db   :  { %v2525_v23 = vpop.permute.xlu1 %2524  ;;  %v4362_v48 = vld [vmem:[#allocation3 + $0x350] sm:$0xff] }
 0x2dc   :  { %v3212_v44 = vpop.permute.xlu0 %3211  ;;  %2573 = vst.msk [vmem:[#allocation3 + $0x3a0] sm:$0xff] %vm2015_vm6, %v2525_v23  ;;  %v4366_v6 = vld [vmem:[#allocation3 + $0x370] sm:$0xff] }
 0x2dd   :  { %3283 = vst.msk [vmem:[#allocation3 + $0x10] sm:$0xff] %vm2015_vm6, %v3212_v44  ;;  %5021 = vmatmul.mubr.bf16.gmra.mrb[160].mxu0 %v4311_v34 }
 0x2de   :  { %5028 = vmatprep.mubr.bf16.mxu0 %v4317_v1 }
 0x2df   :  { %v3892_v51 = vpop.permute.xlu1 %3891  ;;  %v4367_v62 = vld [vmem:[#allocation3 + $0x378] sm:$0xff] }
 0x2e0   :  { %3963 = vst.msk [vmem:[#allocation3 + $0x18] sm:$0xff] %vm2015_vm6, %v3892_v51  ;;  %v4371_v38 = vld [vmem:[#allocation3 + $0x398] sm:$0xff] }
 0x2e1   :  { %6213 = vmatmul.mubr.msk.bf16.gmra.mrb[36].mxu1 %vm1549_vm5, %v4310_v55 }
 0x2e2   :  { %5502 = vmatprep.mubr.bf16.mxu1 %v7126_v7 }
 0x2e3   :  { %v4372_v54 = vld [vmem:[#allocation3 + $0x3a0] sm:$0xff] }
 0x2e4   :  { %v4258_v4 = vld [vmem:[#allocation3 + $0x10] sm:$0xff] }
 0x2e5   :  { %5029 = vmatmul.mubr.bf16.gmra.mrb[164].mxu0 %v4316_v5 }
 0x2e6   :  { %5038 = vmatprep.mubr.bf16.mxu0 %v4322_v0 }
 0x2e7   :  { %v4259_v14 = vld [vmem:[#allocation3 + $0x18] sm:$0xff] }
 0x2e9   :  { %6214 = vmatmul.mubr.msk.bf16.gmra.mrb[40].mxu1 %vm1549_vm5, %v4315_v12 }
 0x2ea   :  { %5510 = vmatprep.mubr.bf16.mxu1 %v7126_v7 }
 0x2ed   :  { %v1011_v20 = vpop.permute.xlu0 %1010  ;;  %5039 = vmatmul.mubr.bf16.gmra.mrb[168].mxu0 %v4321_v39 }
 0x2ee   :  { %5046 = vmatprep.mubr.bf16.mxu0 %v4327_v47 }
 0x2f0   :  { %v1006_v29 = vpop.permute.xlu1 %1005 }
 0x2f1   :  { %6215 = vmatmul.mubr.msk.bf16.gmra.mrb[44].mxu1 %vm1549_vm5, %v4320_v43 }
 0x2f2   :  { %5520 = vmatprep.mubr.bf16.mxu1 %v7126_v7 }
 0x2f5   :  { %5047 = vmatmul.mubr.bf16.gmra.mrb[172].mxu0 %v4326_v22 }
 0x2f6   :  { %5054 = vmatprep.mubr.bf16.mxu0 %v4332_v13 }
 0x2f9   :  { %6216 = vmatmul.mubr.msk.bf16.gmra.mrb[48].mxu1 %vm1549_vm5, %v4325_v21 }
 0x2fa   :  { %5528 = vmatprep.mubr.bf16.mxu1 %v7126_v7 }
 0x2fd   :  { %5055 = vmatmul.mubr.bf16.gmra.mrb[176].mxu0 %v4331_v25 }
 0x2fe   :  { %5064 = vmatprep.mubr.bf16.mxu0 %v4337_v57 }
 0x301   :  { %6217 = vmatmul.mubr.msk.bf16.gmra.mrb[52].mxu1 %vm1549_vm5, %v4330_v41 }
 0x302   :  { %5536 = vmatprep.mubr.bf16.mxu1 %v7126_v7 }
 0x305   :  { %5065 = vmatmul.mubr.bf16.gmra.mrb[180].mxu0 %v4336_v8 }
 0x306   :  { %5072 = vmatprep.mubr.bf16.mxu0 %v4342_v45 }
 0x309   :  { %6218 = vmatmul.mubr.msk.bf16.gmra.mrb[56].mxu1 %vm1549_vm5, %v4335_v35 }
 0x30a   :  { %5546 = vmatprep.mubr.bf16.mxu1 %v7126_v7 }
 0x30d   :  { %5073 = vmatmul.mubr.bf16.gmra.mrb[184].mxu0 %v4341_v61 }
 0x30e   :  { %5080 = vmatprep.mubr.bf16.mxu0 %v4347_v36 }
 0x311   :  { %6219 = vmatmul.mubr.msk.bf16.gmra.mrb[60].mxu1 %vm1549_vm5, %v4340_v52 }
 0x312   :  { %5554 = vmatprep.mubr.bf16.mxu1 %v7126_v7 }
 0x315   :  { %5081 = vmatmul.mubr.bf16.gmra.mrb[188].mxu0 %v4346_v40 }
 0x316   :  { %5090 = vmatprep.mubr.bf16.mxu0 %v4352_v42 }
 0x319   :  { %6220 = vmatmul.mubr.msk.bf16.gmra.mrb[64].mxu1 %vm1549_vm5, %v4345_v60 }
 0x31a   :  { %5562 = vmatprep.mubr.bf16.mxu1 %v7126_v7 }
 0x31d   :  { %5091 = vmatmul.mubr.bf16.gmra.mrb[192].mxu0 %v4351_v24 }
 0x31e   :  { %5098 = vmatprep.mubr.bf16.mxu0 %v4357_v32 }
 0x321   :  { %6221 = vmatmul.mubr.msk.bf16.gmra.mrb[68].mxu1 %vm1549_vm5, %v4350_v11 }
 0x322   :  { %5572 = vmatprep.mubr.bf16.mxu1 %v7126_v7 }
 0x325   :  { %5099 = vmatmul.mubr.bf16.gmra.mrb[196].mxu0 %v4356_v53 }
 0x326   :  { %5106 = vmatprep.mubr.bf16.mxu0 %v4362_v48 }
 0x329   :  { %6222 = vmatmul.mubr.msk.bf16.gmra.mrb[72].mxu1 %vm1549_vm5, %v4355_v30 }
 0x32a   :  { %5580 = vmatprep.mubr.bf16.mxu1 %v7126_v7 }
 0x32d   :  { %5107 = vmatmul.mubr.bf16.gmra.mrb[200].mxu0 %v4361_v18 }
 0x32e   :  { %5116 = vmatprep.mubr.bf16.mxu0 %v4367_v62 }
 0x331   :  { %6223 = vmatmul.mubr.msk.bf16.gmra.mrb[76].mxu1 %vm1549_vm5, %v4360_v3 }
 0x332   :  { %5588 = vmatprep.mubr.bf16.mxu1 %v7126_v7 }
 0x335   :  { %5117 = vmatmul.mubr.bf16.gmra.mrb[204].mxu0 %v4366_v6 }
 0x336   :  { %5124 = vmatprep.mubr.bf16.mxu0 %v4372_v54 }
 0x339   :  { %6224 = vmatmul.mubr.msk.bf16.gmra.mrb[80].mxu1 %vm1549_vm5, %v4365_v37 }
 0x33a   :  { %5598 = vmatprep.mubr.bf16.mxu1 %v7126_v7 }
 0x33d   :  { %5125 = vmatmul.mubr.bf16.gmra.mrb[208].mxu0 %v4371_v38 }
 0x33e   :  { %5165 = vmatprep.mubr.bf16.mxu0 %v4259_v14 }
 0x341   :  { %6225 = vmatmul.mubr.msk.bf16.gmra.mrb[84].mxu1 %vm1549_vm5, %v4370_v9 }
 0x342   :  { %5606 = vmatprep.mubr.bf16.mxu1 %v7126_v7  ;;  %v4448_v7 = vld [vmem:[%s9213_s5] sm:$0x3] }
 0x343   :  { %v9106_v28 = vrot.slane %v4448_v7, %v4452_v16  ;;  %v9108_v59 = vrot.slane %v4448_v7, %v4456_v26 }
 0x345   :  { %5166 = vmatmul.mubr.bf16.vlgmr.msra.gmra.mrb[116].mxu0 %v4258_v4 }
 0x349   :  { %6226 = vmatmul.mubr.msk.bf16.gmra.mrb[88].mxu1 %vm1549_vm5, %v4375_v49 }
 0x360   :  { %v4936_v17 = vpop.f32.mrb[120].mxu0 }
 0x361   :  { %v4937_v2 = vpop.f32.mrb[121].mxu0 }
 0x362   :  { %v4938_v58 = vpop.f32.mrb[122].mxu0 }
 0x363   :  { %v4940_v50 = vpop.f32.mrb[123].mxu0  ;;  %v4939_v34 = vadd.f32 %v4938_v58, %v9106_v28 }
 0x364   :  { %v9095_v27 = vpop.f32.mrb[92].mxu1  ;;  %v4941_v51 = vadd.f32 %v4940_v50, %v9108_v59 }
 0x365   :  { %v9097_v15 = vpop.f32.mrb[93].mxu1 }
 0x366   :  { %v9102_v33 = vpop.f32.mrb[94].mxu1 }
 0x367   :  { %v9104_v10 = vpop.f32.mrb[95].mxu1 }
 0x368   :  { %v4944_v63 = vpop.f32.mrb[124].mxu0 }
 0x369   :  { %v4946_v31 = vpop.f32.mrb[125].mxu0  ;;  %v4945_v22 = vadd.f32 %v4944_v63, %v9106_v28 }
 0x36a   :  { %v4948_v56 = vpop.f32.mrb[126].mxu0  ;;  %v4947_v21 = vadd.f32 %v4946_v31, %v9108_v59 }
 0x36b   :  { %v4949_v44 = vpop.f32.mrb[127].mxu0 }
 0x36c   :  { %v5418_v23 = vpop.f32.mrb[0].mxu1 }
 0x36d   :  { %v5419_v1 = vpop.f32.mrb[1].mxu1 }
 0x36e   :  { %v5420_v55 = vpop.f32.mrb[2].mxu1 }
 0x36f   :  { %v6571_v5 = vadd.f32 %v5420_v55, %v4939_v34  ;;  %v5422_v0 = vpop.f32.mrb[3].mxu1 }
 0x370   :  { %v6573_v12 = vadd.f32 %v5422_v0, %v4941_v51  ;;  %v4952_v20 = vpop.f32.mrb[128].mxu0 }
 0x371   :  { %v5619_v39 = vmax.f32 %v6571_v5, 0.0  ;;  %v4954_v47 = vpop.f32.mrb[129].mxu0  ;;  %v4953_v32 = vadd.f32 %v4952_v20, %v9106_v28 }
 0x372   :  { %v5620_v43 = vmax.f32 %v6573_v12, 0.0  ;;  %v4956_v29 = vpop.f32.mrb[130].mxu0  ;;  %v4955_v53 = vadd.f32 %v4954_v47, %v9108_v59 }
 0x373   :  { %v4958_v13 = vpop.f32.mrb[131].mxu0  ;;  %v4957_v30 = vadd.f32 %v4956_v29, %v9106_v28 }
 0x374   :  { %v9114_v25 = vmax.f32 %v5619_v39, %v5620_v43  ;;  %v5426_v57 = vpop.f32.mrb[4].mxu1  ;;  %v4959_v3 = vadd.f32 %v4958_v13, %v9108_v59 }
 0x375   :  { %v6575_v41 = vadd.f32 %v5426_v57, %v4945_v22  ;;  %v5428_v8 = vpop.f32.mrb[5].mxu1 }
 0x376   :  { %v6577_v45 = vadd.f32 %v5428_v8, %v4947_v21  ;;  %v5430_v35 = vpop.f32.mrb[6].mxu1 }
 0x377   :  { %v5621_v61 = vmax.f32 %v6575_v41, 0.0  ;;  %v5431_v36 = vpop.f32.mrb[7].mxu1 }
 0x378   :  { %v5622_v52 = vmax.f32 %v6577_v45, 0.0  ;;  %v4962_v40 = vpop.f32.mrb[132].mxu0 }
 0x379   :  { %v4963_v42 = vpop.f32.mrb[133].mxu0 }
 0x37a   :  { %v9116_v60 = vmax.f32 %v5621_v61, %v5622_v52  ;;  %v4964_v24 = vpop.f32.mrb[134].mxu0 }
 0x37b   :  { %v4966_v11 = vpop.f32.mrb[135].mxu0  ;;  %v4965_v26 = vadd.f32 %v4964_v24, %v9106_v28 }
 0x37c   :  { %v5434_v48 = vpop.f32.mrb[8].mxu1  ;;  %v4967_v31 = vadd.f32 %v4966_v11, %v9108_v59 }
 0x37d   :  { %v6579_v18 = vadd.f32 %v5434_v48, %v4953_v32  ;;  %v5436_v62 = vpop.f32.mrb[9].mxu1 }
 0x37e   :  { %v6581_v6 = vadd.f32 %v5436_v62, %v4955_v53  ;;  %v5438_v54 = vpop.f32.mrb[10].mxu1 }
 0x37f   :  { %v5623_v37 = vmax.f32 %v6579_v18, 0.0  ;;  %v6583_v38 = vadd.f32 %v5438_v54, %v4957_v30  ;;  %v5440_v14 = vpop.f32.mrb[11].mxu1 }
 0x380   :  { %v5624_v9 = vmax.f32 %v6581_v6, 0.0  ;;  %v6585_v4 = vadd.f32 %v5440_v14, %v4959_v3  ;;  %v4970_v49 = vpop.f32.mrb[136].mxu0 }
 0x381   :  { %v5625_v19 = vmax.f32 %v6583_v38, 0.0  ;;  %v4972_v17 = vpop.f32.mrb[137].mxu0  ;;  %v4971_v12 = vadd.f32 %v4970_v49, %v9106_v28 }
 0x382   :  { %v5683_v2 = vmax.f32 %v5623_v37, %v5624_v9  ;;  %v5626_v46 = vmax.f32 %v6585_v4, 0.0  ;;  %v4974_v58 = vpop.f32.mrb[138].mxu0  ;;  %v4973_v39 = vadd.f32 %v4972_v17, %v9108_v59 }
 0x383   :  { %v4975_v50 = vpop.f32.mrb[139].mxu0 }
 0x384   :  { %v5684_v16 = vmax.f32 %v5625_v19, %v5626_v46  ;;  %v5444_v7 = vpop.f32.mrb[12].mxu1 }
 0x385   :  { %v5445_v63 = vpop.f32.mrb[13].mxu1 }
 0x386   :  { %v5446_v56 = vpop.f32.mrb[14].mxu1 }
 0x387   :  { %v6587_v44 = vadd.f32 %v5446_v56, %v4965_v26  ;;  %v5448_v23 = vpop.f32.mrb[15].mxu1 }
 0x388   :  { %v6589_v34 = vadd.f32 %v5448_v23, %v4967_v31  ;;  %v4978_v1 = vpop.f32.mrb[140].mxu0 }
 0x389   :  { %v5627_v51 = vmax.f32 %v6587_v44, 0.0  ;;  %v4980_v55 = vpop.f32.mrb[141].mxu0  ;;  %v4979_v40 = vadd.f32 %v4978_v1, %v9106_v28 }
 0x38a   :  { %v5628_v5 = vmax.f32 %v6589_v34, 0.0  ;;  %v4982_v0 = vpop.f32.mrb[142].mxu0  ;;  %v4981_v24 = vadd.f32 %v4980_v55, %v9108_v59 }
 0x38b   :  { %v4984_v20 = vpop.f32.mrb[143].mxu0  ;;  %v4983_v53 = vadd.f32 %v4982_v0, %v9106_v28 }
 0x38c   :  { %v5685_v47 = vmax.f32 %v5627_v51, %v5628_v5  ;;  %v5452_v43 = vpop.f32.mrb[16].mxu1  ;;  %v4985_v18 = vadd.f32 %v4984_v20, %v9108_v59 }
 0x38d   :  { %v6591_v29 = vadd.f32 %v5452_v43, %v4971_v12  ;;  %v5454_v22 = vpop.f32.mrb[17].mxu1 }
 0x38e   :  { %v5715_v13 = vmax.f32 %v5683_v2, %v5685_v47  ;;  %v6593_v21 = vadd.f32 %v5454_v22, %v4973_v39  ;;  %v5456_v57 = vpop.f32.mrb[18].mxu1 }
 0x38f   :  { %v5629_v41 = vmax.f32 %v6591_v29, 0.0  ;;  %v5457_v8 = vpop.f32.mrb[19].mxu1 }
 0x390   :  { %5717 = vst [vmem:[#allocation4 + $0x10] sm:$0xff] %v5715_v13  ;;  %v5630_v45 = vmax.f32 %v6593_v21, 0.0  ;;  %v4988_v35 = vpop.f32.mrb[144].mxu0 }
 0x391   :  { %v4989_v61 = vpop.f32.mrb[145].mxu0 }
 0x392   :  { %v5686_v36 = vmax.f32 %v5629_v41, %v5630_v45  ;;  %v4990_v52 = vpop.f32.mrb[146].mxu0 }
 0x393   :  { %v4992_v42 = vpop.f32.mrb[147].mxu0  ;;  %v4991_v26 = vadd.f32 %v4990_v52, %v9106_v28 }
 0x394   :  { %v5716_v32 = vmax.f32 %v5684_v16, %v5686_v36  ;;  %v5460_v11 = vpop.f32.mrb[20].mxu1  ;;  %v4993_v56 = vadd.f32 %v4992_v42, %v9108_v59 }
 0x395   :  { %v6595_v48 = vadd.f32 %v5460_v11, %v4979_v40  ;;  %v5462_v30 = vpop.f32.mrb[21].mxu1 }
 0x396   :  { %5718 = vst [vmem:[#allocation4 + $0x18] sm:$0xff] %v5716_v32  ;;  %v6597_v62 = vadd.f32 %v5462_v30, %v4981_v24  ;;  %v5464_v3 = vpop.f32.mrb[22].mxu1 }
 0x397   :  { %v5631_v6 = vmax.f32 %v6595_v48, 0.0  ;;  %v6599_v54 = vadd.f32 %v5464_v3, %v4983_v53  ;;  %v5466_v37 = vpop.f32.mrb[23].mxu1 }
 0x398   :  { %v5632_v38 = vmax.f32 %v6597_v62, 0.0  ;;  %v6601_v14 = vadd.f32 %v5466_v37, %v4985_v18  ;;  %v4996_v9 = vpop.f32.mrb[148].mxu0 }
 0x399   :  { %v5633_v4 = vmax.f32 %v6599_v54, 0.0  ;;  %v4998_v49 = vpop.f32.mrb[149].mxu0  ;;  %v4997_v20 = vadd.f32 %v4996_v9, %v9106_v28 }
 0x39a   :  { %v5687_v19 = vmax.f32 %v5631_v6, %v5632_v38  ;;  %v5634_v17 = vmax.f32 %v6601_v14, 0.0  ;;  %v5000_v2 = vpop.f32.mrb[150].mxu0  ;;  %v4999_v47 = vadd.f32 %v4998_v49, %v9108_v59 }
 0x39b   :  { %v5001_v46 = vpop.f32.mrb[151].mxu0 }
 0x39c   :  { %v5688_v58 = vmax.f32 %v5633_v4, %v5634_v17  ;;  %v5470_v50 = vpop.f32.mrb[24].mxu1 }
 0x39d   :  { %v5745_v16 = vld [vmem:[#allocation4 + $0x10] ss:$2 sm:$0xff]  ;;  %v5761_v7 = vld [vmem:[#allocation4 + $0x11] ss:$2 sm:$0xff]  ;;  %v5471_v63 = vpop.f32.mrb[25].mxu1 }
 0x39e   :  { %v5775_v31 = vmax.f32 %v5745_v16, %v5761_v7  ;;  %v5472_v44 = vpop.f32.mrb[26].mxu1 }
 0x39f   :  { %v6603_v23 = vadd.f32 %v5472_v44, %v4991_v26  ;;  %v5474_v34 = vpop.f32.mrb[27].mxu1 }
 0x3a0   :  { %5783 = vst [vmem:[%s9214_s6 + $0x8] sm:$0xff] %v5775_v31  ;;  %v6605_v1 = vadd.f32 %v5474_v34, %v4993_v56  ;;  %v5004_v51 = vpop.f32.mrb[152].mxu0 }
 0x3a1   :  { %v5635_v55 = vmax.f32 %v6603_v23, 0.0  ;;  %v5006_v5 = vpop.f32.mrb[153].mxu0  ;;  %v5005_v42 = vadd.f32 %v5004_v51, %v9106_v28 }
 0x3a2   :  { %v5636_v0 = vmax.f32 %v6605_v1, 0.0  ;;  %v5008_v12 = vpop.f32.mrb[154].mxu0  ;;  %v5007_v32 = vadd.f32 %v5006_v5, %v9108_v59 }
 0x3a3   :  { %v5010_v39 = vpop.f32.mrb[155].mxu0  ;;  %v5009_v48 = vadd.f32 %v5008_v12, %v9106_v28 }
 0x3a4   :  { %v5689_v43 = vmax.f32 %v5635_v55, %v5636_v0  ;;  %v5478_v29 = vpop.f32.mrb[28].mxu1  ;;  %v5011_v62 = vadd.f32 %v5010_v39, %v9108_v59 }
 0x3a5   :  { %v6607_v22 = vadd.f32 %v5478_v29, %v4997_v20  ;;  %v5480_v13 = vpop.f32.mrb[29].mxu1 }
 0x3a6   :  { %v5719_v21 = vmax.f32 %v5687_v19, %v5689_v43  ;;  %v6609_v57 = vadd.f32 %v5480_v13, %v4999_v47  ;;  %v5482_v41 = vpop.f32.mrb[30].mxu1 }
 0x3a7   :  { %v5637_v8 = vmax.f32 %v6607_v22, 0.0  ;;  %v5483_v45 = vpop.f32.mrb[31].mxu1 }
 0x3a8   :  { %5721 = vst [vmem:[#allocation4 + $0x20] sm:$0xff] %v5719_v21  ;;  %v5638_v35 = vmax.f32 %v6609_v57, 0.0  ;;  %v5014_v61 = vpop.f32.mrb[156].mxu0 }
 0x3a9   :  { %v5015_v36 = vpop.f32.mrb[157].mxu0 }
 0x3aa   :  { %v5690_v52 = vmax.f32 %v5637_v8, %v5638_v35  ;;  %v5016_v40 = vpop.f32.mrb[158].mxu0 }
 0x3ab   :  { %v5018_v24 = vpop.f32.mrb[159].mxu0  ;;  %v5017_v63 = vadd.f32 %v5016_v40, %v9106_v28 }
 0x3ac   :  { %v5720_v11 = vmax.f32 %v5688_v58, %v5690_v52  ;;  %v5486_v53 = vpop.f32.mrb[32].mxu1  ;;  %v5019_v44 = vadd.f32 %v5018_v24, %v9108_v59 }
 0x3ad   :  { %v6611_v30 = vadd.f32 %v5486_v53, %v5005_v42  ;;  %v5488_v18 = vpop.f32.mrb[33].mxu1 }
 0x3ae   :  { %5722 = vst [vmem:[#allocation4 + $0x28] sm:$0xff] %v5720_v11  ;;  %v6613_v3 = vadd.f32 %v5488_v18, %v5007_v32  ;;  %v5490_v6 = vpop.f32.mrb[34].mxu1 }
 0x3af   :  { %v5639_v54 = vmax.f32 %v6611_v30, 0.0  ;;  %v6615_v37 = vadd.f32 %v5490_v6, %v5009_v48  ;;  %v5492_v38 = vpop.f32.mrb[35].mxu1 }
 0x3b0   :  { %v5640_v14 = vmax.f32 %v6613_v3, 0.0  ;;  %v6617_v9 = vadd.f32 %v5492_v38, %v5011_v62  ;;  %v5022_v4 = vpop.f32.mrb[160].mxu0 }
 0x3b1   :  { %v5641_v49 = vmax.f32 %v6615_v37, 0.0  ;;  %v5024_v19 = vpop.f32.mrb[161].mxu0  ;;  %v5023_v39 = vadd.f32 %v5022_v4, %v9106_v28 }
 0x3b2   :  { %v5691_v17 = vmax.f32 %v5639_v54, %v5640_v14  ;;  %v5642_v2 = vmax.f32 %v6617_v9, 0.0  ;;  %v5026_v46 = vpop.f32.mrb[162].mxu0  ;;  %v5025_v43 = vadd.f32 %v5024_v19, %v9108_v59 }
 0x3b3   :  { %v5027_v58 = vpop.f32.mrb[163].mxu0 }
 0x3b4   :  { %v5692_v50 = vmax.f32 %v5641_v49, %v5642_v2  ;;  %v5496_v16 = vpop.f32.mrb[36].mxu1 }
 0x3b5   :  { %v5747_v7 = vld [vmem:[#allocation4 + $0x20] ss:$2 sm:$0xff]  ;;  %v5763_v26 = vld [vmem:[#allocation4 + $0x21] ss:$2 sm:$0xff]  ;;  %v5497_v31 = vpop.f32.mrb[37].mxu1 }
 0x3b6   :  { %v5776_v56 = vmax.f32 %v5747_v7, %v5763_v26  ;;  %v5498_v23 = vpop.f32.mrb[38].mxu1 }
 0x3b7   :  { %v6619_v34 = vadd.f32 %v5498_v23, %v5017_v63  ;;  %v5500_v1 = vpop.f32.mrb[39].mxu1 }
 0x3b8   :  { %5784 = vst [vmem:[%s9214_s6 + $0x10] sm:$0xff] %v5776_v56  ;;  %v6621_v51 = vadd.f32 %v5500_v1, %v5019_v44  ;;  %v5030_v55 = vpop.f32.mrb[164].mxu0 }
 0x3b9   :  { %v5643_v5 = vmax.f32 %v6619_v34, 0.0  ;;  %v5032_v0 = vpop.f32.mrb[165].mxu0  ;;  %v5031_v24 = vadd.f32 %v5030_v55, %v9106_v28 }
 0x3ba   :  { %v5644_v12 = vmax.f32 %v6621_v51, 0.0  ;;  %v5034_v20 = vpop.f32.mrb[166].mxu0  ;;  %v5033_v11 = vadd.f32 %v5032_v0, %v9108_v59 }
 0x3bb   :  { %v5036_v47 = vpop.f32.mrb[167].mxu0  ;;  %v5035_v30 = vadd.f32 %v5034_v20, %v9106_v28 }
 0x3bc   :  { %v5693_v29 = vmax.f32 %v5643_v5, %v5644_v12  ;;  %v5504_v22 = vpop.f32.mrb[40].mxu1  ;;  %v5037_v3 = vadd.f32 %v5036_v47, %v9108_v59 }
 0x3bd   :  { %v6623_v13 = vadd.f32 %v5504_v22, %v5023_v39  ;;  %v5506_v21 = vpop.f32.mrb[41].mxu1 }
 0x3be   :  { %v5723_v57 = vmax.f32 %v5691_v17, %v5693_v29  ;;  %v6625_v41 = vadd.f32 %v5506_v21, %v5025_v43  ;;  %v5508_v8 = vpop.f32.mrb[42].mxu1 }
 0x3bf   :  { %v5645_v45 = vmax.f32 %v6623_v13, 0.0  ;;  %v5509_v35 = vpop.f32.mrb[43].mxu1 }
 0x3c0   :  { %5725 = vst [vmem:[#allocation4 + $0x30] sm:$0xff] %v5723_v57  ;;  %v5646_v61 = vmax.f32 %v6625_v41, 0.0  ;;  %v5040_v36 = vpop.f32.mrb[168].mxu0 }
 0x3c1   :  { %v5041_v52 = vpop.f32.mrb[169].mxu0 }
 0x3c2   :  { %v5694_v40 = vmax.f32 %v5645_v45, %v5646_v61  ;;  %v5042_v42 = vpop.f32.mrb[170].mxu0 }
 0x3c3   :  { %v5044_v32 = vpop.f32.mrb[171].mxu0  ;;  %v5043_v31 = vadd.f32 %v5042_v42, %v9106_v28 }
 0x3c4   :  { %v5724_v53 = vmax.f32 %v5692_v50, %v5694_v40  ;;  %v5512_v48 = vpop.f32.mrb[44].mxu1  ;;  %v5045_v23 = vadd.f32 %v5044_v32, %v9108_v59 }
 0x3c5   :  { %v6627_v18 = vadd.f32 %v5512_v48, %v5031_v24  ;;  %v5514_v62 = vpop.f32.mrb[45].mxu1 }
 0x3c6   :  { %5726 = vst [vmem:[#allocation4 + $0x38] sm:$0xff] %v5724_v53  ;;  %v6629_v6 = vadd.f32 %v5514_v62, %v5033_v11  ;;  %v5516_v54 = vpop.f32.mrb[46].mxu1 }
 0x3c7   :  { %v5647_v37 = vmax.f32 %v6627_v18, 0.0  ;;  %v6631_v38 = vadd.f32 %v5516_v54, %v5035_v30  ;;  %v5518_v14 = vpop.f32.mrb[47].mxu1 }
 0x3c8   :  { %v5648_v9 = vmax.f32 %v6629_v6, 0.0  ;;  %v6633_v4 = vadd.f32 %v5518_v14, %v5037_v3  ;;  %v5048_v49 = vpop.f32.mrb[172].mxu0 }
 0x3c9   :  { %v5649_v19 = vmax.f32 %v6631_v38, 0.0  ;;  %v5050_v17 = vpop.f32.mrb[173].mxu0  ;;  %v5049_v47 = vadd.f32 %v5048_v49, %v9106_v28 }
 0x3ca   :  { %v5695_v2 = vmax.f32 %v5647_v37, %v5648_v9  ;;  %v5650_v46 = vmax.f32 %v6633_v4, 0.0  ;;  %v5052_v58 = vpop.f32.mrb[174].mxu0  ;;  %v5051_v29 = vadd.f32 %v5050_v17, %v9108_v59 }
 0x3cb   :  { %v5053_v50 = vpop.f32.mrb[175].mxu0 }
 0x3cc   :  { %v5696_v16 = vmax.f32 %v5649_v19, %v5650_v46  ;;  %v5522_v7 = vpop.f32.mrb[48].mxu1 }
 0x3cd   :  { %v5749_v26 = vld [vmem:[#allocation4 + $0x30] ss:$2 sm:$0xff]  ;;  %v5765_v63 = vld [vmem:[#allocation4 + $0x31] ss:$2 sm:$0xff]  ;;  %v5523_v56 = vpop.f32.mrb[49].mxu1 }
 0x3ce   :  { %v5777_v44 = vmax.f32 %v5749_v26, %v5765_v63  ;;  %v5524_v34 = vpop.f32.mrb[50].mxu1 }
 0x3cf   :  { %v6635_v1 = vadd.f32 %v5524_v34, %v5043_v31  ;;  %v5526_v51 = vpop.f32.mrb[51].mxu1 }
 0x3d0   :  { %5785 = vst [vmem:[%s9214_s6 + $0x18] sm:$0xff] %v5777_v44  ;;  %v6637_v55 = vadd.f32 %v5526_v51, %v5045_v23  ;;  %v5056_v5 = vpop.f32.mrb[176].mxu0 }
 0x3d1   :  { %v5651_v0 = vmax.f32 %v6635_v1, 0.0  ;;  %v5058_v12 = vpop.f32.mrb[177].mxu0  ;;  %v5057_v32 = vadd.f32 %v5056_v5, %v9106_v28 }
 0x3d2   :  { %v5652_v20 = vmax.f32 %v6637_v55, 0.0  ;;  %v5060_v39 = vpop.f32.mrb[178].mxu0  ;;  %v5059_v53 = vadd.f32 %v5058_v12, %v9108_v59 }
 0x3d3   :  { %v5062_v43 = vpop.f32.mrb[179].mxu0  ;;  %v5061_v18 = vadd.f32 %v5060_v39, %v9106_v28 }
 0x3d4   :  { %v5697_v22 = vmax.f32 %v5651_v0, %v5652_v20  ;;  %v5530_v13 = vpop.f32.mrb[52].mxu1  ;;  %v5063_v6 = vadd.f32 %v5062_v43, %v9108_v59 }
 0x3d5   :  { %v6639_v21 = vadd.f32 %v5530_v13, %v5049_v47  ;;  %v5532_v57 = vpop.f32.mrb[53].mxu1 }
 0x3d6   :  { %v5727_v41 = vmax.f32 %v5695_v2, %v5697_v22  ;;  %v6641_v8 = vadd.f32 %v5532_v57, %v5051_v29  ;;  %v5534_v45 = vpop.f32.mrb[54].mxu1 }
 0x3d7   :  { %v5653_v35 = vmax.f32 %v6639_v21, 0.0  ;;  %v5535_v61 = vpop.f32.mrb[55].mxu1 }
 0x3d8   :  { %5729 = vst [vmem:[#allocation4 + $0x40] sm:$0xff] %v5727_v41  ;;  %v5654_v36 = vmax.f32 %v6641_v8, 0.0  ;;  %v5066_v52 = vpop.f32.mrb[180].mxu0 }
 0x3d9   :  { %v5067_v40 = vpop.f32.mrb[181].mxu0 }
 0x3da   :  { %v5698_v42 = vmax.f32 %v5653_v35, %v5654_v36  ;;  %v5068_v24 = vpop.f32.mrb[182].mxu0 }
 0x3db   :  { %v5070_v11 = vpop.f32.mrb[183].mxu0  ;;  %v5069_v56 = vadd.f32 %v5068_v24, %v9106_v28 }
 0x3dc   :  { %v5728_v48 = vmax.f32 %v5696_v16, %v5698_v42  ;;  %v5538_v30 = vpop.f32.mrb[56].mxu1  ;;  %v5071_v34 = vadd.f32 %v5070_v11, %v9108_v59 }
 0x3dd   :  { %v6643_v62 = vadd.f32 %v5538_v30, %v5057_v32  ;;  %v5540_v3 = vpop.f32.mrb[57].mxu1 }
 0x3de   :  { %5730 = vst [vmem:[#allocation4 + $0x48] sm:$0xff] %v5728_v48  ;;  %v6645_v54 = vadd.f32 %v5540_v3, %v5059_v53  ;;  %v5542_v37 = vpop.f32.mrb[58].mxu1 }
 0x3df   :  { %v5655_v38 = vmax.f32 %v6643_v62, 0.0  ;;  %v6647_v14 = vadd.f32 %v5542_v37, %v5061_v18  ;;  %v5544_v9 = vpop.f32.mrb[59].mxu1 }
 0x3e0   :  { %v5656_v4 = vmax.f32 %v6645_v54, 0.0  ;;  %v6649_v49 = vadd.f32 %v5544_v9, %v5063_v6  ;;  %v5074_v19 = vpop.f32.mrb[184].mxu0 }
 0x3e1   :  { %v5657_v17 = vmax.f32 %v6647_v14, 0.0  ;;  %v5076_v2 = vpop.f32.mrb[185].mxu0  ;;  %v5075_v43 = vadd.f32 %v5074_v19, %v9106_v28 }
 0x3e2   :  { %v5699_v46 = vmax.f32 %v5655_v38, %v5656_v4  ;;  %v5658_v58 = vmax.f32 %v6649_v49, 0.0  ;;  %v5078_v50 = vpop.f32.mrb[186].mxu0  ;;  %v5077_v22 = vadd.f32 %v5076_v2, %v9108_v59 }
 0x3e3   :  { %v5079_v16 = vpop.f32.mrb[187].mxu0 }
 0x3e4   :  { %v5700_v7 = vmax.f32 %v5657_v17, %v5658_v58  ;;  %v5548_v26 = vpop.f32.mrb[60].mxu1 }
 0x3e5   :  { %v5751_v63 = vld [vmem:[#allocation4 + $0x40] ss:$2 sm:$0xff]  ;;  %v5767_v31 = vld [vmem:[#allocation4 + $0x41] ss:$2 sm:$0xff]  ;;  %v5549_v44 = vpop.f32.mrb[61].mxu1 }
 0x3e6   :  { %v5778_v23 = vmax.f32 %v5751_v63, %v5767_v31  ;;  %v5550_v1 = vpop.f32.mrb[62].mxu1 }
 0x3e7   :  { %v6651_v51 = vadd.f32 %v5550_v1, %v5069_v56  ;;  %v5552_v55 = vpop.f32.mrb[63].mxu1 }
 0x3e8   :  { %5786 = vst [vmem:[%s9214_s6 + $0x20] sm:$0xff] %v5778_v23  ;;  %v6653_v5 = vadd.f32 %v5552_v55, %v5071_v34  ;;  %v5082_v0 = vpop.f32.mrb[188].mxu0 }
 0x3e9   :  { %v5659_v12 = vmax.f32 %v6651_v51, 0.0  ;;  %v5084_v20 = vpop.f32.mrb[189].mxu0  ;;  %v5083_v11 = vadd.f32 %v5082_v0, %v9106_v28 }
 0x3ea   :  { %v5660_v39 = vmax.f32 %v6653_v5, 0.0  ;;  %v5086_v47 = vpop.f32.mrb[190].mxu0  ;;  %v5085_v48 = vadd.f32 %v5084_v20, %v9108_v59 }
 0x3eb   :  { %v5088_v29 = vpop.f32.mrb[191].mxu0  ;;  %v5087_v62 = vadd.f32 %v5086_v47, %v9106_v28 }
 0x3ec   :  { %v5701_v13 = vmax.f32 %v5659_v12, %v5660_v39  ;;  %v5556_v21 = vpop.f32.mrb[64].mxu1  ;;  %v5089_v54 = vadd.f32 %v5088_v29, %v9108_v59 }
 0x3ed   :  { %v6655_v57 = vadd.f32 %v5556_v21, %v5075_v43  ;;  %v5558_v41 = vpop.f32.mrb[65].mxu1 }
 0x3ee   :  { %v5731_v8 = vmax.f32 %v5699_v46, %v5701_v13  ;;  %v6657_v45 = vadd.f32 %v5558_v41, %v5077_v22  ;;  %v5560_v35 = vpop.f32.mrb[66].mxu1 }
 0x3ef   :  { %v5661_v61 = vmax.f32 %v6655_v57, 0.0  ;;  %v5561_v36 = vpop.f32.mrb[67].mxu1 }
 0x3f0   :  { %5733 = vst [vmem:[#allocation4 + $0x50] sm:$0xff] %v5731_v8  ;;  %v5662_v52 = vmax.f32 %v6657_v45, 0.0  ;;  %v5092_v40 = vpop.f32.mrb[192].mxu0 }
 0x3f1   :  { %v5093_v42 = vpop.f32.mrb[193].mxu0 }
 0x3f2   :  { %v5702_v24 = vmax.f32 %v5661_v61, %v5662_v52  ;;  %v5094_v32 = vpop.f32.mrb[194].mxu0 }
 0x3f3   :  { %v5096_v53 = vpop.f32.mrb[195].mxu0  ;;  %v5095_v44 = vadd.f32 %v5094_v32, %v9106_v28 }
 0x3f4   :  { %v5732_v30 = vmax.f32 %v5700_v7, %v5702_v24  ;;  %v5564_v18 = vpop.f32.mrb[68].mxu1  ;;  %v5097_v1 = vadd.f32 %v5096_v53, %v9108_v59 }
 0x3f5   :  { %v6659_v3 = vadd.f32 %v5564_v18, %v5083_v11  ;;  %v5566_v6 = vpop.f32.mrb[69].mxu1 }
 0x3f6   :  { %5734 = vst [vmem:[#allocation4 + $0x58] sm:$0xff] %v5732_v30  ;;  %v6661_v37 = vadd.f32 %v5566_v6, %v5085_v48  ;;  %v5568_v38 = vpop.f32.mrb[70].mxu1 }
 0x3f7   :  { %v5663_v14 = vmax.f32 %v6659_v3, 0.0  ;;  %v6663_v9 = vadd.f32 %v5568_v38, %v5087_v62  ;;  %v5570_v4 = vpop.f32.mrb[71].mxu1 }
 0x3f8   :  { %v5664_v49 = vmax.f32 %v6661_v37, 0.0  ;;  %v6665_v19 = vadd.f32 %v5570_v4, %v5089_v54  ;;  %v5100_v17 = vpop.f32.mrb[196].mxu0 }
 0x3f9   :  { %v5665_v2 = vmax.f32 %v6663_v9, 0.0  ;;  %v5102_v46 = vpop.f32.mrb[197].mxu0  ;;  %v5101_v29 = vadd.f32 %v5100_v17, %v9106_v28 }
 0x3fa   :  { %v5703_v58 = vmax.f32 %v5663_v14, %v5664_v49  ;;  %v5666_v50 = vmax.f32 %v6665_v19, 0.0  ;;  %v5104_v16 = vpop.f32.mrb[198].mxu0  ;;  %v5103_v13 = vadd.f32 %v5102_v46, %v9108_v59 }
 0x3fb   :  { %v5105_v7 = vpop.f32.mrb[199].mxu0 }
 0x3fc   :  { %v5704_v26 = vmax.f32 %v5665_v2, %v5666_v50  ;;  %v5574_v63 = vpop.f32.mrb[72].mxu1 }
 0x3fd   :  { %v5753_v31 = vld [vmem:[#allocation4 + $0x50] ss:$2 sm:$0xff]  ;;  %v5769_v56 = vld [vmem:[#allocation4 + $0x51] ss:$2 sm:$0xff]  ;;  %v5575_v23 = vpop.f32.mrb[73].mxu1 }
 0x3fe   :  { %v5779_v34 = vmax.f32 %v5753_v31, %v5769_v56  ;;  %v5576_v51 = vpop.f32.mrb[74].mxu1 }
 0x3ff   :  { %v6667_v55 = vadd.f32 %v5576_v51, %v5095_v44  ;;  %v5578_v5 = vpop.f32.mrb[75].mxu1 }
 0x400   :  { %5787 = vst [vmem:[%s9214_s6 + $0x28] sm:$0xff] %v5779_v34  ;;  %v6669_v0 = vadd.f32 %v5578_v5, %v5097_v1  ;;  %v5108_v12 = vpop.f32.mrb[200].mxu0 }
 0x401   :  { %v5667_v20 = vmax.f32 %v6667_v55, 0.0  ;;  %v5110_v39 = vpop.f32.mrb[201].mxu0  ;;  %v5109_v53 = vadd.f32 %v5108_v12, %v9106_v28 }
 0x402   :  { %v5668_v47 = vmax.f32 %v6669_v0, 0.0  ;;  %v5112_v43 = vpop.f32.mrb[202].mxu0  ;;  %v5111_v30 = vadd.f32 %v5110_v39, %v9108_v59 }
 0x403   :  { %v5114_v22 = vpop.f32.mrb[203].mxu0  ;;  %v5113_v3 = vadd.f32 %v5112_v43, %v9106_v28 }
 0x404   :  { %v5705_v21 = vmax.f32 %v5667_v20, %v5668_v47  ;;  %v5582_v57 = vpop.f32.mrb[76].mxu1  ;;  %v5115_v37 = vadd.f32 %v5114_v22, %v9108_v59 }
 0x405   :  { %v6671_v41 = vadd.f32 %v5582_v57, %v5101_v29  ;;  %v5584_v8 = vpop.f32.mrb[77].mxu1 }
 0x406   :  { %v5735_v45 = vmax.f32 %v5703_v58, %v5705_v21  ;;  %v6673_v35 = vadd.f32 %v5584_v8, %v5103_v13  ;;  %v5586_v61 = vpop.f32.mrb[78].mxu1 }
 0x407   :  { %v5669_v36 = vmax.f32 %v6671_v41, 0.0  ;;  %v5587_v52 = vpop.f32.mrb[79].mxu1 }
 0x408   :  { %5737 = vst [vmem:[#allocation4 + $0x60] sm:$0xff] %v5735_v45  ;;  %v5670_v40 = vmax.f32 %v6673_v35, 0.0  ;;  %v5118_v42 = vpop.f32.mrb[204].mxu0 }
 0x409   :  { %v5119_v24 = vpop.f32.mrb[205].mxu0 }
 0x40a   :  { %v5706_v32 = vmax.f32 %v5669_v36, %v5670_v40  ;;  %v5120_v11 = vpop.f32.mrb[206].mxu0 }
 0x40b   :  { %v5122_v48 = vpop.f32.mrb[207].mxu0  ;;  %v5121_v23 = vadd.f32 %v5120_v11, %v9106_v28 }
 0x40c   :  { %v5736_v18 = vmax.f32 %v5704_v26, %v5706_v32  ;;  %v5590_v62 = vpop.f32.mrb[80].mxu1  ;;  %v5123_v51 = vadd.f32 %v5122_v48, %v9108_v59 }
 0x40d   :  { %v6675_v6 = vadd.f32 %v5590_v62, %v5109_v53  ;;  %v5592_v54 = vpop.f32.mrb[81].mxu1 }
 0x40e   :  { %5738 = vst [vmem:[#allocation4 + $0x68] sm:$0xff] %v5736_v18  ;;  %v6677_v38 = vadd.f32 %v5592_v54, %v5111_v30  ;;  %v5594_v14 = vpop.f32.mrb[82].mxu1 }
 0x40f   :  { %v5671_v9 = vmax.f32 %v6675_v6, 0.0  ;;  %v6679_v4 = vadd.f32 %v5594_v14, %v5113_v3  ;;  %v5596_v49 = vpop.f32.mrb[83].mxu1 }
 0x410   :  { %v5672_v19 = vmax.f32 %v6677_v38, 0.0  ;;  %v6681_v17 = vadd.f32 %v5596_v49, %v5115_v37  ;;  %v5126_v2 = vpop.f32.mrb[208].mxu0 }
 0x411   :  { %v5673_v46 = vmax.f32 %v6679_v4, 0.0  ;;  %v5128_v58 = vpop.f32.mrb[209].mxu0  ;;  %v5127_v21 = vadd.f32 %v5126_v2, %v9106_v28 }
 0x412   :  { %v5707_v50 = vmax.f32 %v5671_v9, %v5672_v19  ;;  %v5674_v16 = vmax.f32 %v6681_v17, 0.0  ;;  %v5130_v7 = vpop.f32.mrb[210].mxu0  ;;  %v5129_v45 = vadd.f32 %v5128_v58, %v9108_v59 }
 0x413   :  { %v5131_v26 = vpop.f32.mrb[211].mxu0 }
 0x414   :  { %v5708_v63 = vmax.f32 %v5673_v46, %v5674_v16  ;;  %v5600_v31 = vpop.f32.mrb[84].mxu1 }
 0x415   :  { %v5755_v56 = vld [vmem:[#allocation4 + $0x60] ss:$2 sm:$0xff]  ;;  %v5771_v44 = vld [vmem:[#allocation4 + $0x61] ss:$2 sm:$0xff]  ;;  %v5601_v34 = vpop.f32.mrb[85].mxu1 }
 0x416   :  { %v5780_v1 = vmax.f32 %v5755_v56, %v5771_v44  ;;  %v5602_v55 = vpop.f32.mrb[86].mxu1 }
 0x417   :  { %v6683_v5 = vadd.f32 %v5602_v55, %v5121_v23  ;;  %v5604_v0 = vpop.f32.mrb[87].mxu1 }
 0x418   :  { %5788 = vst [vmem:[%s9214_s6 + $0x30] sm:$0xff] %v5780_v1  ;;  %v6685_v12 = vadd.f32 %v5604_v0, %v5123_v51  ;;  %v5167_v20 = vpop.f32.mrb[116].mxu0 }
 0x419   :  { %v5675_v39 = vmax.f32 %v6683_v5, 0.0  ;;  %v6562_v47 = vadd.f32 %v5167_v20, %v9106_v28  ;;  %v5169_v43 = vpop.f32.mrb[117].mxu0 }
 0x41a   :  { %v5676_v29 = vmax.f32 %v6685_v12, 0.0  ;;  %v6564_v22 = vadd.f32 %v5169_v43, %v9108_v59  ;;  %v5171_v13 = vpop.f32.mrb[118].mxu0 }
 0x41b   :  { %v6563_v57 = vadd.f32 %v6562_v47, %v9095_v27  ;;  %v6566_v41 = vadd.f32 %v5171_v13, %v9106_v28  ;;  %v5173_v8 = vpop.f32.mrb[119].mxu0 }
 0x41c   :  { %v5709_v35 = vmax.f32 %v5675_v39, %v5676_v29  ;;  %v6565_v61 = vadd.f32 %v6564_v22, %v9097_v15  ;;  %v6568_v36 = vadd.f32 %v5173_v8, %v9108_v59  ;;  %v5608_v52 = vpop.f32.mrb[88].mxu1 }
 0x41d   :  { %v5615_v40 = vmax.f32 %v6563_v57, 0.0  ;;  %v6567_v42 = vadd.f32 %v6566_v41, %v9102_v33  ;;  %v6687_v24 = vadd.f32 %v5608_v52, %v5127_v21  ;;  %v5610_v32 = vpop.f32.mrb[89].mxu1 }
 0x41e   :  { %v5739_v11 = vmax.f32 %v5707_v50, %v5709_v35  ;;  %v5616_v53 = vmax.f32 %v6565_v61, 0.0  ;;  %v6569_v27 = vadd.f32 %v6568_v36, %v9104_v10  ;;  %v6689_v48 = vadd.f32 %v5610_v32, %v5129_v45  ;;  %v5612_v28 = vpop.f32.mrb[90].mxu1 }
 0x41f   :  { %v5617_v30 = vmax.f32 %v6567_v42, 0.0  ;;  %v5677_v18 = vmax.f32 %v6687_v24, 0.0  ;;  %v5613_v62 = vpop.f32.mrb[91].mxu1 }
 0x420   :  { %5741 = vst [vmem:[#allocation4 + $0x70] sm:$0xff] %v5739_v11  ;;  %v5679_v3 = vmax.f32 %v5615_v40, %v5616_v53  ;;  %v5618_v15 = vmax.f32 %v6569_v27, 0.0  ;;  %v5678_v6 = vmax.f32 %v6689_v48, 0.0 }
 0x422   :  { %v5711_v59 = vmax.f32 %v5679_v3, %v9114_v25  ;;  %v5680_v54 = vmax.f32 %v5617_v30, %v5618_v15  ;;  %v5710_v37 = vmax.f32 %v5677_v18, %v5678_v6 }
 0x424   :  { %5713 = vst [vmem:[#allocation4] sm:$0xff] %v5711_v59  ;;  %v5712_v33 = vmax.f32 %v5680_v54, %v9116_v60  ;;  %v5740_v38 = vmax.f32 %v5708_v63, %v5710_v37 }
 0x426   :  { %5714 = vst [vmem:[#allocation4 + $0x8] sm:$0xff] %v5712_v33  ;;  %5742 = vst [vmem:[#allocation4 + $0x78] sm:$0xff] %v5740_v38 }
 0x42d   :  { %v5743_v10 = vld [vmem:[#allocation4] ss:$2 sm:$0xff]  ;;  %v5759_v14 = vld [vmem:[#allocation4 + $0x1] ss:$2 sm:$0xff]  ;;  %v5757_v9 = vld [vmem:[#allocation4 + $0x70] ss:$2 sm:$0xff] }
 0x42e   :  { %v5774_v4 = vmax.f32 %v5743_v10, %v5759_v14  ;;  %v5773_v49 = vld [vmem:[#allocation4 + $0x71] ss:$2 sm:$0xff] }
 0x42f   :  { %v5781_v19 = vmax.f32 %v5757_v9, %v5773_v49 }
 0x430   :  { %5782 = vst [vmem:[%s9214_s6] sm:$0xff] %v5774_v4 }
 0x431   :  { %5789 = vst [vmem:[%s9214_s6 + $0x38] sm:$0xff] %v5781_v19 }

</bundles_post_ra>
